<compile_context>
chip_gen: v7x
topology: tpu7x:2x2x1
jax: 0.10.0
libtpu: 0.0.40
codegen_flags: <defaults>
</compile_context>

<pallas_src>
import functools

import jax
import jax.numpy as jnp
from jax.experimental import pallas as pl
from jax.experimental.pallas import tpu as pltpu


# -------------------- fused projection + GRU recurrence + last-step select + classifier -------

def fused_gru_clf_kernel(x_ref, wih_ref, bias_ref, whh_ref, bhh_n_ref, len_ref,
                         w1_ref, b1_ref, w2_ref, b2_ref, out_ref, gi_scratch,
                         *, B, T, H):
    j = pl.program_id(0)

    # ---- hoisted input projection, gate tile j: gi_j = x @ Wih[:, j*H:(j+1)*H] + bias_j ------
    # x stays f32 (read from HBM once, resident); cast to bf16 in VMEM for a single MXU pass.
    x_bf16 = x_ref[...].astype(jnp.bfloat16)                        # (B*T, Din)
    gi_scratch[j] = (
        jnp.dot(x_bf16, wih_ref[...], preferred_element_type=jnp.float32)
        + bias_ref[0]                                               # (1, H) f32 (pre-folded)
    )

    # ---- last gate tile: recurrence + PackedSequence last-step select + classifier -----------
    @pl.when(j == pl.num_programs(0) - 1)
    def _():
        whh = whh_ref[...]                                          # (H, 3H) bf16
        bhh_n = bhh_n_ref[...]                                      # (1, H) f32
        last_t = len_ref[...] - 1                                   # (B, 1) int32

        def gate_at(g, t):
            # gi rows are batch-major (row = b*T + t); g/t/b are static -> static ref slices.
            rows = [gi_scratch[g, pl.ds(b * T + t, 1), :] for b in range(B)]
            return rows[0] if B == 1 else jnp.concatenate(rows, axis=0)   # (B, H) f32

        h = jnp.zeros((B, H), jnp.float32)
        h_last = h
        for t in range(T):                                          # T=8, static unroll
            # bf16 operands, f32 accumulation: one MXU pass per step on the serial chain.
            gh = jnp.dot(h.astype(jnp.bfloat16), whh,
                         preferred_element_type=jnp.float32)        # (B, 3H)
            # PyTorch GRU gate order: r, z, n
            r = jax.nn.sigmoid(gate_at(0, t) + gh[:, 0 * H:1 * H])
            z = jax.nn.sigmoid(gate_at(1, t) + gh[:, 1 * H:2 * H])
            n = jnp.tanh(gate_at(2, t) + r * (gh[:, 2 * H:3 * H] + bhh_n))
            h = (1.0 - z) * n + z * h
            h_last = jnp.where(last_t == t, h, h_last)              # last valid timestep

        # Classifier: Linear(256,64) + ReLU + Linear(64,11), fused in the same kernel.
        h1 = jnp.dot(h_last, w1_ref[...], preferred_element_type=jnp.float32) + b1_ref[...]
        h1 = jnp.maximum(h1, 0.0)
        pred = jnp.dot(h1, w2_ref[...], preferred_element_type=jnp.float32) + b2_ref[...]
        out_ref[...] = pred.astype(out_ref.dtype)


def rnn_classifier_forward(x_btd, lengths, params, clf_batch):
    """x_btd: (B, T, 2048) f32 padded batch-first features; lengths: (B,) int32 valid lengths.
    Assumes all lengths >= 1 (as with a real PackedSequence)."""
    # TODO(synk): only num_layer == 1 is implemented (stacked GRU layers would need a
    # sequence-output variant of the fused kernel for the non-final layers).
    assert len(params["gru"]) == 1
    wih_bf16, whh_bf16, bih, bhh = params["gru"][0]
    H = whh_bf16.shape[0]
    B, T, Din = x_btd.shape
    n_cls = params["w2_t"].shape[1]
    assert clf_batch <= B

    # Batch-major flatten only: no transpose, no batch padding -> no materialized copy.
    x_flat = x_btd.reshape(B * T, Din)
    lens = lengths.astype(jnp.int32).reshape(B, 1)

    # Pre-fold biases: r/z gates get bih+bhh once; n gate keeps bhh_n separate (inside r*(.)).
    bias_comb = jnp.concatenate([bih[:, :2 * H] + bhh[:, :2 * H], bih[:, 2 * H:]], axis=1)
    bias_g = bias_comb.reshape(3, 1, H)                             # per-gate (1, H) tiles
    bhh_n = bhh[:, 2 * H:]                                          # (1, H)

    kernel = functools.partial(fused_gru_clf_kernel, B=B, T=T, H=H)

    pred = pl.pallas_call(
        kernel,
        out_shape=jax.ShapeDtypeStruct((B, n_cls), jnp.float32),
        grid_spec=pltpu.PrefetchScalarGridSpec(
            num_scalar_prefetch=0,
            grid=(3,),                                              # one step per GRU gate
            in_specs=[
                pl.BlockSpec((B * T, Din), lambda j: (0, 0)),       # x (resident)
                pl.BlockSpec((Din, H), lambda j: (0, j)),           # Wih gate tile (pipelined)
                pl.BlockSpec((1, 1, H), lambda j: (j, 0, 0)),       # folded bias gate tile
                pl.BlockSpec((H, 3 * H), lambda j: (0, 0)),         # Whh (resident, bf16)
                pl.BlockSpec((1, H), lambda j: (0, 0)),             # bhh_n
                pl.BlockSpec((B, 1), lambda j: (0, 0)),             # lengths
                pl.BlockSpec((H, 64), lambda j: (0, 0)),            # clf W1^T
                pl.BlockSpec((1, 64), lambda j: (0, 0)),            # clf b1
                pl.BlockSpec((64, n_cls), lambda j: (0, 0)),        # clf W2^T
                pl.BlockSpec((1, n_cls), lambda j: (0, 0)),         # clf b2
            ],
            out_specs=pl.BlockSpec((B, n_cls), lambda j: (0, 0)),
            scratch_shapes=[pltpu.VMEM((3, B * T, H), jnp.float32)],  # gi never hits HBM
        ),
        compiler_params=pltpu.CompilerParams(
            dimension_semantics=("arbitrary",),                     # carried scratch/output
            vmem_limit_bytes=32 * 1024 * 1024,
        ),
    )(x_flat, wih_bf16, bias_g, whh_bf16, bhh_n, lens,
      params["w1_t"], params["b1"], params["w2_t"], params["b2"])
    return pred[:clf_batch]


# -------------------- pure-JAX reference (for sanity check) -----------------------------------

def reference_forward(x_btd, lengths, params, clf_batch):
    B, T, Din = x_btd.shape
    seq = x_btd
    for (wih_t, whh_t, bih, bhh) in params["gru"]:
        H = whh_t.shape[0]
        wih = wih_t.astype(jnp.float32)
        whh = whh_t.astype(jnp.float32)
        h = jnp.zeros((B, H), jnp.float32)
        outs = []
        for t in range(T):
            gi = seq[:, t, :] @ wih + bih
            gh = h @ whh + bhh
            r = jax.nn.sigmoid(gi[:, :H] + gh[:, :H])
            z = jax.nn.sigmoid(gi[:, H:2 * H] + gh[:, H:2 * H])
            n = jnp.tanh(gi[:, 2 * H:] + r * gh[:, 2 * H:])
            h = (1.0 - z) * n + z * h
            outs.append(h)
        seq = jnp.stack(outs, axis=1)
    ft = seq[jnp.arange(B), lengths - 1, :]                         # (B, H)
    h1 = jnp.maximum(ft @ params["w1_t"] + params["b1"], 0.0)
    return (h1 @ params["w2_t"] + params["b2"])[:clf_batch]


# -------------------- parameter init ----------------------------------------------------------

def init_params(key, input_size=2048, hidden_size=256, num_layers=1):
    ks = jax.random.split(key, 4 * num_layers + 4)
    gru = []
    kidx = 0
    bound = 1.0 / jnp.sqrt(hidden_size)
    for layer in range(num_layers):
        din = input_size if layer == 0 else hidden_size
        wih_t = jax.random.uniform(ks[kidx + 0], (din, 3 * hidden_size), jnp.float32, -bound, bound)
        whh_t = jax.random.uniform(ks[kidx + 1], (hidden_size, 3 * hidden_size), jnp.float32, -bound, bound)
        bih = jax.random.uniform(ks[kidx + 2], (1, 3 * hidden_size), jnp.float32, -bound, bound)
        bhh = jax.random.uniform(ks[kidx + 3], (1, 3 * hidden_size), jnp.float32, -bound, bound)
        # bf16 weight storage (halves the dominant Wih HBM read); biases stay f32.
        gru.append((wih_t.astype(jnp.bfloat16), whh_t.astype(jnp.bfloat16), bih, bhh))
        kidx += 4
    b1_bound = 1.0 / jnp.sqrt(256.0)
    b2_bound = 1.0 / jnp.sqrt(64.0)
    w1_t = jax.random.uniform(ks[kidx + 0], (hidden_size, 64), jnp.float32, -b1_bound, b1_bound)
    b1 = jax.random.uniform(ks[kidx + 1], (1, 64), jnp.float32, -b1_bound, b1_bound)
    w2_t = jax.random.uniform(ks[kidx + 2], (64, 11), jnp.float32, -b2_bound, b2_bound)
    b2 = jax.random.uniform(ks[kidx + 3], (1, 11), jnp.float32, -b2_bound, b2_bound)
    return {"gru": gru, "w1_t": w1_t, "b1": b1, "w2_t": w2_t, "b2": b2}


if __name__ == "__main__":
    # hidden_size forced to 256 by nn.Linear(256, 64); num_layer chosen as 1.
    B, T, DIN, H = 2, 8, 2048, 256
    key = jax.random.PRNGKey(0)
    kx, kp = jax.random.split(key)

    x = jax.random.normal(kx, (B, T, DIN), jnp.float32)             # padded batch-first features
    lengths = jnp.array([5, 8], jnp.int32)                          # per-sequence valid lengths
    params = init_params(kp, input_size=DIN, hidden_size=H, num_layers=1)

    pred = rnn_classifier_forward(x, lengths, params, clf_batch=B)
    pred = jax.block_until_ready(pred)
    assert pred.shape == (B, 11), pred.shape

    ref = reference_forward(x, lengths, params, clf_batch=B)
    assert jnp.allclose(pred, ref, rtol=2e-2, atol=2e-2), (pred, ref)

    print("KERNEL_OK")
</pallas_src>

<mosaic_0001>
module attributes {stable_mosaic.version = 11 : i64} {
  func.func @fused_gru_clf_kernel(%arg0: i32, %arg1: memref<16x2048xf32, #tpu.memory_space<vmem>>, %arg2: memref<2048x256xbf16, #tpu.memory_space<vmem>>, %arg3: memref<1x1x256xf32, #tpu.memory_space<vmem>>, %arg4: memref<256x768xbf16, #tpu.memory_space<vmem>>, %arg5: memref<1x256xf32, #tpu.memory_space<vmem>>, %arg6: memref<2x1xi32, #tpu.memory_space<vmem>>, %arg7: memref<256x64xf32, #tpu.memory_space<vmem>>, %arg8: memref<1x64xf32, #tpu.memory_space<vmem>>, %arg9: memref<64x11xf32, #tpu.memory_space<vmem>>, %arg10: memref<1x11xf32, #tpu.memory_space<vmem>>, %arg11: memref<2x11xf32, #tpu.memory_space<vmem>>, %arg12: memref<3x16x256xf32, #tpu.memory_space<vmem>>) attributes {dimension_semantics = [#tpu.dimension_semantics<arbitrary>], iteration_bounds = array<i64: 3>, scalar_prefetch = 0 : i64, scratch_operands = 1 : i64, tpu.core_type = #tpu.core_type<tc>, window_params = [{pipeline_mode = #tpu.pipeline_mode<synchronous>, transform_indices = @transform_0, window_bounds = array<i64: 16, 2048>}, {transform_indices = @transform_1, window_bounds = array<i64: 2048, 256>}, {transform_indices = @transform_2, window_bounds = array<i64: 1, 1, 256>}, {pipeline_mode = #tpu.pipeline_mode<synchronous>, transform_indices = @transform_3, window_bounds = array<i64: 256, 768>}, {pipeline_mode = #tpu.pipeline_mode<synchronous>, transform_indices = @transform_4, window_bounds = array<i64: 1, 256>}, {pipeline_mode = #tpu.pipeline_mode<synchronous>, transform_indices = @transform_5, window_bounds = array<i64: 2, 1>}, {pipeline_mode = #tpu.pipeline_mode<synchronous>, transform_indices = @transform_6, window_bounds = array<i64: 256, 64>}, {pipeline_mode = #tpu.pipeline_mode<synchronous>, transform_indices = @transform_7, window_bounds = array<i64: 1, 64>}, {pipeline_mode = #tpu.pipeline_mode<synchronous>, transform_indices = @transform_8, window_bounds = array<i64: 64, 11>}, {pipeline_mode = #tpu.pipeline_mode<synchronous>, transform_indices = @transform_9, window_bounds = array<i64: 1, 11>}, {pipeline_mode = #tpu.pipeline_mode<synchronous>, transform_indices = @transform_10, window_bounds = array<i64: 2, 11>}]} {
    %c0 = arith.constant 0 : index
    %c0_0 = arith.constant 0 : index
    %0 = vector.load %arg1[%c0, %c0_0] : memref<16x2048xf32, #tpu.memory_space<vmem>>, vector<16x2048xf32>
    %1 = arith.truncf %0 : vector<16x2048xf32> to vector<16x2048xbf16>
    %c0_1 = arith.constant 0 : index
    %c0_2 = arith.constant 0 : index
    %2 = vector.load %arg2[%c0_1, %c0_2] : memref<2048x256xbf16, #tpu.memory_space<vmem>>, vector<2048x256xbf16>
    %cst = arith.constant dense<0.000000e+00> : vector<16x256xf32>
    %3 = tpu.matmul %1, %2, %cst {dimension_numbers = #tpu.dot_dimension_numbers<[1], [0], [0], [1], [0, 0, 1, 1], [], []>} : vector<16x2048xbf16>, vector<2048x256xbf16>, vector<16x256xf32> -> vector<16x256xf32>
    %c0_3 = arith.constant 0 : index
    %c0_4 = arith.constant 0 : index
    %c0_5 = arith.constant 0 : index
    %4 = vector.load %arg3[%c0_3, %c0_4, %c0_5] : memref<1x1x256xf32, #tpu.memory_space<vmem>>, vector<1x1x256xf32>
    %5 = vector.shape_cast %4 : vector<1x1x256xf32> to vector<1x256xf32>
    %6 = vector.broadcast %5 : vector<1x256xf32> to vector<16x256xf32>
    %7 = arith.addf %3, %6 : vector<16x256xf32>
    %8 = arith.index_cast %arg0 : i32 to index
    %c0_6 = arith.constant 0 : index
    %c0_7 = arith.constant 0 : index
    %9 = vector.load %arg12[%8, %c0_6, %c0_7] : memref<3x16x256xf32, #tpu.memory_space<vmem>>, vector<1x16x256xf32>
    %10 = vector.shape_cast %9 : vector<1x16x256xf32> to vector<16x256xf32>
    %11 = vector.shape_cast %7 : vector<16x256xf32> to vector<1x16x256xf32>
    tpu.vector_store %arg12[%8, %c0_6, %c0_7], %11 {strides = array<i32>} : memref<3x16x256xf32, #tpu.memory_space<vmem>>, vector<1x16x256xf32>,
    %c2_i32 = arith.constant 2 : i32
    %12 = arith.cmpi eq, %arg0, %c2_i32 : i32
    %13 = arith.extui %12 : i1 to i32
    %c0_i32 = arith.constant 0 : i32
    %14 = arith.cmpi ne, %13, %c0_i32 : i32
    scf.if %14 {
      %c0_8 = arith.constant 0 : index
      %c0_9 = arith.constant 0 : index
      %15 = vector.load %arg4[%c0_8, %c0_9] : memref<256x768xbf16, #tpu.memory_space<vmem>>, vector<256x768xbf16>
      %c0_10 = arith.constant 0 : index
      %c0_11 = arith.constant 0 : index
      %16 = vector.load %arg5[%c0_10, %c0_11] : memref<1x256xf32, #tpu.memory_space<vmem>>, vector<1x256xf32>
      %c0_12 = arith.constant 0 : index
      %c0_13 = arith.constant 0 : index
      %17 = vector.load %arg6[%c0_12, %c0_13] : memref<2x1xi32, #tpu.memory_space<vmem>>, vector<2x1xi32>
      %c1_i32 = arith.constant 1 : i32
      %18 = vector.broadcast %c1_i32 : i32 to vector<2x1xi32>
      %19 = arith.subi %17, %18 : vector<2x1xi32>
      %cst_14 = arith.constant 0.000000e+00 : f32
      %20 = vector.broadcast %cst_14 : f32 to vector<2x256xf32>
      %21 = arith.truncf %20 : vector<2x256xf32> to vector<2x256xbf16>
      %cst_15 = arith.constant dense<0.000000e+00> : vector<2x768xf32>
      %22 = tpu.matmul %21, %15, %cst_15 {dimension_numbers = #tpu.dot_dimension_numbers<[1], [0], [0], [1], [0, 0, 1, 1], [], []>} : vector<2x256xbf16>, vector<256x768xbf16>, vector<2x768xf32> -> vector<2x768xf32>
      %c0_16 = arith.constant 0 : index
      %c0_17 = arith.constant 0 : index
      %c0_18 = arith.constant 0 : index
      %23 = vector.load %arg12[%c0_16, %c0_17, %c0_18] : memref<3x16x256xf32, #tpu.memory_space<vmem>>, vector<1x1x256xf32>
      %24 = vector.shape_cast %23 : vector<1x1x256xf32> to vector<1x256xf32>
      %c0_19 = arith.constant 0 : index
      %c8 = arith.constant 8 : index
      %c0_20 = arith.constant 0 : index
      %25 = vector.load %arg12[%c0_19, %c8, %c0_20] : memref<3x16x256xf32, #tpu.memory_space<vmem>>, vector<1x1x256xf32>
      %26 = vector.shape_cast %25 : vector<1x1x256xf32> to vector<1x256xf32>
      %27 = tpu.concatenate %24, %26 in 0 : vector<1x256xf32>, vector<1x256xf32> -> vector<2x256xf32>
      %28 = vector.extract_strided_slice %22 {offsets = [0, 0], sizes = [2, 256], strides = [1, 1]} : vector<2x768xf32> to vector<2x256xf32>
      %29 = arith.addf %27, %28 : vector<2x256xf32>
      %30 = arith.negf %29 : vector<2x256xf32>
      %31 = math.exp %30 : vector<2x256xf32>
      %cst_21 = arith.constant 1.000000e+00 : f32
      %32 = vector.broadcast %cst_21 : f32 to vector<2x256xf32>
      %33 = arith.addf %32, %31 : vector<2x256xf32>
      %34 = arith.divf %32, %33 : vector<2x256xf32>
      %c1 = arith.constant 1 : index
      %c0_22 = arith.constant 0 : index
      %c0_23 = arith.constant 0 : index
      %35 = vector.load %arg12[%c1, %c0_22, %c0_23] : memref<3x16x256xf32, #tpu.memory_space<vmem>>, vector<1x1x256xf32>
      %36 = vector.shape_cast %35 : vector<1x1x256xf32> to vector<1x256xf32>
      %c1_24 = arith.constant 1 : index
      %c8_25 = arith.constant 8 : index
      %c0_26 = arith.constant 0 : index
      %37 = vector.load %arg12[%c1_24, %c8_25, %c0_26] : memref<3x16x256xf32, #tpu.memory_space<vmem>>, vector<1x1x256xf32>
      %38 = vector.shape_cast %37 : vector<1x1x256xf32> to vector<1x256xf32>
      %39 = tpu.concatenate %36, %38 in 0 : vector<1x256xf32>, vector<1x256xf32> -> vector<2x256xf32>
      %40 = vector.extract_strided_slice %22 {offsets = [0, 256], sizes = [2, 256], strides = [1, 1]} : vector<2x768xf32> to vector<2x256xf32>
      %41 = arith.addf %39, %40 : vector<2x256xf32>
      %42 = arith.negf %41 : vector<2x256xf32>
      %43 = math.exp %42 : vector<2x256xf32>
      %cst_27 = arith.constant 1.000000e+00 : f32
      %44 = vector.broadcast %cst_27 : f32 to vector<2x256xf32>
      %45 = arith.addf %44, %43 : vector<2x256xf32>
      %46 = arith.divf %44, %45 : vector<2x256xf32>
      %c2 = arith.constant 2 : index
      %c0_28 = arith.constant 0 : index
      %c0_29 = arith.constant 0 : index
      %47 = vector.load %arg12[%c2, %c0_28, %c0_29] : memref<3x16x256xf32, #tpu.memory_space<vmem>>, vector<1x1x256xf32>
      %48 = vector.shape_cast %47 : vector<1x1x256xf32> to vector<1x256xf32>
      %c2_30 = arith.constant 2 : index
      %c8_31 = arith.constant 8 : index
      %c0_32 = arith.constant 0 : index
      %49 = vector.load %arg12[%c2_30, %c8_31, %c0_32] : memref<3x16x256xf32, #tpu.memory_space<vmem>>, vector<1x1x256xf32>
      %50 = vector.shape_cast %49 : vector<1x1x256xf32> to vector<1x256xf32>
      %51 = tpu.concatenate %48, %50 in 0 : vector<1x256xf32>, vector<1x256xf32> -> vector<2x256xf32>
      %52 = vector.extract_strided_slice %22 {offsets = [0, 512], sizes = [2, 256], strides = [1, 1]} : vector<2x768xf32> to vector<2x256xf32>
      %53 = vector.broadcast %16 : vector<1x256xf32> to vector<2x256xf32>
      %54 = arith.addf %52, %53 : vector<2x256xf32>
      %55 = arith.mulf %34, %54 : vector<2x256xf32>
      %56 = arith.addf %51, %55 : vector<2x256xf32>
      %57 = math.tanh %56 : vector<2x256xf32>
      %cst_33 = arith.constant 1.000000e+00 : f32
      %58 = vector.broadcast %cst_33 : f32 to vector<2x256xf32>
      %59 = arith.subf %58, %46 : vector<2x256xf32>
      %60 = arith.mulf %59, %57 : vector<2x256xf32>
      %61 = arith.mulf %46, %20 : vector<2x256xf32>
      %62 = arith.addf %60, %61 : vector<2x256xf32>
      %c0_i32_34 = arith.constant 0 : i32
      %63 = vector.broadcast %c0_i32_34 : i32 to vector<2x1xi32>
      %64 = arith.cmpi eq, %19, %63 : vector<2x1xi32>
      %65 = vector.shape_cast %64 : vector<2x1xi1> to vector<2x1xi1>
      %66 = vector.broadcast %65 : vector<2x1xi1> to vector<2x256xi1>
      %67 = arith.select %66, %62, %20 : vector<2x256xi1>, vector<2x256xf32>
      %68 = arith.truncf %62 : vector<2x256xf32> to vector<2x256xbf16>
      %cst_35 = arith.constant dense<0.000000e+00> : vector<2x768xf32>
      %69 = tpu.matmul %68, %15, %cst_35 {dimension_numbers = #tpu.dot_dimension_numbers<[1], [0], [0], [1], [0, 0, 1, 1], [], []>} : vector<2x256xbf16>, vector<256x768xbf16>, vector<2x768xf32> -> vector<2x768xf32>
      %c0_36 = arith.constant 0 : index
      %c1_37 = arith.constant 1 : index
      %c0_38 = arith.constant 0 : index
      %70 = vector.load %arg12[%c0_36, %c1_37, %c0_38] : memref<3x16x256xf32, #tpu.memory_space<vmem>>, vector<1x1x256xf32>
      %71 = vector.shape_cast %70 : vector<1x1x256xf32> to vector<1x256xf32>
      %c0_39 = arith.constant 0 : index
      %c9 = arith.constant 9 : index
      %c0_40 = arith.constant 0 : index
      %72 = vector.load %arg12[%c0_39, %c9, %c0_40] : memref<3x16x256xf32, #tpu.memory_space<vmem>>, vector<1x1x256xf32>
      %73 = vector.shape_cast %72 : vector<1x1x256xf32> to vector<1x256xf32>
      %74 = tpu.concatenate %71, %73 in 0 : vector<1x256xf32>, vector<1x256xf32> -> vector<2x256xf32>
      %75 = vector.extract_strided_slice %69 {offsets = [0, 0], sizes = [2, 256], strides = [1, 1]} : vector<2x768xf32> to vector<2x256xf32>
      %76 = arith.addf %74, %75 : vector<2x256xf32>
      %77 = arith.negf %76 : vector<2x256xf32>
      %78 = math.exp %77 : vector<2x256xf32>
      %cst_41 = arith.constant 1.000000e+00 : f32
      %79 = vector.broadcast %cst_41 : f32 to vector<2x256xf32>
      %80 = arith.addf %79, %78 : vector<2x256xf32>
      %81 = arith.divf %79, %80 : vector<2x256xf32>
      %c1_42 = arith.constant 1 : index
      %c1_43 = arith.constant 1 : index
      %c0_44 = arith.constant 0 : index
      %82 = vector.load %arg12[%c1_42, %c1_43, %c0_44] : memref<3x16x256xf32, #tpu.memory_space<vmem>>, vector<1x1x256xf32>
      %83 = vector.shape_cast %82 : vector<1x1x256xf32> to vector<1x256xf32>
      %c1_45 = arith.constant 1 : index
      %c9_46 = arith.constant 9 : index
      %c0_47 = arith.constant 0 : index
      %84 = vector.load %arg12[%c1_45, %c9_46, %c0_47] : memref<3x16x256xf32, #tpu.memory_space<vmem>>, vector<1x1x256xf32>
      %85 = vector.shape_cast %84 : vector<1x1x256xf32> to vector<1x256xf32>
      %86 = tpu.concatenate %83, %85 in 0 : vector<1x256xf32>, vector<1x256xf32> -> vector<2x256xf32>
      %87 = vector.extract_strided_slice %69 {offsets = [0, 256], sizes = [2, 256], strides = [1, 1]} : vector<2x768xf32> to vector<2x256xf32>
      %88 = arith.addf %86, %87 : vector<2x256xf32>
      %89 = arith.negf %88 : vector<2x256xf32>
      %90 = math.exp %89 : vector<2x256xf32>
      %cst_48 = arith.constant 1.000000e+00 : f32
      %91 = vector.broadcast %cst_48 : f32 to vector<2x256xf32>
      %92 = arith.addf %91, %90 : vector<2x256xf32>
      %93 = arith.divf %91, %92 : vector<2x256xf32>
      %c2_49 = arith.constant 2 : index
      %c1_50 = arith.constant 1 : index
      %c0_51 = arith.constant 0 : index
      %94 = vector.load %arg12[%c2_49, %c1_50, %c0_51] : memref<3x16x256xf32, #tpu.memory_space<vmem>>, vector<1x1x256xf32>
      %95 = vector.shape_cast %94 : vector<1x1x256xf32> to vector<1x256xf32>
      %c2_52 = arith.constant 2 : index
      %c9_53 = arith.constant 9 : index
      %c0_54 = arith.constant 0 : index
      %96 = vector.load %arg12[%c2_52, %c9_53, %c0_54] : memref<3x16x256xf32, #tpu.memory_space<vmem>>, vector<1x1x256xf32>
      %97 = vector.shape_cast %96 : vector<1x1x256xf32> to vector<1x256xf32>
      %98 = tpu.concatenate %95, %97 in 0 : vector<1x256xf32>, vector<1x256xf32> -> vector<2x256xf32>
      %99 = vector.extract_strided_slice %69 {offsets = [0, 512], sizes = [2, 256], strides = [1, 1]} : vector<2x768xf32> to vector<2x256xf32>
      %100 = vector.broadcast %16 : vector<1x256xf32> to vector<2x256xf32>
      %101 = arith.addf %99, %100 : vector<2x256xf32>
      %102 = arith.mulf %81, %101 : vector<2x256xf32>
      %103 = arith.addf %98, %102 : vector<2x256xf32>
      %104 = math.tanh %103 : vector<2x256xf32>
      %cst_55 = arith.constant 1.000000e+00 : f32
      %105 = vector.broadcast %cst_55 : f32 to vector<2x256xf32>
      %106 = arith.subf %105, %93 : vector<2x256xf32>
      %107 = arith.mulf %106, %104 : vector<2x256xf32>
      %108 = arith.mulf %93, %62 : vector<2x256xf32>
      %109 = arith.addf %107, %108 : vector<2x256xf32>
      %c1_i32_56 = arith.constant 1 : i32
      %110 = vector.broadcast %c1_i32_56 : i32 to vector<2x1xi32>
      %111 = arith.cmpi eq, %19, %110 : vector<2x1xi32>
      %112 = vector.shape_cast %111 : vector<2x1xi1> to vector<2x1xi1>
      %113 = vector.broadcast %112 : vector<2x1xi1> to vector<2x256xi1>
      %114 = arith.select %113, %109, %67 : vector<2x256xi1>, vector<2x256xf32>
      %115 = arith.truncf %109 : vector<2x256xf32> to vector<2x256xbf16>
      %cst_57 = arith.constant dense<0.000000e+00> : vector<2x768xf32>
      %116 = tpu.matmul %115, %15, %cst_57 {dimension_numbers = #tpu.dot_dimension_numbers<[1], [0], [0], [1], [0, 0, 1, 1], [], []>} : vector<2x256xbf16>, vector<256x768xbf16>, vector<2x768xf32> -> vector<2x768xf32>
      %c0_58 = arith.constant 0 : index
      %c2_59 = arith.constant 2 : index
      %c0_60 = arith.constant 0 : index
      %117 = vector.load %arg12[%c0_58, %c2_59, %c0_60] : memref<3x16x256xf32, #tpu.memory_space<vmem>>, vector<1x1x256xf32>
      %118 = vector.shape_cast %117 : vector<1x1x256xf32> to vector<1x256xf32>
      %c0_61 = arith.constant 0 : index
      %c10 = arith.constant 10 : index
      %c0_62 = arith.constant 0 : index
      %119 = vector.load %arg12[%c0_61, %c10, %c0_62] : memref<3x16x256xf32, #tpu.memory_space<vmem>>, vector<1x1x256xf32>
      %120 = vector.shape_cast %119 : vector<1x1x256xf32> to vector<1x256xf32>
      %121 = tpu.concatenate %118, %120 in 0 : vector<1x256xf32>, vector<1x256xf32> -> vector<2x256xf32>
      %122 = vector.extract_strided_slice %116 {offsets = [0, 0], sizes = [2, 256], strides = [1, 1]} : vector<2x768xf32> to vector<2x256xf32>
      %123 = arith.addf %121, %122 : vector<2x256xf32>
      %124 = arith.negf %123 : vector<2x256xf32>
      %125 = math.exp %124 : vector<2x256xf32>
      %cst_63 = arith.constant 1.000000e+00 : f32
      %126 = vector.broadcast %cst_63 : f32 to vector<2x256xf32>
      %127 = arith.addf %126, %125 : vector<2x256xf32>
      %128 = arith.divf %126, %127 : vector<2x256xf32>
      %c1_64 = arith.constant 1 : index
      %c2_65 = arith.constant 2 : index
      %c0_66 = arith.constant 0 : index
      %129 = vector.load %arg12[%c1_64, %c2_65, %c0_66] : memref<3x16x256xf32, #tpu.memory_space<vmem>>, vector<1x1x256xf32>
      %130 = vector.shape_cast %129 : vector<1x1x256xf32> to vector<1x256xf32>
      %c1_67 = arith.constant 1 : index
      %c10_68 = arith.constant 10 : index
      %c0_69 = arith.constant 0 : index
      %131 = vector.load %arg12[%c1_67, %c10_68, %c0_69] : memref<3x16x256xf32, #tpu.memory_space<vmem>>, vector<1x1x256xf32>
      %132 = vector.shape_cast %131 : vector<1x1x256xf32> to vector<1x256xf32>
      %133 = tpu.concatenate %130, %132 in 0 : vector<1x256xf32>, vector<1x256xf32> -> vector<2x256xf32>
      %134 = vector.extract_strided_slice %116 {offsets = [0, 256], sizes = [2, 256], strides = [1, 1]} : vector<2x768xf32> to vector<2x256xf32>
      %135 = arith.addf %133, %134 : vector<2x256xf32>
      %136 = arith.negf %135 : vector<2x256xf32>
      %137 = math.exp %136 : vector<2x256xf32>
      %cst_70 = arith.constant 1.000000e+00 : f32
      %138 = vector.broadcast %cst_70 : f32 to vector<2x256xf32>
      %139 = arith.addf %138, %137 : vector<2x256xf32>
      %140 = arith.divf %138, %139 : vector<2x256xf32>
      %c2_71 = arith.constant 2 : index
      %c2_72 = arith.constant 2 : index
      %c0_73 = arith.constant 0 : index
      %141 = vector.load %arg12[%c2_71, %c2_72, %c0_73] : memref<3x16x256xf32, #tpu.memory_space<vmem>>, vector<1x1x256xf32>
      %142 = vector.shape_cast %141 : vector<1x1x256xf32> to vector<1x256xf32>
      %c2_74 = arith.constant 2 : index
      %c10_75 = arith.constant 10 : index
      %c0_76 = arith.constant 0 : index
      %143 = vector.load %arg12[%c2_74, %c10_75, %c0_76] : memref<3x16x256xf32, #tpu.memory_space<vmem>>, vector<1x1x256xf32>
      %144 = vector.shape_cast %143 : vector<1x1x256xf32> to vector<1x256xf32>
      %145 = tpu.concatenate %142, %144 in 0 : vector<1x256xf32>, vector<1x256xf32> -> vector<2x256xf32>
      %146 = vector.extract_strided_slice %116 {offsets = [0, 512], sizes = [2, 256], strides = [1, 1]} : vector<2x768xf32> to vector<2x256xf32>
      %147 = vector.broadcast %16 : vector<1x256xf32> to vector<2x256xf32>
      %148 = arith.addf %146, %147 : vector<2x256xf32>
      %149 = arith.mulf %128, %148 : vector<2x256xf32>
      %150 = arith.addf %145, %149 : vector<2x256xf32>
      %151 = math.tanh %150 : vector<2x256xf32>
      %cst_77 = arith.constant 1.000000e+00 : f32
      %152 = vector.broadcast %cst_77 : f32 to vector<2x256xf32>
      %153 = arith.subf %152, %140 : vector<2x256xf32>
      %154 = arith.mulf %153, %151 : vector<2x256xf32>
      %155 = arith.mulf %140, %109 : vector<2x256xf32>
      %156 = arith.addf %154, %155 : vector<2x256xf32>
      %c2_i32_78 = arith.constant 2 : i32
      %157 = vector.broadcast %c2_i32_78 : i32 to vector<2x1xi32>
      %158 = arith.cmpi eq, %19, %157 : vector<2x1xi32>
      %159 = vector.shape_cast %158 : vector<2x1xi1> to vector<2x1xi1>
      %160 = vector.broadcast %159 : vector<2x1xi1> to vector<2x256xi1>
      %161 = arith.select %160, %156, %114 : vector<2x256xi1>, vector<2x256xf32>
      %162 = arith.truncf %156 : vector<2x256xf32> to vector<2x256xbf16>
      %cst_79 = arith.constant dense<0.000000e+00> : vector<2x768xf32>
      %163 = tpu.matmul %162, %15, %cst_79 {dimension_numbers = #tpu.dot_dimension_numbers<[1], [0], [0], [1], [0, 0, 1, 1], [], []>} : vector<2x256xbf16>, vector<256x768xbf16>, vector<2x768xf32> -> vector<2x768xf32>
      %c0_80 = arith.constant 0 : index
      %c3 = arith.constant 3 : index
      %c0_81 = arith.constant 0 : index
      %164 = vector.load %arg12[%c0_80, %c3, %c0_81] : memref<3x16x256xf32, #tpu.memory_space<vmem>>, vector<1x1x256xf32>
      %165 = vector.shape_cast %164 : vector<1x1x256xf32> to vector<1x256xf32>
      %c0_82 = arith.constant 0 : index
      %c11 = arith.constant 11 : index
      %c0_83 = arith.constant 0 : index
      %166 = vector.load %arg12[%c0_82, %c11, %c0_83] : memref<3x16x256xf32, #tpu.memory_space<vmem>>, vector<1x1x256xf32>
      %167 = vector.shape_cast %166 : vector<1x1x256xf32> to vector<1x256xf32>
      %168 = tpu.concatenate %165, %167 in 0 : vector<1x256xf32>, vector<1x256xf32> -> vector<2x256xf32>
      %169 = vector.extract_strided_slice %163 {offsets = [0, 0], sizes = [2, 256], strides = [1, 1]} : vector<2x768xf32> to vector<2x256xf32>
      %170 = arith.addf %168, %169 : vector<2x256xf32>
      %171 = arith.negf %170 : vector<2x256xf32>
      %172 = math.exp %171 : vector<2x256xf32>
      %cst_84 = arith.constant 1.000000e+00 : f32
      %173 = vector.broadcast %cst_84 : f32 to vector<2x256xf32>
      %174 = arith.addf %173, %172 : vector<2x256xf32>
      %175 = arith.divf %173, %174 : vector<2x256xf32>
      %c1_85 = arith.constant 1 : index
      %c3_86 = arith.constant 3 : index
      %c0_87 = arith.constant 0 : index
      %176 = vector.load %arg12[%c1_85, %c3_86, %c0_87] : memref<3x16x256xf32, #tpu.memory_space<vmem>>, vector<1x1x256xf32>
      %177 = vector.shape_cast %176 : vector<1x1x256xf32> to vector<1x256xf32>
      %c1_88 = arith.constant 1 : index
      %c11_89 = arith.constant 11 : index
      %c0_90 = arith.constant 0 : index
      %178 = vector.load %arg12[%c1_88, %c11_89, %c0_90] : memref<3x16x256xf32, #tpu.memory_space<vmem>>, vector<1x1x256xf32>
      %179 = vector.shape_cast %178 : vector<1x1x256xf32> to vector<1x256xf32>
      %180 = tpu.concatenate %177, %179 in 0 : vector<1x256xf32>, vector<1x256xf32> -> vector<2x256xf32>
      %181 = vector.extract_strided_slice %163 {offsets = [0, 256], sizes = [2, 256], strides = [1, 1]} : vector<2x768xf32> to vector<2x256xf32>
      %182 = arith.addf %180, %181 : vector<2x256xf32>
      %183 = arith.negf %182 : vector<2x256xf32>
      %184 = math.exp %183 : vector<2x256xf32>
      %cst_91 = arith.constant 1.000000e+00 : f32
      %185 = vector.broadcast %cst_91 : f32 to vector<2x256xf32>
      %186 = arith.addf %185, %184 : vector<2x256xf32>
      %187 = arith.divf %185, %186 : vector<2x256xf32>
      %c2_92 = arith.constant 2 : index
      %c3_93 = arith.constant 3 : index
      %c0_94 = arith.constant 0 : index
      %188 = vector.load %arg12[%c2_92, %c3_93, %c0_94] : memref<3x16x256xf32, #tpu.memory_space<vmem>>, vector<1x1x256xf32>
      %189 = vector.shape_cast %188 : vector<1x1x256xf32> to vector<1x256xf32>
      %c2_95 = arith.constant 2 : index
      %c11_96 = arith.constant 11 : index
      %c0_97 = arith.constant 0 : index
      %190 = vector.load %arg12[%c2_95, %c11_96, %c0_97] : memref<3x16x256xf32, #tpu.memory_space<vmem>>, vector<1x1x256xf32>
      %191 = vector.shape_cast %190 : vector<1x1x256xf32> to vector<1x256xf32>
      %192 = tpu.concatenate %189, %191 in 0 : vector<1x256xf32>, vector<1x256xf32> -> vector<2x256xf32>
      %193 = vector.extract_strided_slice %163 {offsets = [0, 512], sizes = [2, 256], strides = [1, 1]} : vector<2x768xf32> to vector<2x256xf32>
      %194 = vector.broadcast %16 : vector<1x256xf32> to vector<2x256xf32>
      %195 = arith.addf %193, %194 : vector<2x256xf32>
      %196 = arith.mulf %175, %195 : vector<2x256xf32>
      %197 = arith.addf %192, %196 : vector<2x256xf32>
      %198 = math.tanh %197 : vector<2x256xf32>
      %cst_98 = arith.constant 1.000000e+00 : f32
      %199 = vector.broadcast %cst_98 : f32 to vector<2x256xf32>
      %200 = arith.subf %199, %187 : vector<2x256xf32>
      %201 = arith.mulf %200, %198 : vector<2x256xf32>
      %202 = arith.mulf %187, %156 : vector<2x256xf32>
      %203 = arith.addf %201, %202 : vector<2x256xf32>
      %c3_i32 = arith.constant 3 : i32
      %204 = vector.broadcast %c3_i32 : i32 to vector<2x1xi32>
      %205 = arith.cmpi eq, %19, %204 : vector<2x1xi32>
      %206 = vector.shape_cast %205 : vector<2x1xi1> to vector<2x1xi1>
      %207 = vector.broadcast %206 : vector<2x1xi1> to vector<2x256xi1>
      %208 = arith.select %207, %203, %161 : vector<2x256xi1>, vector<2x256xf32>
      %209 = arith.truncf %203 : vector<2x256xf32> to vector<2x256xbf16>
      %cst_99 = arith.constant dense<0.000000e+00> : vector<2x768xf32>
      %210 = tpu.matmul %209, %15, %cst_99 {dimension_numbers = #tpu.dot_dimension_numbers<[1], [0], [0], [1], [0, 0, 1, 1], [], []>} : vector<2x256xbf16>, vector<256x768xbf16>, vector<2x768xf32> -> vector<2x768xf32>
      %c0_100 = arith.constant 0 : index
      %c4 = arith.constant 4 : index
      %c0_101 = arith.constant 0 : index
      %211 = vector.load %arg12[%c0_100, %c4, %c0_101] : memref<3x16x256xf32, #tpu.memory_space<vmem>>, vector<1x1x256xf32>
      %212 = vector.shape_cast %211 : vector<1x1x256xf32> to vector<1x256xf32>
      %c0_102 = arith.constant 0 : index
      %c12 = arith.constant 12 : index
      %c0_103 = arith.constant 0 : index
      %213 = vector.load %arg12[%c0_102, %c12, %c0_103] : memref<3x16x256xf32, #tpu.memory_space<vmem>>, vector<1x1x256xf32>
      %214 = vector.shape_cast %213 : vector<1x1x256xf32> to vector<1x256xf32>
      %215 = tpu.concatenate %212, %214 in 0 : vector<1x256xf32>, vector<1x256xf32> -> vector<2x256xf32>
      %216 = vector.extract_strided_slice %210 {offsets = [0, 0], sizes = [2, 256], strides = [1, 1]} : vector<2x768xf32> to vector<2x256xf32>
      %217 = arith.addf %215, %216 : vector<2x256xf32>
      %218 = arith.negf %217 : vector<2x256xf32>
      %219 = math.exp %218 : vector<2x256xf32>
      %cst_104 = arith.constant 1.000000e+00 : f32
      %220 = vector.broadcast %cst_104 : f32 to vector<2x256xf32>
      %221 = arith.addf %220, %219 : vector<2x256xf32>
      %222 = arith.divf %220, %221 : vector<2x256xf32>
      %c1_105 = arith.constant 1 : index
      %c4_106 = arith.constant 4 : index
      %c0_107 = arith.constant 0 : index
      %223 = vector.load %arg12[%c1_105, %c4_106, %c0_107] : memref<3x16x256xf32, #tpu.memory_space<vmem>>, vector<1x1x256xf32>
      %224 = vector.shape_cast %223 : vector<1x1x256xf32> to vector<1x256xf32>
      %c1_108 = arith.constant 1 : index
      %c12_109 = arith.constant 12 : index
      %c0_110 = arith.constant 0 : index
      %225 = vector.load %arg12[%c1_108, %c12_109, %c0_110] : memref<3x16x256xf32, #tpu.memory_space<vmem>>, vector<1x1x256xf32>
      %226 = vector.shape_cast %225 : vector<1x1x256xf32> to vector<1x256xf32>
      %227 = tpu.concatenate %224, %226 in 0 : vector<1x256xf32>, vector<1x256xf32> -> vector<2x256xf32>
      %228 = vector.extract_strided_slice %210 {offsets = [0, 256], sizes = [2, 256], strides = [1, 1]} : vector<2x768xf32> to vector<2x256xf32>
      %229 = arith.addf %227, %228 : vector<2x256xf32>
      %230 = arith.negf %229 : vector<2x256xf32>
      %231 = math.exp %230 : vector<2x256xf32>
      %cst_111 = arith.constant 1.000000e+00 : f32
      %232 = vector.broadcast %cst_111 : f32 to vector<2x256xf32>
      %233 = arith.addf %232, %231 : vector<2x256xf32>
      %234 = arith.divf %232, %233 : vector<2x256xf32>
      %c2_112 = arith.constant 2 : index
      %c4_113 = arith.constant 4 : index
      %c0_114 = arith.constant 0 : index
      %235 = vector.load %arg12[%c2_112, %c4_113, %c0_114] : memref<3x16x256xf32, #tpu.memory_space<vmem>>, vector<1x1x256xf32>
      %236 = vector.shape_cast %235 : vector<1x1x256xf32> to vector<1x256xf32>
      %c2_115 = arith.constant 2 : index
      %c12_116 = arith.constant 12 : index
      %c0_117 = arith.constant 0 : index
      %237 = vector.load %arg12[%c2_115, %c12_116, %c0_117] : memref<3x16x256xf32, #tpu.memory_space<vmem>>, vector<1x1x256xf32>
      %238 = vector.shape_cast %237 : vector<1x1x256xf32> to vector<1x256xf32>
      %239 = tpu.concatenate %236, %238 in 0 : vector<1x256xf32>, vector<1x256xf32> -> vector<2x256xf32>
      %240 = vector.extract_strided_slice %210 {offsets = [0, 512], sizes = [2, 256], strides = [1, 1]} : vector<2x768xf32> to vector<2x256xf32>
      %241 = vector.broadcast %16 : vector<1x256xf32> to vector<2x256xf32>
      %242 = arith.addf %240, %241 : vector<2x256xf32>
      %243 = arith.mulf %222, %242 : vector<2x256xf32>
      %244 = arith.addf %239, %243 : vector<2x256xf32>
      %245 = math.tanh %244 : vector<2x256xf32>
      %cst_118 = arith.constant 1.000000e+00 : f32
      %246 = vector.broadcast %cst_118 : f32 to vector<2x256xf32>
      %247 = arith.subf %246, %234 : vector<2x256xf32>
      %248 = arith.mulf %247, %245 : vector<2x256xf32>
      %249 = arith.mulf %234, %203 : vector<2x256xf32>
      %250 = arith.addf %248, %249 : vector<2x256xf32>
      %c4_i32 = arith.constant 4 : i32
      %251 = vector.broadcast %c4_i32 : i32 to vector<2x1xi32>
      %252 = arith.cmpi eq, %19, %251 : vector<2x1xi32>
      %253 = vector.shape_cast %252 : vector<2x1xi1> to vector<2x1xi1>
      %254 = vector.broadcast %253 : vector<2x1xi1> to vector<2x256xi1>
      %255 = arith.select %254, %250, %208 : vector<2x256xi1>, vector<2x256xf32>
      %256 = arith.truncf %250 : vector<2x256xf32> to vector<2x256xbf16>
      %cst_119 = arith.constant dense<0.000000e+00> : vector<2x768xf32>
      %257 = tpu.matmul %256, %15, %cst_119 {dimension_numbers = #tpu.dot_dimension_numbers<[1], [0], [0], [1], [0, 0, 1, 1], [], []>} : vector<2x256xbf16>, vector<256x768xbf16>, vector<2x768xf32> -> vector<2x768xf32>
      %c0_120 = arith.constant 0 : index
      %c5 = arith.constant 5 : index
      %c0_121 = arith.constant 0 : index
      %258 = vector.load %arg12[%c0_120, %c5, %c0_121] : memref<3x16x256xf32, #tpu.memory_space<vmem>>, vector<1x1x256xf32>
      %259 = vector.shape_cast %258 : vector<1x1x256xf32> to vector<1x256xf32>
      %c0_122 = arith.constant 0 : index
      %c13 = arith.constant 13 : index
      %c0_123 = arith.constant 0 : index
      %260 = vector.load %arg12[%c0_122, %c13, %c0_123] : memref<3x16x256xf32, #tpu.memory_space<vmem>>, vector<1x1x256xf32>
      %261 = vector.shape_cast %260 : vector<1x1x256xf32> to vector<1x256xf32>
      %262 = tpu.concatenate %259, %261 in 0 : vector<1x256xf32>, vector<1x256xf32> -> vector<2x256xf32>
      %263 = vector.extract_strided_slice %257 {offsets = [0, 0], sizes = [2, 256], strides = [1, 1]} : vector<2x768xf32> to vector<2x256xf32>
      %264 = arith.addf %262, %263 : vector<2x256xf32>
      %265 = arith.negf %264 : vector<2x256xf32>
      %266 = math.exp %265 : vector<2x256xf32>
      %cst_124 = arith.constant 1.000000e+00 : f32
      %267 = vector.broadcast %cst_124 : f32 to vector<2x256xf32>
      %268 = arith.addf %267, %266 : vector<2x256xf32>
      %269 = arith.divf %267, %268 : vector<2x256xf32>
      %c1_125 = arith.constant 1 : index
      %c5_126 = arith.constant 5 : index
      %c0_127 = arith.constant 0 : index
      %270 = vector.load %arg12[%c1_125, %c5_126, %c0_127] : memref<3x16x256xf32, #tpu.memory_space<vmem>>, vector<1x1x256xf32>
      %271 = vector.shape_cast %270 : vector<1x1x256xf32> to vector<1x256xf32>
      %c1_128 = arith.constant 1 : index
      %c13_129 = arith.constant 13 : index
      %c0_130 = arith.constant 0 : index
      %272 = vector.load %arg12[%c1_128, %c13_129, %c0_130] : memref<3x16x256xf32, #tpu.memory_space<vmem>>, vector<1x1x256xf32>
      %273 = vector.shape_cast %272 : vector<1x1x256xf32> to vector<1x256xf32>
      %274 = tpu.concatenate %271, %273 in 0 : vector<1x256xf32>, vector<1x256xf32> -> vector<2x256xf32>
      %275 = vector.extract_strided_slice %257 {offsets = [0, 256], sizes = [2, 256], strides = [1, 1]} : vector<2x768xf32> to vector<2x256xf32>
      %276 = arith.addf %274, %275 : vector<2x256xf32>
      %277 = arith.negf %276 : vector<2x256xf32>
      %278 = math.exp %277 : vector<2x256xf32>
      %cst_131 = arith.constant 1.000000e+00 : f32
      %279 = vector.broadcast %cst_131 : f32 to vector<2x256xf32>
      %280 = arith.addf %279, %278 : vector<2x256xf32>
      %281 = arith.divf %279, %280 : vector<2x256xf32>
      %c2_132 = arith.constant 2 : index
      %c5_133 = arith.constant 5 : index
      %c0_134 = arith.constant 0 : index
      %282 = vector.load %arg12[%c2_132, %c5_133, %c0_134] : memref<3x16x256xf32, #tpu.memory_space<vmem>>, vector<1x1x256xf32>
      %283 = vector.shape_cast %282 : vector<1x1x256xf32> to vector<1x256xf32>
      %c2_135 = arith.constant 2 : index
      %c13_136 = arith.constant 13 : index
      %c0_137 = arith.constant 0 : index
      %284 = vector.load %arg12[%c2_135, %c13_136, %c0_137] : memref<3x16x256xf32, #tpu.memory_space<vmem>>, vector<1x1x256xf32>
      %285 = vector.shape_cast %284 : vector<1x1x256xf32> to vector<1x256xf32>
      %286 = tpu.concatenate %283, %285 in 0 : vector<1x256xf32>, vector<1x256xf32> -> vector<2x256xf32>
      %287 = vector.extract_strided_slice %257 {offsets = [0, 512], sizes = [2, 256], strides = [1, 1]} : vector<2x768xf32> to vector<2x256xf32>
      %288 = vector.broadcast %16 : vector<1x256xf32> to vector<2x256xf32>
      %289 = arith.addf %287, %288 : vector<2x256xf32>
      %290 = arith.mulf %269, %289 : vector<2x256xf32>
      %291 = arith.addf %286, %290 : vector<2x256xf32>
      %292 = math.tanh %291 : vector<2x256xf32>
      %cst_138 = arith.constant 1.000000e+00 : f32
      %293 = vector.broadcast %cst_138 : f32 to vector<2x256xf32>
      %294 = arith.subf %293, %281 : vector<2x256xf32>
      %295 = arith.mulf %294, %292 : vector<2x256xf32>
      %296 = arith.mulf %281, %250 : vector<2x256xf32>
      %297 = arith.addf %295, %296 : vector<2x256xf32>
      %c5_i32 = arith.constant 5 : i32
      %298 = vector.broadcast %c5_i32 : i32 to vector<2x1xi32>
      %299 = arith.cmpi eq, %19, %298 : vector<2x1xi32>
      %300 = vector.shape_cast %299 : vector<2x1xi1> to vector<2x1xi1>
      %301 = vector.broadcast %300 : vector<2x1xi1> to vector<2x256xi1>
      %302 = arith.select %301, %297, %255 : vector<2x256xi1>, vector<2x256xf32>
      %303 = arith.truncf %297 : vector<2x256xf32> to vector<2x256xbf16>
      %cst_139 = arith.constant dense<0.000000e+00> : vector<2x768xf32>
      %304 = tpu.matmul %303, %15, %cst_139 {dimension_numbers = #tpu.dot_dimension_numbers<[1], [0], [0], [1], [0, 0, 1, 1], [], []>} : vector<2x256xbf16>, vector<256x768xbf16>, vector<2x768xf32> -> vector<2x768xf32>
      %c0_140 = arith.constant 0 : index
      %c6 = arith.constant 6 : index
      %c0_141 = arith.constant 0 : index
      %305 = vector.load %arg12[%c0_140, %c6, %c0_141] : memref<3x16x256xf32, #tpu.memory_space<vmem>>, vector<1x1x256xf32>
      %306 = vector.shape_cast %305 : vector<1x1x256xf32> to vector<1x256xf32>
      %c0_142 = arith.constant 0 : index
      %c14 = arith.constant 14 : index
      %c0_143 = arith.constant 0 : index
      %307 = vector.load %arg12[%c0_142, %c14, %c0_143] : memref<3x16x256xf32, #tpu.memory_space<vmem>>, vector<1x1x256xf32>
      %308 = vector.shape_cast %307 : vector<1x1x256xf32> to vector<1x256xf32>
      %309 = tpu.concatenate %306, %308 in 0 : vector<1x256xf32>, vector<1x256xf32> -> vector<2x256xf32>
      %310 = vector.extract_strided_slice %304 {offsets = [0, 0], sizes = [2, 256], strides = [1, 1]} : vector<2x768xf32> to vector<2x256xf32>
      %311 = arith.addf %309, %310 : vector<2x256xf32>
      %312 = arith.negf %311 : vector<2x256xf32>
      %313 = math.exp %312 : vector<2x256xf32>
      %cst_144 = arith.constant 1.000000e+00 : f32
      %314 = vector.broadcast %cst_144 : f32 to vector<2x256xf32>
      %315 = arith.addf %314, %313 : vector<2x256xf32>
      %316 = arith.divf %314, %315 : vector<2x256xf32>
      %c1_145 = arith.constant 1 : index
      %c6_146 = arith.constant 6 : index
      %c0_147 = arith.constant 0 : index
      %317 = vector.load %arg12[%c1_145, %c6_146, %c0_147] : memref<3x16x256xf32, #tpu.memory_space<vmem>>, vector<1x1x256xf32>
      %318 = vector.shape_cast %317 : vector<1x1x256xf32> to vector<1x256xf32>
      %c1_148 = arith.constant 1 : index
      %c14_149 = arith.constant 14 : index
      %c0_150 = arith.constant 0 : index
      %319 = vector.load %arg12[%c1_148, %c14_149, %c0_150] : memref<3x16x256xf32, #tpu.memory_space<vmem>>, vector<1x1x256xf32>
      %320 = vector.shape_cast %319 : vector<1x1x256xf32> to vector<1x256xf32>
      %321 = tpu.concatenate %318, %320 in 0 : vector<1x256xf32>, vector<1x256xf32> -> vector<2x256xf32>
      %322 = vector.extract_strided_slice %304 {offsets = [0, 256], sizes = [2, 256], strides = [1, 1]} : vector<2x768xf32> to vector<2x256xf32>
      %323 = arith.addf %321, %322 : vector<2x256xf32>
      %324 = arith.negf %323 : vector<2x256xf32>
      %325 = math.exp %324 : vector<2x256xf32>
      %cst_151 = arith.constant 1.000000e+00 : f32
      %326 = vector.broadcast %cst_151 : f32 to vector<2x256xf32>
      %327 = arith.addf %326, %325 : vector<2x256xf32>
      %328 = arith.divf %326, %327 : vector<2x256xf32>
      %c2_152 = arith.constant 2 : index
      %c6_153 = arith.constant 6 : index
      %c0_154 = arith.constant 0 : index
      %329 = vector.load %arg12[%c2_152, %c6_153, %c0_154] : memref<3x16x256xf32, #tpu.memory_space<vmem>>, vector<1x1x256xf32>
      %330 = vector.shape_cast %329 : vector<1x1x256xf32> to vector<1x256xf32>
      %c2_155 = arith.constant 2 : index
      %c14_156 = arith.constant 14 : index
      %c0_157 = arith.constant 0 : index
      %331 = vector.load %arg12[%c2_155, %c14_156, %c0_157] : memref<3x16x256xf32, #tpu.memory_space<vmem>>, vector<1x1x256xf32>
      %332 = vector.shape_cast %331 : vector<1x1x256xf32> to vector<1x256xf32>
      %333 = tpu.concatenate %330, %332 in 0 : vector<1x256xf32>, vector<1x256xf32> -> vector<2x256xf32>
      %334 = vector.extract_strided_slice %304 {offsets = [0, 512], sizes = [2, 256], strides = [1, 1]} : vector<2x768xf32> to vector<2x256xf32>
      %335 = vector.broadcast %16 : vector<1x256xf32> to vector<2x256xf32>
      %336 = arith.addf %334, %335 : vector<2x256xf32>
      %337 = arith.mulf %316, %336 : vector<2x256xf32>
      %338 = arith.addf %333, %337 : vector<2x256xf32>
      %339 = math.tanh %338 : vector<2x256xf32>
      %cst_158 = arith.constant 1.000000e+00 : f32
      %340 = vector.broadcast %cst_158 : f32 to vector<2x256xf32>
      %341 = arith.subf %340, %328 : vector<2x256xf32>
      %342 = arith.mulf %341, %339 : vector<2x256xf32>
      %343 = arith.mulf %328, %297 : vector<2x256xf32>
      %344 = arith.addf %342, %343 : vector<2x256xf32>
      %c6_i32 = arith.constant 6 : i32
      %345 = vector.broadcast %c6_i32 : i32 to vector<2x1xi32>
      %346 = arith.cmpi eq, %19, %345 : vector<2x1xi32>
      %347 = vector.shape_cast %346 : vector<2x1xi1> to vector<2x1xi1>
      %348 = vector.broadcast %347 : vector<2x1xi1> to vector<2x256xi1>
      %349 = arith.select %348, %344, %302 : vector<2x256xi1>, vector<2x256xf32>
      %350 = arith.truncf %344 : vector<2x256xf32> to vector<2x256xbf16>
      %cst_159 = arith.constant dense<0.000000e+00> : vector<2x768xf32>
      %351 = tpu.matmul %350, %15, %cst_159 {dimension_numbers = #tpu.dot_dimension_numbers<[1], [0], [0], [1], [0, 0, 1, 1], [], []>} : vector<2x256xbf16>, vector<256x768xbf16>, vector<2x768xf32> -> vector<2x768xf32>
      %c0_160 = arith.constant 0 : index
      %c7 = arith.constant 7 : index
      %c0_161 = arith.constant 0 : index
      %352 = vector.load %arg12[%c0_160, %c7, %c0_161] : memref<3x16x256xf32, #tpu.memory_space<vmem>>, vector<1x1x256xf32>
      %353 = vector.shape_cast %352 : vector<1x1x256xf32> to vector<1x256xf32>
      %c0_162 = arith.constant 0 : index
      %c15 = arith.constant 15 : index
      %c0_163 = arith.constant 0 : index
      %354 = vector.load %arg12[%c0_162, %c15, %c0_163] : memref<3x16x256xf32, #tpu.memory_space<vmem>>, vector<1x1x256xf32>
      %355 = vector.shape_cast %354 : vector<1x1x256xf32> to vector<1x256xf32>
      %356 = tpu.concatenate %353, %355 in 0 : vector<1x256xf32>, vector<1x256xf32> -> vector<2x256xf32>
      %357 = vector.extract_strided_slice %351 {offsets = [0, 0], sizes = [2, 256], strides = [1, 1]} : vector<2x768xf32> to vector<2x256xf32>
      %358 = arith.addf %356, %357 : vector<2x256xf32>
      %359 = arith.negf %358 : vector<2x256xf32>
      %360 = math.exp %359 : vector<2x256xf32>
      %cst_164 = arith.constant 1.000000e+00 : f32
      %361 = vector.broadcast %cst_164 : f32 to vector<2x256xf32>
      %362 = arith.addf %361, %360 : vector<2x256xf32>
      %363 = arith.divf %361, %362 : vector<2x256xf32>
      %c1_165 = arith.constant 1 : index
      %c7_166 = arith.constant 7 : index
      %c0_167 = arith.constant 0 : index
      %364 = vector.load %arg12[%c1_165, %c7_166, %c0_167] : memref<3x16x256xf32, #tpu.memory_space<vmem>>, vector<1x1x256xf32>
      %365 = vector.shape_cast %364 : vector<1x1x256xf32> to vector<1x256xf32>
      %c1_168 = arith.constant 1 : index
      %c15_169 = arith.constant 15 : index
      %c0_170 = arith.constant 0 : index
      %366 = vector.load %arg12[%c1_168, %c15_169, %c0_170] : memref<3x16x256xf32, #tpu.memory_space<vmem>>, vector<1x1x256xf32>
      %367 = vector.shape_cast %366 : vector<1x1x256xf32> to vector<1x256xf32>
      %368 = tpu.concatenate %365, %367 in 0 : vector<1x256xf32>, vector<1x256xf32> -> vector<2x256xf32>
      %369 = vector.extract_strided_slice %351 {offsets = [0, 256], sizes = [2, 256], strides = [1, 1]} : vector<2x768xf32> to vector<2x256xf32>
      %370 = arith.addf %368, %369 : vector<2x256xf32>
      %371 = arith.negf %370 : vector<2x256xf32>
      %372 = math.exp %371 : vector<2x256xf32>
      %cst_171 = arith.constant 1.000000e+00 : f32
      %373 = vector.broadcast %cst_171 : f32 to vector<2x256xf32>
      %374 = arith.addf %373, %372 : vector<2x256xf32>
      %375 = arith.divf %373, %374 : vector<2x256xf32>
      %c2_172 = arith.constant 2 : index
      %c7_173 = arith.constant 7 : index
      %c0_174 = arith.constant 0 : index
      %376 = vector.load %arg12[%c2_172, %c7_173, %c0_174] : memref<3x16x256xf32, #tpu.memory_space<vmem>>, vector<1x1x256xf32>
      %377 = vector.shape_cast %376 : vector<1x1x256xf32> to vector<1x256xf32>
      %c2_175 = arith.constant 2 : index
      %c15_176 = arith.constant 15 : index
      %c0_177 = arith.constant 0 : index
      %378 = vector.load %arg12[%c2_175, %c15_176, %c0_177] : memref<3x16x256xf32, #tpu.memory_space<vmem>>, vector<1x1x256xf32>
      %379 = vector.shape_cast %378 : vector<1x1x256xf32> to vector<1x256xf32>
      %380 = tpu.concatenate %377, %379 in 0 : vector<1x256xf32>, vector<1x256xf32> -> vector<2x256xf32>
      %381 = vector.extract_strided_slice %351 {offsets = [0, 512], sizes = [2, 256], strides = [1, 1]} : vector<2x768xf32> to vector<2x256xf32>
      %382 = vector.broadcast %16 : vector<1x256xf32> to vector<2x256xf32>
      %383 = arith.addf %381, %382 : vector<2x256xf32>
      %384 = arith.mulf %363, %383 : vector<2x256xf32>
      %385 = arith.addf %380, %384 : vector<2x256xf32>
      %386 = math.tanh %385 : vector<2x256xf32>
      %cst_178 = arith.constant 1.000000e+00 : f32
      %387 = vector.broadcast %cst_178 : f32 to vector<2x256xf32>
      %388 = arith.subf %387, %375 : vector<2x256xf32>
      %389 = arith.mulf %388, %386 : vector<2x256xf32>
      %390 = arith.mulf %375, %344 : vector<2x256xf32>
      %391 = arith.addf %389, %390 : vector<2x256xf32>
      %c7_i32 = arith.constant 7 : i32
      %392 = vector.broadcast %c7_i32 : i32 to vector<2x1xi32>
      %393 = arith.cmpi eq, %19, %392 : vector<2x1xi32>
      %394 = vector.shape_cast %393 : vector<2x1xi1> to vector<2x1xi1>
      %395 = vector.broadcast %394 : vector<2x1xi1> to vector<2x256xi1>
      %396 = arith.select %395, %391, %349 : vector<2x256xi1>, vector<2x256xf32>
      %c0_179 = arith.constant 0 : index
      %c0_180 = arith.constant 0 : index
      %397 = vector.load %arg7[%c0_179, %c0_180] : memref<256x64xf32, #tpu.memory_space<vmem>>, vector<256x64xf32>
      %cst_181 = arith.constant dense<0.000000e+00> : vector<2x64xf32>
      %398 = tpu.matmul %396, %397, %cst_181 {dimension_numbers = #tpu.dot_dimension_numbers<[1], [0], [0], [1], [0, 0, 1, 1], [], []>} : vector<2x256xf32>, vector<256x64xf32>, vector<2x64xf32> -> vector<2x64xf32>
      %c0_182 = arith.constant 0 : index
      %c0_183 = arith.constant 0 : index
      %399 = vector.load %arg8[%c0_182, %c0_183] : memref<1x64xf32, #tpu.memory_space<vmem>>, vector<1x64xf32>
      %400 = vector.broadcast %399 : vector<1x64xf32> to vector<2x64xf32>
      %401 = arith.addf %398, %400 : vector<2x64xf32>
      %cst_184 = arith.constant 0.000000e+00 : f32
      %402 = vector.broadcast %cst_184 : f32 to vector<2x64xf32>
      %403 = arith.maximumf %401, %402 : vector<2x64xf32>
      %c0_185 = arith.constant 0 : index
      %c0_186 = arith.constant 0 : index
      %404 = vector.load %arg9[%c0_185, %c0_186] : memref<64x11xf32, #tpu.memory_space<vmem>>, vector<64x11xf32>
      %cst_187 = arith.constant dense<0.000000e+00> : vector<2x11xf32>
      %405 = tpu.matmul %403, %404, %cst_187 {dimension_numbers = #tpu.dot_dimension_numbers<[1], [0], [0], [1], [0, 0, 1, 1], [], []>} : vector<2x64xf32>, vector<64x11xf32>, vector<2x11xf32> -> vector<2x11xf32>
      %c0_188 = arith.constant 0 : index
      %c0_189 = arith.constant 0 : index
      %406 = vector.load %arg10[%c0_188, %c0_189] : memref<1x11xf32, #tpu.memory_space<vmem>>, vector<1x11xf32>
      %407 = vector.broadcast %406 : vector<1x11xf32> to vector<2x11xf32>
      %408 = arith.addf %405, %407 : vector<2x11xf32>
      %c0_190 = arith.constant 0 : index
      %c0_191 = arith.constant 0 : index
      %409 = vector.load %arg11[%c0_190, %c0_191] : memref<2x11xf32, #tpu.memory_space<vmem>>, vector<2x11xf32>
      tpu.vector_store %arg11[%c0_190, %c0_191], %408 {strides = array<i32>} : memref<2x11xf32, #tpu.memory_space<vmem>>, vector<2x11xf32>,
    } else {
    }
    return
  }
  func.func @transform_0(%arg0: i32) -> (i32, i32) {
    %c0_i32 = arith.constant 0 : i32
    %c0_i32_0 = arith.constant 0 : i32
    %c0_i32_1 = arith.constant 0 : i32
    return %c0_i32, %c0_i32_0 : i32, i32
  }
  func.func @transform_1(%arg0: i32) -> (i32, i32) {
    %c0_i32 = arith.constant 0 : i32
    %c0_i32_0 = arith.constant 0 : i32
    return %c0_i32, %arg0 : i32, i32
  }
  func.func @transform_2(%arg0: i32) -> (i32, i32, i32) {
    %c0_i32 = arith.constant 0 : i32
    %c0_i32_0 = arith.constant 0 : i32
    %c0_i32_1 = arith.constant 0 : i32
    return %arg0, %c0_i32, %c0_i32_0 : i32, i32, i32
  }
  func.func @transform_3(%arg0: i32) -> (i32, i32) {
    %c0_i32 = arith.constant 0 : i32
    %c0_i32_0 = arith.constant 0 : i32
    %c0_i32_1 = arith.constant 0 : i32
    return %c0_i32, %c0_i32_0 : i32, i32
  }
  func.func @transform_4(%arg0: i32) -> (i32, i32) {
    %c0_i32 = arith.constant 0 : i32
    %c0_i32_0 = arith.constant 0 : i32
    %c0_i32_1 = arith.constant 0 : i32
    return %c0_i32, %c0_i32_0 : i32, i32
  }
  func.func @transform_5(%arg0: i32) -> (i32, i32) {
    %c0_i32 = arith.constant 0 : i32
    %c0_i32_0 = arith.constant 0 : i32
    %c0_i32_1 = arith.constant 0 : i32
    return %c0_i32, %c0_i32_0 : i32, i32
  }
  func.func @transform_6(%arg0: i32) -> (i32, i32) {
    %c0_i32 = arith.constant 0 : i32
    %c0_i32_0 = arith.constant 0 : i32
    %c0_i32_1 = arith.constant 0 : i32
    return %c0_i32, %c0_i32_0 : i32, i32
  }
  func.func @transform_7(%arg0: i32) -> (i32, i32) {
    %c0_i32 = arith.constant 0 : i32
    %c0_i32_0 = arith.constant 0 : i32
    %c0_i32_1 = arith.constant 0 : i32
    return %c0_i32, %c0_i32_0 : i32, i32
  }
  func.func @transform_8(%arg0: i32) -> (i32, i32) {
    %c0_i32 = arith.constant 0 : i32
    %c0_i32_0 = arith.constant 0 : i32
    %c0_i32_1 = arith.constant 0 : i32
    return %c0_i32, %c0_i32_0 : i32, i32
  }
  func.func @transform_9(%arg0: i32) -> (i32, i32) {
    %c0_i32 = arith.constant 0 : i32
    %c0_i32_0 = arith.constant 0 : i32
    %c0_i32_1 = arith.constant 0 : i32
    return %c0_i32, %c0_i32_0 : i32, i32
  }
  func.func @transform_10(%arg0: i32) -> (i32, i32) {
    %c0_i32 = arith.constant 0 : i32
    %c0_i32_0 = arith.constant 0 : i32
    %c0_i32_1 = arith.constant 0 : i32
    return %c0_i32, %c0_i32_0 : i32, i32
  }
}

</mosaic_0001>

<bundles_post_ra>
// kernel: tpu_custom_call.1
= control target key start
LH: loop header
LB: loop body
LE: loop exit
PB: predicated region body
PF: predicated region fallthrough
CT: control target
= control target key end

     0   :  { %s9688_s0 = inlined_call_operand.hbm [shape: f32[16,2048], index: 0, kind: input, shape index: {}]   ;;  %s9689_s1 = inlined_call_operand.hbm [shape: bf16[2048,768], index: 1, kind: input, shape index: {}]   ;;  %s9690_s2 = inlined_call_operand.hbm [shape: f32[3,1,256], index: 2, kind: input, shape index: {}]   ;;  %s9691_s3 = inlined_call_operand.hbm [shape: bf16[256,768], index: 3, kind: input, shape index: {}]   ;;  %s9692_s4 = inlined_call_operand.hbm [shape: f32[1,256], index: 4, kind: input, shape index: {}]   ;;  %s9693_s5 = inlined_call_operand.vmem [shape: s32[2,1], index: 5, kind: input, shape index: {}]   ;;  %s9694_s6 = inlined_call_operand.vmem [shape: f32[256,64], index: 6, kind: input, shape index: {}]   ;;  %s9695_s7 = inlined_call_operand.hbm [shape: f32[1,64], index: 7, kind: input, shape index: {}]   ;;  %s9696_s8 = inlined_call_operand.vmem [shape: f32[64,11], index: 8, kind: input, shape index: {}]   ;;  %s9697_s9 = inlined_call_operand.hbm [shape: f32[1,11], index: 9, kind: input, shape index: {}]   ;;  %s9698_s10 = inlined_call_operand.hbm [shape: f32[2,11], index: 10, kind: output, shape index: {}]  }
   0x1   :  { %9952 = sst [smem:[#allocation93_spill]] %s9689_s1 }
   0x2   :  { %9953 = sst [smem:[#allocation94_spill]] %s9691_s3 }
   0x3   :  { %9954 = sst [smem:[#allocation95_spill]] %s9695_s7 }
   0x4   :  { %9955 = sst [smem:[#allocation96_spill]] %s9696_s8 }
   0x5   :  { %9956 = sst [smem:[#allocation97_spill]] %s9698_s10 }
   0x6   :  { %15 = vsyncpa [#allocation4], 0 }
   0x7   :  { %16 = vsyncpa [#allocation7], 0 }
   0x8   :  { %18 = vsyncpa [#allocation7 + $0x1], 0 }
   0x9   :  { %19 = vsyncpa [#allocation10], 0 }
   0xa   :  { %20 = vsyncpa [#allocation13], 0 }
   0xb   :  { %21 = vsyncpa [#allocation5], 0  ;;  %s7359_s13 = smov 0   ;;  %s7361_s14 = smov 0  }
   0xc   :  { %s7363_s15 = smov 0   ;;  %s7365_s16 = smov 0  }
   0xd LB: > { %s7378_s17 = sadd.s32 4294967295, %s7285_s16   ;;  %p68_p0 = scmp.ne.s32.totalorder %s7277_s14, %s7273_s13  ;;  %s7285_s16 = sphi %s7365_s16, %s10338_s16   ;;  %s7281_s15 = sphi %s7363_s15, %s10342_s15   ;;  %s7277_s14 = sphi %s7361_s14, %s10341_s14   ;;  %s7273_s13 = sphi %s7359_s13, %s10340_s13  }
   0xe   : > { %p9699_p1 = scmp.eq.s32.totalorder %s7378_s17, 0  ;;  %p5458_p2 = scmp.ge.s32.totalorder %s7285_s16, 1 }
   0xf   : > { %p273_p3 = scmp.lt.s32.totalorder %s7285_s16, 4  ;;  %s7287_s20 = smov [#allocation9]  }
  0x10   : > { %p7386_p4 = por %p9699_p1, %p68_p0  ;;  %s298_s21 = sshll.u32 %s7287_s20, 4  ;;  %s299_s21 = int_to_ptr.vmem [resolvable:$true] %s298_s21 }
  0x11   : > { %p7390_p5 = pnand %p5458_p2, %p273_p3  ;;  %s7288_s23 = smov [#allocation12]  }
  0x12   : > { %s9957_s18 = scalar_select %p7386_p4, 1, 0 }
  0x13   : > { %s9958_s19 = scalar_select %p7390_p5, 1, 0 }
  0x14   : > { %p6044_p6 = pneg %p7390_p5  ;;  %s329_s24 = sshll.u32 %s7288_s23, 4  ;;  %s7402_s24 = int_to_ptr.vmem [resolvable:$true] %s329_s24 }
  0x15   : > { %s9960_s3 = sld [smem:[#allocation94_spill]] }
  0x16   : > { %p7398_p7 = pnand %p6044_p6, %p9699_p1 }
  0x18   : > { %s9959_s22 = scalar_select %p7398_p7, 1, 0 }
  0x19   : > { %p7412_p9 = pneg %p7398_p7 }
  0x1b   : > { %s7009_s27 = scalar_lea.hbm %s9960_s3, 12288 }
  0x1c   : > { %p7010_p8 = scmp.ne.s32.totalorder %s9960_s3, %s7009_s27  ;;  %p7016_p12 = scmp.lt.u32.totalorder %s7009_s27, %s9960_s3 }
  0x1e   : > { %p7012_p10 = pnand %p7412_p9, %p7010_p8 }
  0x20   : > { %p7013_p11 = pneg %p7012_p10 }
  0x22   : > { %p7018_p13 = pnand %p7016_p12, %p7013_p11 }
  0x24   : > { %7021 = shalt.err (!%p7018_p13)
}
  0x25   : > { %s7022_s13 = scalar_lea.vmem %s299_s21, 12288  ;;  %p7030_p6 = scmp.lt.s32.totalorder %s299_s21, %s299_s21 }
  0x26   : > { %p7023_p0 = scmp.ne.s32.totalorder %s299_s21, %s7022_s13  ;;  %p7031_p1 = scmp.lt.s32.totalorder %s7022_s13, %s7022_s13 }
  0x28   : > { %p7025_p2 = pnand %p7023_p0, %p7412_p9  ;;  %p7032_p4 = por %p7031_p1, %p7030_p6 }
  0x2a   : > { %p7026_p3 = pneg %p7025_p2 }
  0x2c   : > { %p7033_p5 = pnand %p7032_p4, %p7026_p3 }
  0x2e   : > { %7036 = shalt.err (!%p7033_p5)
}
  0x2f   : > { %s9704_s20 = smov 384   ;;  %s7290_s23 = smov 24  }
  0x30   : > { %6050 = dma.hbm_to_vmem [thread:$0]  (!%p7398_p7), %s9960_s3, 12288, %s299_s21, [#allocation10], %s9704_s20, %s9704_s20, %s7290_s23  }
  0x31   : > { %s9962_s7 = sld [smem:[#allocation95_spill]] }
  0x37   : > { %s7037_s29 = scalar_lea.hbm %s9962_s7, 16 }
  0x38   : > { %p7038_p1 = scmp.ne.s32.totalorder %s9962_s7, %s7037_s29  ;;  %p7044_p8 = scmp.lt.u32.totalorder %s7037_s29, %s9962_s7 }
  0x3a   : > { %p7040_p4 = pnand %p7038_p1, %p7412_p9 }
  0x3c   : > { %p7041_p5 = pneg %p7040_p4 }
  0x3e   : > { %p7046_p10 = pnand %p7044_p8, %p7041_p5 }
  0x40   : > { %7049 = shalt.err (!%p7046_p10)
}
  0x41   : > { %s7050_s21 = scalar_lea.vmem %s7402_s24, 16  ;;  %s7057_s23 = scalar_lea.vmem %s7402_s24, 32 }
  0x42   : > { %p7051_p11 = scmp.ne.s32.totalorder %s7402_s24, %s7050_s21  ;;  %p7058_p0 = scmp.lt.s32.totalorder %s7402_s24, %s7402_s24 }
  0x43   : > { %p7059_p2 = scmp.lt.s32.totalorder %s7057_s23, %s7050_s21 }
  0x44   : > { %p7053_p12 = pnand %p7051_p11, %p7412_p9 }
  0x45   : > { %p7060_p3 = por %p7059_p2, %p7058_p0 }
  0x46   : > { %p7054_p13 = pneg %p7053_p12 }
  0x48   : > { %p7061_p6 = pnand %p7060_p3, %p7054_p13 }
  0x4a   : > { %7064 = shalt.err (!%p7061_p6)
}
  0x4b   : > { %6056 = dma.hbm_to_vmem [thread:$0]  (!%p7398_p7), %s9962_s7, 16, %s7402_s24, [#allocation13]  }
  0x4c   : > { %s7455_s26 = sadd.s32 1, %s7285_s16   ;;  %s55_s27 = sadd.s32 1, %s7281_s15 }
  0x4d   : > { %9963 = sst [smem:[#allocation21_spill]] %s7455_s26  ;;  %s52_s28 = ssub.s32 %s7285_s16, %s7455_s26 }
  0x4e   : > { %p62_p1 = scmp.ne.s32.totalorder %s7281_s15, %s7277_s14  ;;  %p53_p4 = scmp.eq.s32.totalorder %s52_s28, 0 }
  0x4f   : > { %p63_p5 = scmp.eq.s32.totalorder %s7285_s16, 0  ;;  %p6072_p8 = scmp.lt.s32.totalorder %s7285_s16, 3 }
  0x50   : > { %s7465_s29 = scalar_select %p53_p4, %s7281_s15, %s55_s27  }
  0x51   : > { %p64_p10 = por %p63_p5, %p62_p1  ;;  %s354_s11 = sand.u32 1, %s7285_s16  }
  0x52   : > { %9964 = sst [smem:[#allocation22_spill]] %s7465_s29  ;;  %s9703_s12 = sand.u32 1, %s7281_s15  }
  0x53   : > { %s5465_s13 = sshll.u32 %s9703_s12, 11  ;;  %s5874_s21 = sshll.u32 %s7285_s16, 7 }
  0x54   : > { %s9965_s1 = sld [smem:[#allocation93_spill]]  ;;  %s358_s25 = scalar_lea.vmem [#allocation6], %s5465_s13 }
  0x55   : > { %s365_s28 = sshll.u32 %s358_s25, 4  ;;  %p7477_p11 = pnand %p6072_p8, %p64_p10  ;;  %s7481_s28 = int_to_ptr.vmem [resolvable:$true] %s365_s28 }
  0x56   : > { %s7483_s12 = scalar_lea.sflag [#allocation7], %s354_s11 }
  0x57   : > { %s9966_s27 = scalar_select %p7477_p11, 1, 0 }
  0x58   : > { %p9709_p13 = pneg %p7477_p11 }
  0x5a   : > { %s7475_s24 = scalar_lea.hbm %s9965_s1, %s5874_s21  ;;  %s7070_s23 = scalar_lea.hbm %s9965_s1, 98304 }
  0x5b   : > { %s7065_s20 = scalar_lea.hbm %s7475_s24, 32768  ;;  %p7071_p3 = scmp.lt.u32.totalorder %s7475_s24, %s9965_s1 }
  0x5c   : > { %p7066_p12 = scmp.ne.s32.totalorder %s7475_s24, %s7065_s20  ;;  %p7072_p6 = scmp.lt.u32.totalorder %s7070_s23, %s7065_s20 }
  0x5d   : > { %p7074_p4 = scmp.lt.u32.totalorder %s7065_s20, %s7475_s24 }
  0x5e   : > { %p7068_p0 = pnand %p9709_p13, %p7066_p12  ;;  %p7073_p1 = por %p7072_p6, %p7071_p3 }
  0x60   : > { %p7069_p2 = pneg %p7068_p0  ;;  %p7075_p5 = por %p7074_p4, %p7073_p1 }
  0x62   : > { %p7076_p8 = pnand %p7075_p5, %p7069_p2 }
  0x64   : > { %7079 = shalt.err (!%p7076_p8)
}
  0x65   : > { %s7080_s11 = scalar_lea.vmem %s7481_s28, 32768  ;;  %s7291_s13 = smov [#allocation6]  }
  0x66   : > { %p7081_p10 = scmp.ne.s32.totalorder %s7481_s28, %s7080_s11  ;;  %s7085_s21 = sshll.u32 %s7291_s13, 4  ;;  %s7086_s21 = int_to_ptr.vmem [resolvable:$false] %s7085_s21 }
  0x67   : > { %s7087_s10 = scalar_lea.vmem %s7086_s21, 65536  ;;  %p7088_p7 = scmp.lt.s32.totalorder %s7481_s28, %s7086_s21 }
  0x68   : > { %p7083_p12 = pnand %p7081_p10, %p9709_p13  ;;  %p7089_p3 = scmp.lt.s32.totalorder %s7087_s10, %s7080_s11 }
  0x6a   : > { %p7084_p0 = pneg %p7083_p12  ;;  %p7090_p6 = por %p7089_p3, %p7088_p7 }
  0x6c   : > { %p7091_p1 = pnand %p7090_p6, %p7084_p0 }
  0x6e   : > { %7094 = shalt.err (!%p7091_p1)
}
  0x6f   : > { %s7292_s20 = smov 128   ;;  %s7293_s23 = smov 8  }
  0x70   : > { %s9967_s25 = smov 384   ;;  %s7294_s1 = smov [#allocation3]  }
  0x71   : > { %6063 = dma.hbm_to_vmem [thread:$0]  (!%p7477_p11), %s7475_s24, 32768, %s7481_s28, %s7483_s12, %s9967_s25, %s7292_s20, %s7293_s23  }
  0x72   : > { %s285_s3 = sshll.u32 %s7294_s1, 4  ;;  %s7095_s11 = scalar_lea.hbm %s9688_s0, 4096  ;;  %s286_s3 = int_to_ptr.vmem [resolvable:$true] %s285_s3 }
  0x73   : > { %p7096_p7 = scmp.ne.s32.totalorder %s9688_s0, %s7095_s11  ;;  %p7102_p5 = scmp.lt.u32.totalorder %s7095_s11, %s9688_s0 }
  0x75   : > { %p7098_p2 = pnand %p7096_p7, %p7412_p9 }
  0x77   : > { %p7099_p4 = pneg %p7098_p2 }
  0x79   : > { %p7104_p8 = pnand %p7102_p5, %p7099_p4 }
  0x7b   : > { %7107 = shalt.err (!%p7104_p8)
}
  0x7c   : > { %s7108_s24 = scalar_lea.vmem %s286_s3, 4096  ;;  %p7116_p3 = scmp.lt.s32.totalorder %s286_s3, %s286_s3 }
  0x7d   : > { %p7109_p10 = scmp.ne.s32.totalorder %s286_s3, %s7108_s24  ;;  %p7117_p6 = scmp.lt.s32.totalorder %s7108_s24, %s7108_s24 }
  0x7f   : > { %p7111_p12 = pnand %p7109_p10, %p7412_p9  ;;  %p7118_p1 = por %p7117_p6, %p7116_p3 }
  0x81   : > { %p7112_p0 = pneg %p7111_p12 }
  0x83   : > { %p7119_p13 = pnand %p7118_p1, %p7112_p0 }
  0x85   : > { %7122 = shalt.err (!%p7119_p13)
}
  0x86   : > { %s7295_s1 = smov 2048   ;;  %p9968_p7 = scmp.ne.s32.totalorder %s9959_s22, 0 }
  0x87   : > { %s7296_s26 = smov [#allocation11]   ;;  %s7297_s23 = smov [#allocation14]  }
  0x88   : > { %6047 = dma.hbm_to_vmem [thread:$0]  (!%p9968_p7), %s9688_s0, 4096, %s286_s3, [#allocation4], %s7295_s1, %s7295_s1, %s7292_s20  }
  0x89   : > { %s312_s29 = sshll.u32 %s7296_s26, 4  ;;  %s343_s25 = sshll.u32 %s7297_s23, 4  ;;  %s313_s29 = int_to_ptr.vmem [resolvable:$true] %s312_s29  ;;  %s344_s25 = int_to_ptr.vmem [resolvable:$true] %s343_s25 }
  0x8a   : > { %s7123_s21 = scalar_lea.hbm %s9692_s4, 32 }
  0x8b   : > { %p7124_p13 = scmp.ne.s32.totalorder %s9692_s4, %s7123_s21  ;;  %p7130_p5 = scmp.lt.u32.totalorder %s7123_s21, %s9692_s4 }
  0x8d   : > { %p7126_p2 = pnand %p7124_p13, %p7412_p9 }
  0x8f   : > { %p7127_p4 = pneg %p7126_p2 }
  0x91   : > { %p7132_p8 = pnand %p7130_p5, %p7127_p4 }
  0x93   : > { %7135 = shalt.err (!%p7132_p8)
}
  0x94   : > { %s7136_s3 = scalar_lea.vmem %s313_s29, 32  ;;  %p7144_p3 = scmp.lt.s32.totalorder %s313_s29, %s313_s29 }
  0x95   : > { %p7137_p10 = scmp.ne.s32.totalorder %s313_s29, %s7136_s3  ;;  %p7145_p6 = scmp.lt.s32.totalorder %s7136_s3, %s7136_s3 }
  0x97   : > { %p7139_p12 = pnand %p7137_p10, %p7412_p9  ;;  %p7146_p1 = por %p7145_p6, %p7144_p3 }
  0x99   : > { %p7140_p0 = pneg %p7139_p12 }
  0x9b   : > { %p7147_p11 = pnand %p7146_p1, %p7140_p0 }
  0x9d   : > { %7150 = shalt.err (!%p7147_p11)
}
  0x9e   : > { %6053 = dma.hbm_to_vmem [thread:$0]  (!%p9968_p7), %s9692_s4, 32, %s313_s29, [#allocation10]  }
  0x9f   : > { %s9969_s8 = sand.u32 1, %s7281_s15   ;;  %s7151_s13 = scalar_lea.hbm %s9697_s9, 16 }
  0xa0   : > { %s5468_s28 = sshll.u32 %s9969_s8, 1  ;;  %p7152_p13 = scmp.ne.s32.totalorder %s9697_s9, %s7151_s13 }
  0xa1   : > { %p7158_p4 = scmp.lt.u32.totalorder %s7151_s13, %s9697_s9 }
  0xa2   : > { %p7154_p11 = pnand %p7152_p13, %p7412_p9 }
  0xa4   : > { %p7155_p2 = pneg %p7154_p11 }
  0xa6   : > { %p7160_p5 = pnand %p7158_p4, %p7155_p2 }
  0xa8   : > { %7163 = shalt.err (!%p7160_p5)
}
  0xa9   : > { %s7164_s29 = scalar_lea.vmem %s344_s25, 16  ;;  %s7171_s7 = scalar_lea.vmem %s344_s25, 32 }
  0xaa   : > { %p7165_p8 = scmp.ne.s32.totalorder %s344_s25, %s7164_s29  ;;  %p7172_p0 = scmp.lt.s32.totalorder %s344_s25, %s344_s25 }
  0xab   : > { %p7173_p3 = scmp.lt.s32.totalorder %s7171_s7, %s7164_s29 }
  0xac   : > { %p7167_p10 = pnand %p7165_p8, %p7412_p9 }
  0xad   : > { %p7174_p6 = por %p7173_p3, %p7172_p0 }
  0xae   : > { %p7168_p12 = pneg %p7167_p10 }
  0xb0   : > { %p7175_p1 = pnand %p7174_p6, %p7168_p12 }
  0xb2   : > { %7178 = shalt.err (!%p7175_p1)
}
  0xb3   : > { %6059 = dma.hbm_to_vmem [thread:$0]  (!%p9968_p7), %s9697_s9, 16, %s344_s25, [#allocation13]  }
  0xb4   : > { %s5875_s1 = sshll.u32 %s7285_s16, 5  ;;  %s379_s23 = scalar_lea.vmem [#allocation8], %s5468_s28 }
  0xb5   : > { %s7572_s30 = scalar_lea.hbm %s9690_s2, %s5875_s1  ;;  %s387_s13 = sshll.u32 %s379_s23, 4  ;;  %s388_s13 = int_to_ptr.vmem [resolvable:$true] %s387_s13 }
  0xb6   : > { %s7179_s22 = scalar_lea.hbm %s7572_s30, 32  ;;  %p9970_p13 = scmp.ne.s32.totalorder %s9966_s27, 0 }
  0xb7   : > { %p7180_p9 = scmp.ne.s32.totalorder %s7572_s30, %s7179_s22  ;;  %s7184_s11 = scalar_lea.hbm %s9690_s2, 96 }
  0xb8   : > { %p9971_p11 = pneg %p9970_p13  ;;  %p7185_p7 = scmp.lt.u32.totalorder %s7572_s30, %s9690_s2 }
  0xb9   : > { %p7186_p5 = scmp.lt.u32.totalorder %s7184_s11, %s7179_s22  ;;  %p7188_p10 = scmp.lt.u32.totalorder %s7179_s22, %s7572_s30 }
  0xba   : > { %p7182_p2 = pnand %p7180_p9, %p9971_p11 }
  0xbb   : > { %p7187_p8 = por %p7186_p5, %p7185_p7 }
  0xbc   : > { %p7183_p4 = pneg %p7182_p2 }
  0xbd   : > { %p7189_p12 = por %p7188_p10, %p7187_p8 }
  0xbf   : > { %p7190_p0 = pnand %p7189_p12, %p7183_p4 }
  0xc1   : > { %7193 = shalt.err (!%p7190_p0)
}
  0xc2   : > { %s7194_s28 = scalar_lea.vmem %s388_s13, 32  ;;  %p9972_p6 = pmov %p9971_p11 }
  0xc3   : > { %p7195_p3 = scmp.ne.s32.totalorder %s388_s13, %s7194_s28  ;;  %s7298_s24 = smov [#allocation8]  }
  0xc4   : > { %s7199_s29 = sshll.u32 %s7298_s24, 4  ;;  %s7200_s29 = int_to_ptr.vmem [resolvable:$false] %s7199_s29 }
  0xc5   : > { %p7197_p1 = pnand %p7195_p3, %p9972_p6  ;;  %s7201_s7 = scalar_lea.vmem %s7200_s29, 64 }
  0xc6   : > { %p7202_p11 = scmp.lt.s32.totalorder %s388_s13, %s7200_s29  ;;  %p7203_p2 = scmp.lt.s32.totalorder %s7201_s7, %s7194_s28 }
  0xc7   : > { %p7198_p9 = pneg %p7197_p1 }
  0xc8   : > { %p7204_p5 = por %p7203_p2, %p7202_p11 }
  0xca   : > { %p7205_p7 = pnand %p7204_p5, %p7198_p9 }
  0xcc   : > { %7208 = shalt.err (!%p7205_p7)
}
  0xcd   : > { %6066 = dma.hbm_to_vmem [thread:$0]  (!%p9970_p13), %s7572_s30, 32, %s388_s13, %s7483_s12  }
  0xce   : > { %p9973_p4 = scmp.ne.s32.totalorder %s9958_s19, 0 }
  0xd0   : > { %396 = sbr.rel (%p9973_p4) target bundleno = 3645 (0xe3d), region = 60 }
  0xd7   : > { %p9974_p8 = scmp.eq.s32.totalorder %s7378_s17, 0 }
  0xd9   : > { %7252 = dma.done.wait (%p9974_p8), [#allocation4], 4096   ;;  %p9975_p10 = pmov %p9974_p8 }
  0xda   : > { %s402_s3 = sand.u32 1, %s7378_s17   ;;  %s404_s20 = sand.u32 1, %s7277_s14  }
  0xdb   : > { %7254 = vsyncadd (%p9975_p10), [#allocation4], 4294963200  ;;  %s5473_s1 = sshll.u32 %s404_s20, 11  ;;  %s403_s8 = scalar_lea.sflag [#allocation7], %s402_s3 }
  0xdc   : > { %s7602_s27 = scalar_lea.vmem [#allocation6], %s5473_s1  ;;  %p9976_p12 = scmp.ne.s32.totalorder %s9957_s18, 0 }
  0xde   : > { %7256 = dma.done.wait (%p9976_p12), %s403_s8, 32800  }
  0xdf   : > { %7258 = vsyncadd (%p9976_p12), %s403_s8, 4294934496  ;;  %s7608_s19 = sshll.u32 %s404_s20, 1  ;;  %p9977_p13 = pmov %p9974_p8 }
  0xe0   : > { %s415_s12 = scalar_lea.vmem [#allocation8], %s7608_s19 }
  0xe1   : > { %7260 = dma.done.wait (%p9977_p13), [#allocation10], 12320   ;;  %p9978_p0 = pmov %p9974_p8 }
  0xe3   : > { %7262 = vsyncadd (%p9978_p0), [#allocation10], 4294954976  ;;  %p9979_p3 = pmov %p9978_p0 }
  0xe4   : > { %p9980_p6 = pmov %p9978_p0 }
  0xe5   : > { %7264 = dma.done.wait (%p9979_p3), [#allocation13], 32  }
  0xe6   : > { %7266 = vsyncadd (%p9980_p6), [#allocation13], 4294967264  ;;  %v6127_v0 = vld [vmem:[%s7602_s27 + $0x4] ss:$8 sps:$4 sm:$0xff]   ;;  %v6131_v2 = vld [vmem:[%s7602_s27] ss:$8 sps:$4 sm:$0xff]  }
  0xe7   : > { %v6129_v1 = vld [vmem:[%s7602_s27 + $0x404] ss:$8 sps:$4 sm:$0xff]   ;;  %2066 = vmatprep.subr.bf16.mxu1 %v6127_v0  ;;  %v6132_v3 = vld [vmem:[%s7602_s27 + $0x400] ss:$8 sps:$4 sm:$0xff]   ;;  %v6133_v4 = vld [vmem:[%s7602_s27 + $0x14] ss:$8 sps:$4 sm:$0xff]  }
  0xe8   : > { %2238 = vmatprep.subr.bf16.mxu0 %v6129_v1  ;;  %2067 = vmatpush1.bf16.msra.mxu1 %v6131_v2  ;;  %v6135_v5 = vld [vmem:[%s7602_s27 + $0x414] ss:$8 sps:$4 sm:$0xff]   ;;  %v6137_v6 = vld [vmem:[%s7602_s27 + $0x10] ss:$8 sps:$4 sm:$0xff]   ;;  %v6139_v8 = vld [vmem:[%s7602_s27 + $0x24] ss:$8 sps:$4 sm:$0xff]  }
  0xe9   : > { %2239 = vmatpush1.bf16.msra.mxu0 %v6132_v3  ;;  %2068 = vmatprep.subr.bf16.mxu1 %v6133_v4  ;;  %v6138_v7 = vld [vmem:[%s7602_s27 + $0x410] ss:$8 sps:$4 sm:$0xff]   ;;  %v6141_v9 = vld [vmem:[%s7602_s27 + $0x424] ss:$8 sps:$4 sm:$0xff]   ;;  %v6143_v10 = vld [vmem:[%s7602_s27 + $0x20] ss:$8 sps:$4 sm:$0xff]  }
  0xea   : > { %2240 = vmatprep.subr.bf16.mxu0 %v6135_v5  ;;  %v6144_v11 = vld [vmem:[%s7602_s27 + $0x420] ss:$8 sps:$4 sm:$0xff]   ;;  %v6145_v12 = vld [vmem:[%s7602_s27 + $0x34] ss:$8 sps:$4 sm:$0xff]   ;;  %v6149_v14 = vld [vmem:[%s7602_s27 + $0x30] ss:$8 sps:$4 sm:$0xff]  }
  0xeb   : > { %v6147_v13 = vld [vmem:[%s7602_s27 + $0x434] ss:$8 sps:$4 sm:$0xff]   ;;  %v6150_v15 = vld [vmem:[%s7602_s27 + $0x430] ss:$8 sps:$4 sm:$0xff]   ;;  %v6151_v16 = vld [vmem:[%s7602_s27 + $0x44] ss:$8 sps:$4 sm:$0xff]  }
  0xec   : > { %2069 = vmatpush1.bf16.msra.mxu1 %v6137_v6  ;;  %v6153_v17 = vld [vmem:[%s7602_s27 + $0x444] ss:$8 sps:$4 sm:$0xff]   ;;  %v6155_v18 = vld [vmem:[%s7602_s27 + $0x40] ss:$8 sps:$4 sm:$0xff]   ;;  %v6157_v20 = vld [vmem:[%s7602_s27 + $0x54] ss:$8 sps:$4 sm:$0xff]  }
  0xed   : > { %2241 = vmatpush1.bf16.msra.mxu0 %v6138_v7  ;;  %2070 = vmatprep.subr.bf16.mxu1 %v6139_v8  ;;  %v6156_v19 = vld [vmem:[%s7602_s27 + $0x440] ss:$8 sps:$4 sm:$0xff]   ;;  %v6159_v21 = vld [vmem:[%s7602_s27 + $0x454] ss:$8 sps:$4 sm:$0xff]   ;;  %v6161_v22 = vld [vmem:[%s7602_s27 + $0x50] ss:$8 sps:$4 sm:$0xff]  }
  0xee   : > { %2242 = vmatprep.subr.bf16.mxu0 %v6141_v9  ;;  %v6162_v23 = vld [vmem:[%s7602_s27 + $0x450] ss:$8 sps:$4 sm:$0xff]   ;;  %v6163_v24 = vld [vmem:[%s7602_s27 + $0x64] ss:$8 sps:$4 sm:$0xff]   ;;  %v6167_v26 = vld [vmem:[%s7602_s27 + $0x60] ss:$8 sps:$4 sm:$0xff]  }
  0xef   : > { %v6165_v25 = vld [vmem:[%s7602_s27 + $0x464] ss:$8 sps:$4 sm:$0xff]   ;;  %v6168_v27 = vld [vmem:[%s7602_s27 + $0x460] ss:$8 sps:$4 sm:$0xff]   ;;  %v6169_v28 = vld [vmem:[%s7602_s27 + $0x74] ss:$8 sps:$4 sm:$0xff]  }
  0xf0   : > { %2071 = vmatpush1.bf16.msra.mxu1 %v6143_v10  ;;  %v6171_v29 = vld [vmem:[%s7602_s27 + $0x474] ss:$8 sps:$4 sm:$0xff]   ;;  %v6173_v30 = vld [vmem:[%s7602_s27 + $0x70] ss:$8 sps:$4 sm:$0xff]   ;;  %v6175_v32 = vld [vmem:[%s7602_s27 + $0x84] ss:$8 sps:$4 sm:$0xff]  }
  0xf1   : > { %2243 = vmatpush1.bf16.msra.mxu0 %v6144_v11  ;;  %2072 = vmatprep.subr.bf16.mxu1 %v6145_v12  ;;  %v6174_v31 = vld [vmem:[%s7602_s27 + $0x470] ss:$8 sps:$4 sm:$0xff]   ;;  %v6177_v33 = vld [vmem:[%s7602_s27 + $0x484] ss:$8 sps:$4 sm:$0xff]   ;;  %v6179_v34 = vld [vmem:[%s7602_s27 + $0x80] ss:$8 sps:$4 sm:$0xff]  }
  0xf2   : > { %2244 = vmatprep.subr.bf16.mxu0 %v6147_v13  ;;  %v6180_v35 = vld [vmem:[%s7602_s27 + $0x480] ss:$8 sps:$4 sm:$0xff]   ;;  %v6181_v36 = vld [vmem:[%s7602_s27 + $0x94] ss:$8 sps:$4 sm:$0xff]   ;;  %v6185_v38 = vld [vmem:[%s7602_s27 + $0x90] ss:$8 sps:$4 sm:$0xff]  }
  0xf3   : > { %v6183_v37 = vld [vmem:[%s7602_s27 + $0x494] ss:$8 sps:$4 sm:$0xff]   ;;  %v6186_v39 = vld [vmem:[%s7602_s27 + $0x490] ss:$8 sps:$4 sm:$0xff]   ;;  %v6187_v40 = vld [vmem:[%s7602_s27 + $0xa4] ss:$8 sps:$4 sm:$0xff]  }
  0xf4   : > { %2073 = vmatpush1.bf16.msra.mxu1 %v6149_v14  ;;  %v6189_v41 = vld [vmem:[%s7602_s27 + $0x4a4] ss:$8 sps:$4 sm:$0xff]   ;;  %v6191_v42 = vld [vmem:[%s7602_s27 + $0xa0] ss:$8 sps:$4 sm:$0xff]   ;;  %v6193_v44 = vld [vmem:[%s7602_s27 + $0xb4] ss:$8 sps:$4 sm:$0xff]  }
  0xf5   : > { %2245 = vmatpush1.bf16.msra.mxu0 %v6150_v15  ;;  %2074 = vmatprep.subr.bf16.mxu1 %v6151_v16  ;;  %v6192_v43 = vld [vmem:[%s7602_s27 + $0x4a0] ss:$8 sps:$4 sm:$0xff]   ;;  %v6195_v45 = vld [vmem:[%s7602_s27 + $0x4b4] ss:$8 sps:$4 sm:$0xff]   ;;  %v6197_v46 = vld [vmem:[%s7602_s27 + $0xb0] ss:$8 sps:$4 sm:$0xff]  }
  0xf6   : > { %2246 = vmatprep.subr.bf16.mxu0 %v6153_v17  ;;  %v6198_v47 = vld [vmem:[%s7602_s27 + $0x4b0] ss:$8 sps:$4 sm:$0xff]   ;;  %v471_v48 = vld [vmem:[#allocation3 + $0x8] sm:$0xff]  ;;  %v6205_v58 = vld [vmem:[%s7602_s27 + $0xd4] ss:$8 sps:$4 sm:$0xff]   ;;  %s5876_s18 = sshll.u32 %s7378_s17, 5 }
  0xf7   : > { %v487_v49 = vld [vmem:[#allocation3 + $0x88] sm:$0xff]  ;;  %v6207_v59 = vld [vmem:[%s7602_s27 + $0x4d4] ss:$8 sps:$4 sm:$0xff]   ;;  %v6209_v60 = vld [vmem:[%s7602_s27 + $0xd0] ss:$8 sps:$4 sm:$0xff]   ;;  %s2412_s26 = scalar_lea.vmem [#allocation2], %s5876_s18 }
  0xf8   : > { %2075 = vmatpush1.bf16.msra.mxu1 %v6155_v18  ;;  %v6199_v50 = vld [vmem:[%s7602_s27 + $0xc4] ss:$8 sps:$4 sm:$0xff]   ;;  %v503_v52 = vpack.c.bf16 %v487_v49, %v471_v48  ;;  %v6203_v56 = vld [vmem:[%s7602_s27 + $0xc0] ss:$8 sps:$4 sm:$0xff]   ;;  %v6210_v61 = vld [vmem:[%s7602_s27 + $0x4d0] ss:$8 sps:$4 sm:$0xff]  }
  0xf9   : > { %2247 = vmatpush1.bf16.msra.mxu0 %v6156_v19  ;;  %2076 = vmatprep.subr.bf16.mxu1 %v6157_v20  ;;  %v6201_v51 = vld [vmem:[%s7602_s27 + $0x4c4] ss:$8 sps:$4 sm:$0xff]   ;;  %v6204_v57 = vld [vmem:[%s7602_s27 + $0x4c0] ss:$8 sps:$4 sm:$0xff]   ;;  %v6217_v2 = vld [vmem:[%s7602_s27 + $0xf4] ss:$8 sps:$4 sm:$0xff]  }
  0xfa   : > { %2248 = vmatprep.subr.bf16.mxu0 %v6159_v21  ;;  %v479_v53 = vld [vmem:[#allocation3 + $0x48] sm:$0xff]  ;;  %2098 = vmatprep.mubr.bf16.mxu1 %v503_v52  ;;  %v6219_v3 = vld [vmem:[%s7602_s27 + $0x4f4] ss:$8 sps:$4 sm:$0xff]   ;;  %v6221_v4 = vld [vmem:[%s7602_s27 + $0xf0] ss:$8 sps:$4 sm:$0xff]   ;;  %p5737_p1 = scmp.ne.s32.totalorder %s7378_s17, 2 }
  0xfb   : > { %v495_v54 = vld [vmem:[#allocation3 + $0xc8] sm:$0xff]  ;;  %v6222_v5 = vld [vmem:[%s7602_s27 + $0x4f0] ss:$8 sps:$4 sm:$0xff]   ;;  %v470_v6 = vld [vmem:[#allocation3] sm:$0xff] }
  0xfc   : > { %2077 = vmatpush1.bf16.msra.mxu1 %v6161_v22  ;;  %v511_v55 = vpack.c.bf16 %v495_v54, %v479_v53  ;;  %v6211_v62 = vld [vmem:[%s7602_s27 + $0xe4] ss:$8 sps:$4 sm:$0xff]   ;;  %v6215_v0 = vld [vmem:[%s7602_s27 + $0xe0] ss:$8 sps:$4 sm:$0xff]   ;;  %v6231_v16 = vld [vmem:[%s7602_s27 + $0x114] ss:$8 sps:$4 sm:$0xff]  }
  0xfd   : > { %2249 = vmatpush1.bf16.msra.mxu0 %v6162_v23  ;;  %2078 = vmatprep.subr.bf16.mxu1 %v6163_v24  ;;  %v6213_v63 = vld [vmem:[%s7602_s27 + $0x4e4] ss:$8 sps:$4 sm:$0xff]   ;;  %v6216_v1 = vld [vmem:[%s7602_s27 + $0x4e0] ss:$8 sps:$4 sm:$0xff]   ;;  %v6234_v17 = vld [vmem:[%s7602_s27 + $0x514] ss:$8 sps:$4 sm:$0xff]  }
  0xfe   : > { %2250 = vmatprep.subr.bf16.mxu0 %v6165_v25  ;;  %2270 = vmatprep.mubr.bf16.mxu0 %v511_v55  ;;  %v6225_v7 = vld [vmem:[%s7602_s27 + $0x104] ss:$8 sps:$4 sm:$0xff]   ;;  %v6223_v12 = vld [vmem:[%s7602_s27 + $0x100] ss:$8 sps:$4 sm:$0xff]   ;;  %v6229_v18 = vld [vmem:[%s7602_s27 + $0x110] ss:$8 sps:$4 sm:$0xff]  }
  0xff   : > { %v486_v8 = vld [vmem:[#allocation3 + $0x80] sm:$0xff]  ;;  %v6232_v19 = vld [vmem:[%s7602_s27 + $0x510] ss:$8 sps:$4 sm:$0xff]   ;;  %v6243_v24 = vld [vmem:[%s7602_s27 + $0x134] ss:$8 sps:$4 sm:$0xff]  }
 0x100   : > { %2079 = vmatpush1.bf16.msra.mxu1 %v6167_v26  ;;  %v478_v9 = vld [vmem:[#allocation3 + $0x40] sm:$0xff]  ;;  %v502_v14 = vpack.c.bf16 %v486_v8, %v470_v6  ;;  %v6246_v25 = vld [vmem:[%s7602_s27 + $0x534] ss:$8 sps:$4 sm:$0xff]   ;;  %v6241_v26 = vld [vmem:[%s7602_s27 + $0x130] ss:$8 sps:$4 sm:$0xff]  }
 0x101   : > { %2251 = vmatpush1.bf16.msra.mxu0 %v6168_v27  ;;  %2080 = vmatprep.subr.bf16.mxu1 %v6169_v28  ;;  %v494_v10 = vld [vmem:[#allocation3 + $0xc0] sm:$0xff]  ;;  %v6244_v27 = vld [vmem:[%s7602_s27 + $0x530] ss:$8 sps:$4 sm:$0xff]   ;;  %v6279_v54 = vld [vmem:[%s7602_s27 + $0x194] ss:$8 sps:$4 sm:$0xff]  }
 0x102   : > { %2252 = vmatprep.subr.bf16.mxu0 %v6171_v29  ;;  %v6228_v11 = vld [vmem:[%s7602_s27 + $0x504] ss:$8 sps:$4 sm:$0xff]   ;;  %v6226_v13 = vld [vmem:[%s7602_s27 + $0x500] ss:$8 sps:$4 sm:$0xff]   ;;  %v510_v15 = vpack.c.bf16 %v494_v10, %v478_v9  ;;  %v6265_v48 = vld [vmem:[%s7602_s27 + $0x170] ss:$8 sps:$4 sm:$0xff]  }
 0x103   : > { %v6237_v20 = vld [vmem:[%s7602_s27 + $0x124] ss:$8 sps:$4 sm:$0xff]   ;;  %v6235_v22 = vld [vmem:[%s7602_s27 + $0x120] ss:$8 sps:$4 sm:$0xff]   ;;  %v6268_v49 = vld [vmem:[%s7602_s27 + $0x570] ss:$8 sps:$4 sm:$0xff]  }
 0x104   : > { %2081 = vmatpush1.bf16.msra.mxu1 %v6173_v30  ;;  %v6240_v21 = vld [vmem:[%s7602_s27 + $0x524] ss:$8 sps:$4 sm:$0xff]   ;;  %v6238_v23 = vld [vmem:[%s7602_s27 + $0x520] ss:$8 sps:$4 sm:$0xff]   ;;  %v6282_v55 = vld [vmem:[%s7602_s27 + $0x594] ss:$8 sps:$4 sm:$0xff]  }
 0x105   : > { %2253 = vmatpush1.bf16.msra.mxu0 %v6174_v31  ;;  %2082 = vmatprep.subr.bf16.mxu1 %v6175_v32  ;;  %v6249_v28 = vld [vmem:[%s7602_s27 + $0x144] ss:$8 sps:$4 sm:$0xff]   ;;  %v6247_v30 = vld [vmem:[%s7602_s27 + $0x140] ss:$8 sps:$4 sm:$0xff]   ;;  %v6255_v32 = vld [vmem:[%s7602_s27 + $0x154] ss:$8 sps:$4 sm:$0xff]  }
 0x106   : > { %2254 = vmatprep.subr.bf16.mxu0 %v6177_v33  ;;  %v6252_v29 = vld [vmem:[%s7602_s27 + $0x544] ss:$8 sps:$4 sm:$0xff]   ;;  %v6250_v31 = vld [vmem:[%s7602_s27 + $0x540] ss:$8 sps:$4 sm:$0xff]   ;;  %v6258_v33 = vld [vmem:[%s7602_s27 + $0x554] ss:$8 sps:$4 sm:$0xff]  }
 0x107   : > { %v6271_v52 = vld [vmem:[%s7602_s27 + $0x180] ss:$8 sps:$4 sm:$0xff]   ;;  %v6303_v6 = vld [vmem:[%s7602_s27 + $0x1d4] ss:$8 sps:$4 sm:$0xff]   ;;  %v6301_v8 = vld [vmem:[%s7602_s27 + $0x1d0] ss:$8 sps:$4 sm:$0xff]  }
 0x108   : > { %2083 = vmatpush1.bf16.msra.mxu1 %v6179_v34  ;;  %v6253_v34 = vld [vmem:[%s7602_s27 + $0x150] ss:$8 sps:$4 sm:$0xff]   ;;  %v6274_v53 = vld [vmem:[%s7602_s27 + $0x580] ss:$8 sps:$4 sm:$0xff]   ;;  %v6309_v10 = vld [vmem:[%s7602_s27 + $0x1e4] ss:$8 sps:$4 sm:$0xff]  }
 0x109   : > { %2255 = vmatpush1.bf16.msra.mxu0 %v6180_v35  ;;  %2084 = vmatprep.subr.bf16.mxu1 %v6181_v36  ;;  %v6256_v35 = vld [vmem:[%s7602_s27 + $0x550] ss:$8 sps:$4 sm:$0xff]   ;;  %v6261_v36 = vld [vmem:[%s7602_s27 + $0x164] ss:$8 sps:$4 sm:$0xff]  }
 0x10a   : > { %2256 = vmatprep.subr.bf16.mxu0 %v6183_v37  ;;  %v6264_v37 = vld [vmem:[%s7602_s27 + $0x564] ss:$8 sps:$4 sm:$0xff]   ;;  %v6304_v9 = vld [vmem:[%s7602_s27 + $0x5d0] ss:$8 sps:$4 sm:$0xff]  }
 0x10c   : > { %2085 = vmatpush1.bf16.msra.mxu1 %v6185_v38  ;;  %v6259_v38 = vld [vmem:[%s7602_s27 + $0x160] ss:$8 sps:$4 sm:$0xff]  }
 0x10d   : > { %2257 = vmatpush1.bf16.msra.mxu0 %v6186_v39  ;;  %2086 = vmatprep.subr.bf16.mxu1 %v6187_v40  ;;  %v6262_v39 = vld [vmem:[%s7602_s27 + $0x560] ss:$8 sps:$4 sm:$0xff]   ;;  %v473_v40 = vld [vmem:[#allocation3 + $0x18] sm:$0xff] }
 0x10e   : > { %2258 = vmatprep.subr.bf16.mxu0 %v6189_v41  ;;  %v489_v41 = vld [vmem:[#allocation3 + $0x98] sm:$0xff] }
 0x110   : > { %2087 = vmatpush1.bf16.msra.mxu1 %v6191_v42  ;;  %v6267_v42 = vld [vmem:[%s7602_s27 + $0x174] ss:$8 sps:$4 sm:$0xff]  }
 0x111   : > { %2259 = vmatpush1.bf16.msra.mxu0 %v6192_v43  ;;  %2088 = vmatprep.subr.bf16.mxu1 %v6193_v44  ;;  %v6270_v43 = vld [vmem:[%s7602_s27 + $0x574] ss:$8 sps:$4 sm:$0xff]   ;;  %v505_v44 = vpack.c.bf16 %v489_v41, %v473_v40  ;;  %v6334_v40 = vld [vmem:[%s7602_s27 + $0x620] ss:$8 sps:$4 sm:$0xff]  }
 0x112   : > { %2260 = vmatprep.subr.bf16.mxu0 %v6195_v45  ;;  %v481_v45 = vld [vmem:[#allocation3 + $0x58] sm:$0xff] }
 0x114   : > { %2089 = vmatpush1.bf16.msra.mxu1 %v6197_v46  ;;  %v497_v46 = vld [vmem:[#allocation3 + $0xd8] sm:$0xff] }
 0x115   : > { %2261 = vmatpush1.bf16.msra.mxu0 %v6198_v47  ;;  %2090 = vmatprep.subr.bf16.mxu1 %v6199_v50  ;;  %v513_v47 = vpack.c.bf16 %v497_v46, %v481_v45  ;;  %v6273_v50 = vld [vmem:[%s7602_s27 + $0x184] ss:$8 sps:$4 sm:$0xff]   ;;  %v6340_v45 = vld [vmem:[%s7602_s27 + $0x630] ss:$8 sps:$4 sm:$0xff]  }
 0x116   : > { %2262 = vmatprep.subr.bf16.mxu0 %v6201_v51  ;;  %v6276_v51 = vld [vmem:[%s7602_s27 + $0x584] ss:$8 sps:$4 sm:$0xff]  }
 0x117   : > { %v6345_v46 = vld [vmem:[%s7602_s27 + $0x244] ss:$8 sps:$4 sm:$0xff]  }
 0x118   : > { %2091 = vmatpush1.bf16.msra.mxu1 %v6203_v56  ;;  %v6277_v56 = vld [vmem:[%s7602_s27 + $0x190] ss:$8 sps:$4 sm:$0xff]  }
 0x119   : > { %2263 = vmatpush1.bf16.msra.mxu0 %v6204_v57  ;;  %2092 = vmatprep.subr.bf16.mxu1 %v6205_v58  ;;  %v6280_v57 = vld [vmem:[%s7602_s27 + $0x590] ss:$8 sps:$4 sm:$0xff]   ;;  %v6285_v58 = vld [vmem:[%s7602_s27 + $0x1a4] ss:$8 sps:$4 sm:$0xff]  }
 0x11a   : > { %2264 = vmatprep.subr.bf16.mxu0 %v6207_v59  ;;  %v6288_v59 = vld [vmem:[%s7602_s27 + $0x5a4] ss:$8 sps:$4 sm:$0xff]  }
 0x11c   : > { %2093 = vmatpush1.bf16.msra.mxu1 %v6209_v60  ;;  %v6283_v60 = vld [vmem:[%s7602_s27 + $0x1a0] ss:$8 sps:$4 sm:$0xff]  }
 0x11d   : > { %2265 = vmatpush1.bf16.msra.mxu0 %v6210_v61  ;;  %2094 = vmatprep.subr.bf16.mxu1 %v6211_v62  ;;  %v6286_v61 = vld [vmem:[%s7602_s27 + $0x5a0] ss:$8 sps:$4 sm:$0xff]   ;;  %v6291_v62 = vld [vmem:[%s7602_s27 + $0x1b4] ss:$8 sps:$4 sm:$0xff]  }
 0x11e   : > { %2266 = vmatprep.subr.bf16.mxu0 %v6213_v63  ;;  %v6294_v63 = vld [vmem:[%s7602_s27 + $0x5b4] ss:$8 sps:$4 sm:$0xff]  }
 0x120   : > { %2095 = vmatpush1.bf16.msra.mxu1 %v6215_v0  ;;  %v6289_v0 = vld [vmem:[%s7602_s27 + $0x1b0] ss:$8 sps:$4 sm:$0xff]  }
 0x121   : > { %2267 = vmatpush1.bf16.msra.mxu0 %v6216_v1  ;;  %2096 = vmatprep.subr.bf16.mxu1 %v6217_v2  ;;  %v6292_v1 = vld [vmem:[%s7602_s27 + $0x5b0] ss:$8 sps:$4 sm:$0xff]   ;;  %v6297_v2 = vld [vmem:[%s7602_s27 + $0x1c4] ss:$8 sps:$4 sm:$0xff]  }
 0x122   : > { %2268 = vmatprep.subr.bf16.mxu0 %v6219_v3  ;;  %v6300_v3 = vld [vmem:[%s7602_s27 + $0x5c4] ss:$8 sps:$4 sm:$0xff]  }
 0x124   : > { %2097 = vmatpush1.bf16.msra.mxu1 %v6221_v4  ;;  %v6295_v4 = vld [vmem:[%s7602_s27 + $0x1c0] ss:$8 sps:$4 sm:$0xff]  }
 0x125   : > { %2269 = vmatpush1.bf16.msra.mxu0 %v6222_v5  ;;  %2109 = vmatprep.subr.bf16.mxu1 %v6225_v7  ;;  %v6298_v5 = vld [vmem:[%s7602_s27 + $0x5c0] ss:$8 sps:$4 sm:$0xff]   ;;  %v6306_v7 = vld [vmem:[%s7602_s27 + $0x5d4] ss:$8 sps:$4 sm:$0xff]  }
 0x126   : > { %2281 = vmatprep.subr.bf16.mxu0 %v6228_v11  ;;  %v6312_v11 = vld [vmem:[%s7602_s27 + $0x5e4] ss:$8 sps:$4 sm:$0xff]  }
 0x127   : > { %2099 = vmatmul.mubr.bf16.vlgmr.msra.gmra.mrb[0].mxu1 %v502_v14  ;;  %v6315_v14 = vld [vmem:[%s7602_s27 + $0x1f4] ss:$8 sps:$4 sm:$0xff]  }
 0x128   : > { %2271 = vmatmul.mubr.bf16.vlgmr.msra.gmra.mrb[0].mxu0 %v510_v15  ;;  %2110 = vmatpush1.bf16.msra.mxu1 %v6223_v12  ;;  %v6307_v12 = vld [vmem:[%s7602_s27 + $0x1e0] ss:$8 sps:$4 sm:$0xff]   ;;  %v6318_v15 = vld [vmem:[%s7602_s27 + $0x5f4] ss:$8 sps:$4 sm:$0xff]  }
 0x129   : > { %2282 = vmatpush1.bf16.msra.mxu0 %v6226_v13  ;;  %2111 = vmatprep.subr.bf16.mxu1 %v6231_v16  ;;  %v6310_v13 = vld [vmem:[%s7602_s27 + $0x5e0] ss:$8 sps:$4 sm:$0xff]   ;;  %v6313_v16 = vld [vmem:[%s7602_s27 + $0x1f0] ss:$8 sps:$4 sm:$0xff]  }
 0x12a   : > { %2283 = vmatprep.subr.bf16.mxu0 %v6234_v17  ;;  %2141 = vmatprep.mubr.bf16.mxu1 %v505_v44  ;;  %v6316_v17 = vld [vmem:[%s7602_s27 + $0x5f0] ss:$8 sps:$4 sm:$0xff]  }
 0x12b   : > { %2313 = vmatprep.mubr.bf16.mxu0 %v513_v47  ;;  %v6337_v44 = vld [vmem:[%s7602_s27 + $0x230] ss:$8 sps:$4 sm:$0xff]   ;;  %v6348_v47 = vld [vmem:[%s7602_s27 + $0x644] ss:$8 sps:$4 sm:$0xff]  }
 0x12c   : > { %2112 = vmatpush1.bf16.msra.mxu1 %v6229_v18  ;;  %v472_v18 = vld [vmem:[#allocation3 + $0x10] sm:$0xff] }
 0x12d   : > { %2284 = vmatpush1.bf16.msra.mxu0 %v6232_v19  ;;  %2113 = vmatprep.subr.bf16.mxu1 %v6237_v20  ;;  %v6321_v19 = vld [vmem:[%s7602_s27 + $0x204] ss:$8 sps:$4 sm:$0xff]   ;;  %v488_v20 = vld [vmem:[#allocation3 + $0x90] sm:$0xff] }
 0x12e   : > { %2285 = vmatprep.subr.bf16.mxu0 %v6240_v21  ;;  %v480_v21 = vld [vmem:[#allocation3 + $0x50] sm:$0xff] }
 0x130   : > { %2114 = vmatpush1.bf16.msra.mxu1 %v6235_v22  ;;  %v496_v22 = vld [vmem:[#allocation3 + $0xd0] sm:$0xff] }
 0x131   : > { %2286 = vmatpush1.bf16.msra.mxu0 %v6238_v23  ;;  %2115 = vmatprep.subr.bf16.mxu1 %v6243_v24  ;;  %v6324_v23 = vld [vmem:[%s7602_s27 + $0x604] ss:$8 sps:$4 sm:$0xff]   ;;  %v6319_v24 = vld [vmem:[%s7602_s27 + $0x200] ss:$8 sps:$4 sm:$0xff]  }
 0x132   : > { %2287 = vmatprep.subr.bf16.mxu0 %v6246_v25  ;;  %v6322_v25 = vld [vmem:[%s7602_s27 + $0x600] ss:$8 sps:$4 sm:$0xff]  }
 0x134   : > { %2116 = vmatpush1.bf16.msra.mxu1 %v6241_v26  ;;  %v504_v26 = vpack.c.bf16 %v488_v20, %v472_v18  ;;  %v6399_v18 = vld [vmem:[%s7602_s27 + $0x2d4] ss:$8 sps:$4 sm:$0xff]   ;;  %v6397_v20 = vld [vmem:[%s7602_s27 + $0x2d0] ss:$8 sps:$4 sm:$0xff]  }
 0x135   : > { %2288 = vmatpush1.bf16.msra.mxu0 %v6244_v27  ;;  %2117 = vmatprep.subr.bf16.mxu1 %v6249_v28  ;;  %v512_v27 = vpack.c.bf16 %v496_v22, %v480_v21  ;;  %v6327_v28 = vld [vmem:[%s7602_s27 + $0x214] ss:$8 sps:$4 sm:$0xff]   ;;  %v6400_v21 = vld [vmem:[%s7602_s27 + $0x6d0] ss:$8 sps:$4 sm:$0xff]   ;;  %v6405_v22 = vld [vmem:[%s7602_s27 + $0x2e4] ss:$8 sps:$4 sm:$0xff]  }
 0x136   : > { %2289 = vmatprep.subr.bf16.mxu0 %v6252_v29  ;;  %v6330_v29 = vld [vmem:[%s7602_s27 + $0x614] ss:$8 sps:$4 sm:$0xff]  }
 0x138   : > { %2118 = vmatpush1.bf16.msra.mxu1 %v6247_v30  ;;  %v6325_v30 = vld [vmem:[%s7602_s27 + $0x210] ss:$8 sps:$4 sm:$0xff]  }
 0x139   : > { %2290 = vmatpush1.bf16.msra.mxu0 %v6250_v31  ;;  %2119 = vmatprep.subr.bf16.mxu1 %v6255_v32  ;;  %v6328_v31 = vld [vmem:[%s7602_s27 + $0x610] ss:$8 sps:$4 sm:$0xff]   ;;  %v6333_v32 = vld [vmem:[%s7602_s27 + $0x224] ss:$8 sps:$4 sm:$0xff]  }
 0x13a   : > { %2291 = vmatprep.subr.bf16.mxu0 %v6258_v33  ;;  %v6336_v33 = vld [vmem:[%s7602_s27 + $0x624] ss:$8 sps:$4 sm:$0xff]  }
 0x13c   : > { %2120 = vmatpush1.bf16.msra.mxu1 %v6253_v34  ;;  %v475_v34 = vld [vmem:[#allocation3 + $0x28] sm:$0xff] }
 0x13d   : > { %2292 = vmatpush1.bf16.msra.mxu0 %v6256_v35  ;;  %2121 = vmatprep.subr.bf16.mxu1 %v6261_v36  ;;  %v491_v35 = vld [vmem:[#allocation3 + $0xa8] sm:$0xff] }
 0x13e   : > { %2293 = vmatprep.subr.bf16.mxu0 %v6264_v37  ;;  %v507_v36 = vpack.c.bf16 %v491_v35, %v475_v34  ;;  %v6331_v37 = vld [vmem:[%s7602_s27 + $0x220] ss:$8 sps:$4 sm:$0xff]   ;;  %v6417_v34 = vld [vmem:[%s7602_s27 + $0x304] ss:$8 sps:$4 sm:$0xff]  }
 0x13f   : > { %v6420_v35 = vld [vmem:[%s7602_s27 + $0x704] ss:$8 sps:$4 sm:$0xff]  }
 0x140   : > { %2122 = vmatpush1.bf16.msra.mxu1 %v6259_v38  ;;  %v483_v38 = vld [vmem:[#allocation3 + $0x68] sm:$0xff] }
 0x141   : > { %2294 = vmatpush1.bf16.msra.mxu0 %v6262_v39  ;;  %2123 = vmatprep.subr.bf16.mxu1 %v6267_v42  ;;  %v499_v39 = vld [vmem:[#allocation3 + $0xe8] sm:$0xff]  ;;  %v6339_v42 = vld [vmem:[%s7602_s27 + $0x234] ss:$8 sps:$4 sm:$0xff]  }
 0x142   : > { %2295 = vmatprep.subr.bf16.mxu0 %v6270_v43  ;;  %v515_v41 = vpack.c.bf16 %v499_v39, %v483_v38  ;;  %v6342_v43 = vld [vmem:[%s7602_s27 + $0x634] ss:$8 sps:$4 sm:$0xff]  }
 0x143   : > { %v493_v39 = vld [vmem:[#allocation3 + $0xb8] sm:$0xff] }
 0x144   : > { %2124 = vmatpush1.bf16.msra.mxu1 %v6265_v48  ;;  %v6343_v48 = vld [vmem:[%s7602_s27 + $0x240] ss:$8 sps:$4 sm:$0xff]  }
 0x145   : > { %2296 = vmatpush1.bf16.msra.mxu0 %v6268_v49  ;;  %2125 = vmatprep.subr.bf16.mxu1 %v6273_v50  ;;  %v6346_v49 = vld [vmem:[%s7602_s27 + $0x640] ss:$8 sps:$4 sm:$0xff]   ;;  %v6351_v50 = vld [vmem:[%s7602_s27 + $0x254] ss:$8 sps:$4 sm:$0xff]  }
 0x146   : > { %2297 = vmatprep.subr.bf16.mxu0 %v6276_v51  ;;  %v6354_v51 = vld [vmem:[%s7602_s27 + $0x654] ss:$8 sps:$4 sm:$0xff]  }
 0x148   : > { %2126 = vmatpush1.bf16.msra.mxu1 %v6271_v52  ;;  %v6349_v52 = vld [vmem:[%s7602_s27 + $0x250] ss:$8 sps:$4 sm:$0xff]  }
 0x149   : > { %2298 = vmatpush1.bf16.msra.mxu0 %v6274_v53  ;;  %2127 = vmatprep.subr.bf16.mxu1 %v6279_v54  ;;  %v6352_v53 = vld [vmem:[%s7602_s27 + $0x650] ss:$8 sps:$4 sm:$0xff]   ;;  %v6357_v54 = vld [vmem:[%s7602_s27 + $0x264] ss:$8 sps:$4 sm:$0xff]  }
 0x14a   : > { %2299 = vmatprep.subr.bf16.mxu0 %v6282_v55  ;;  %v6360_v55 = vld [vmem:[%s7602_s27 + $0x664] ss:$8 sps:$4 sm:$0xff]  }
 0x14c   : > { %2128 = vmatpush1.bf16.msra.mxu1 %v6277_v56  ;;  %v6355_v56 = vld [vmem:[%s7602_s27 + $0x260] ss:$8 sps:$4 sm:$0xff]  }
 0x14d   : > { %2300 = vmatpush1.bf16.msra.mxu0 %v6280_v57  ;;  %2129 = vmatprep.subr.bf16.mxu1 %v6285_v58  ;;  %v6358_v57 = vld [vmem:[%s7602_s27 + $0x660] ss:$8 sps:$4 sm:$0xff]   ;;  %v6363_v58 = vld [vmem:[%s7602_s27 + $0x274] ss:$8 sps:$4 sm:$0xff]  }
 0x14e   : > { %2301 = vmatprep.subr.bf16.mxu0 %v6288_v59  ;;  %v6366_v59 = vld [vmem:[%s7602_s27 + $0x674] ss:$8 sps:$4 sm:$0xff]  }
 0x150   : > { %2130 = vmatpush1.bf16.msra.mxu1 %v6283_v60  ;;  %v6361_v60 = vld [vmem:[%s7602_s27 + $0x270] ss:$8 sps:$4 sm:$0xff]  }
 0x151   : > { %2302 = vmatpush1.bf16.msra.mxu0 %v6286_v61  ;;  %2131 = vmatprep.subr.bf16.mxu1 %v6291_v62  ;;  %v6364_v61 = vld [vmem:[%s7602_s27 + $0x670] ss:$8 sps:$4 sm:$0xff]   ;;  %v6369_v62 = vld [vmem:[%s7602_s27 + $0x284] ss:$8 sps:$4 sm:$0xff]  }
 0x152   : > { %2303 = vmatprep.subr.bf16.mxu0 %v6294_v63  ;;  %v6372_v63 = vld [vmem:[%s7602_s27 + $0x684] ss:$8 sps:$4 sm:$0xff]  }
 0x154   : > { %2132 = vmatpush1.bf16.msra.mxu1 %v6289_v0  ;;  %v6367_v0 = vld [vmem:[%s7602_s27 + $0x280] ss:$8 sps:$4 sm:$0xff]  }
 0x155   : > { %2304 = vmatpush1.bf16.msra.mxu0 %v6292_v1  ;;  %2133 = vmatprep.subr.bf16.mxu1 %v6297_v2  ;;  %v6370_v1 = vld [vmem:[%s7602_s27 + $0x680] ss:$8 sps:$4 sm:$0xff]   ;;  %v6375_v2 = vld [vmem:[%s7602_s27 + $0x294] ss:$8 sps:$4 sm:$0xff]  }
 0x156   : > { %2305 = vmatprep.subr.bf16.mxu0 %v6300_v3  ;;  %v6378_v3 = vld [vmem:[%s7602_s27 + $0x694] ss:$8 sps:$4 sm:$0xff]  }
 0x158   : > { %2134 = vmatpush1.bf16.msra.mxu1 %v6295_v4  ;;  %v6373_v4 = vld [vmem:[%s7602_s27 + $0x290] ss:$8 sps:$4 sm:$0xff]  }
 0x159   : > { %2306 = vmatpush1.bf16.msra.mxu0 %v6298_v5  ;;  %2135 = vmatprep.subr.bf16.mxu1 %v6303_v6  ;;  %v6376_v5 = vld [vmem:[%s7602_s27 + $0x690] ss:$8 sps:$4 sm:$0xff]   ;;  %v6381_v6 = vld [vmem:[%s7602_s27 + $0x2a4] ss:$8 sps:$4 sm:$0xff]  }
 0x15a   : > { %2307 = vmatprep.subr.bf16.mxu0 %v6306_v7  ;;  %v6384_v7 = vld [vmem:[%s7602_s27 + $0x6a4] ss:$8 sps:$4 sm:$0xff]  }
 0x15c   : > { %2136 = vmatpush1.bf16.msra.mxu1 %v6301_v8  ;;  %v6379_v8 = vld [vmem:[%s7602_s27 + $0x2a0] ss:$8 sps:$4 sm:$0xff]  }
 0x15d   : > { %2308 = vmatpush1.bf16.msra.mxu0 %v6304_v9  ;;  %2137 = vmatprep.subr.bf16.mxu1 %v6309_v10  ;;  %v6382_v9 = vld [vmem:[%s7602_s27 + $0x6a0] ss:$8 sps:$4 sm:$0xff]   ;;  %v6387_v10 = vld [vmem:[%s7602_s27 + $0x2b4] ss:$8 sps:$4 sm:$0xff]  }
 0x15e   : > { %2309 = vmatprep.subr.bf16.mxu0 %v6312_v11  ;;  %v6390_v11 = vld [vmem:[%s7602_s27 + $0x6b4] ss:$8 sps:$4 sm:$0xff]  }
 0x160   : > { %2138 = vmatpush1.bf16.msra.mxu1 %v6307_v12  ;;  %v6385_v12 = vld [vmem:[%s7602_s27 + $0x2b0] ss:$8 sps:$4 sm:$0xff]  }
 0x161   : > { %2310 = vmatpush1.bf16.msra.mxu0 %v6310_v13  ;;  %2139 = vmatprep.subr.bf16.mxu1 %v6315_v14  ;;  %v6388_v13 = vld [vmem:[%s7602_s27 + $0x6b0] ss:$8 sps:$4 sm:$0xff]   ;;  %v6393_v14 = vld [vmem:[%s7602_s27 + $0x2c4] ss:$8 sps:$4 sm:$0xff]  }
 0x162   : > { %2311 = vmatprep.subr.bf16.mxu0 %v6318_v15  ;;  %v6396_v15 = vld [vmem:[%s7602_s27 + $0x6c4] ss:$8 sps:$4 sm:$0xff]  }
 0x164   : > { %2140 = vmatpush1.bf16.msra.mxu1 %v6313_v16  ;;  %v6391_v16 = vld [vmem:[%s7602_s27 + $0x2c0] ss:$8 sps:$4 sm:$0xff]  }
 0x165   : > { %2312 = vmatpush1.bf16.msra.mxu0 %v6316_v17  ;;  %2152 = vmatprep.subr.bf16.mxu1 %v6321_v19  ;;  %v6394_v17 = vld [vmem:[%s7602_s27 + $0x6c0] ss:$8 sps:$4 sm:$0xff]   ;;  %v6402_v19 = vld [vmem:[%s7602_s27 + $0x6d4] ss:$8 sps:$4 sm:$0xff]  }
 0x166   : > { %2324 = vmatprep.subr.bf16.mxu0 %v6324_v23  ;;  %v6408_v23 = vld [vmem:[%s7602_s27 + $0x6e4] ss:$8 sps:$4 sm:$0xff]  }
 0x167   : > { %2142 = vmatmul.mubr.bf16.vlgmr.msra.gmra.mrb[0].mxu1 %v504_v26  ;;  %v6411_v26 = vld [vmem:[%s7602_s27 + $0x2f4] ss:$8 sps:$4 sm:$0xff]  }
 0x168   : > { %2314 = vmatmul.mubr.bf16.vlgmr.msra.gmra.mrb[0].mxu0 %v512_v27  ;;  %2153 = vmatpush1.bf16.msra.mxu1 %v6319_v24  ;;  %v6403_v24 = vld [vmem:[%s7602_s27 + $0x2e0] ss:$8 sps:$4 sm:$0xff]   ;;  %v6414_v27 = vld [vmem:[%s7602_s27 + $0x6f4] ss:$8 sps:$4 sm:$0xff]  }
 0x169   : > { %2325 = vmatpush1.bf16.msra.mxu0 %v6322_v25  ;;  %2154 = vmatprep.subr.bf16.mxu1 %v6327_v28  ;;  %v6406_v25 = vld [vmem:[%s7602_s27 + $0x6e0] ss:$8 sps:$4 sm:$0xff]   ;;  %v6409_v28 = vld [vmem:[%s7602_s27 + $0x2f0] ss:$8 sps:$4 sm:$0xff]  }
 0x16a   : > { %2326 = vmatprep.subr.bf16.mxu0 %v6330_v29  ;;  %2184 = vmatprep.mubr.bf16.mxu1 %v507_v36  ;;  %v6412_v29 = vld [vmem:[%s7602_s27 + $0x6f0] ss:$8 sps:$4 sm:$0xff]  }
 0x16b   : > { %2356 = vmatprep.mubr.bf16.mxu0 %v515_v41  ;;  %v477_v36 = vld [vmem:[#allocation3 + $0x38] sm:$0xff] }
 0x16c   : > { %2155 = vmatpush1.bf16.msra.mxu1 %v6325_v30  ;;  %v474_v30 = vld [vmem:[#allocation3 + $0x20] sm:$0xff]  ;;  %v501_v41 = vld [vmem:[#allocation3 + $0xf8] sm:$0xff] }
 0x16d   : > { %2327 = vmatpush1.bf16.msra.mxu0 %v6328_v31  ;;  %2156 = vmatprep.subr.bf16.mxu1 %v6333_v32  ;;  %v490_v31 = vld [vmem:[#allocation3 + $0xa0] sm:$0xff] }
 0x16e   : > { %2328 = vmatprep.subr.bf16.mxu0 %v6336_v33  ;;  %v482_v32 = vld [vmem:[#allocation3 + $0x60] sm:$0xff] }
 0x16f   : > { %v498_v33 = vld [vmem:[#allocation3 + $0xe0] sm:$0xff] }
 0x170   : > { %2157 = vmatpush1.bf16.msra.mxu1 %v6331_v37  ;;  %v506_v37 = vpack.c.bf16 %v490_v31, %v474_v30  ;;  %v514_v38 = vpack.c.bf16 %v498_v33, %v482_v32  ;;  %v6495_v30 = vld [vmem:[%s7602_s27 + $0x3d4] ss:$8 sps:$4 sm:$0xff]   ;;  %v6493_v32 = vld [vmem:[%s7602_s27 + $0x3d0] ss:$8 sps:$4 sm:$0xff]  }
 0x171   : > { %2329 = vmatpush1.bf16.msra.mxu0 %v6334_v40  ;;  %2158 = vmatprep.subr.bf16.mxu1 %v6339_v42  ;;  %v485_v40 = vld [vmem:[#allocation3 + $0x78] sm:$0xff]  ;;  %v6415_v42 = vld [vmem:[%s7602_s27 + $0x300] ss:$8 sps:$4 sm:$0xff]  }
 0x172   : > { %2330 = vmatprep.subr.bf16.mxu0 %v6342_v43  ;;  %v6418_v43 = vld [vmem:[%s7602_s27 + $0x700] ss:$8 sps:$4 sm:$0xff]   ;;  %v6498_v31 = vld [vmem:[%s7602_s27 + $0x7d4] ss:$8 sps:$4 sm:$0xff]   ;;  %v6496_v33 = vld [vmem:[%s7602_s27 + $0x7d0] ss:$8 sps:$4 sm:$0xff]  }
 0x174   : > { %2159 = vmatpush1.bf16.msra.mxu1 %v6337_v44  ;;  %v6423_v44 = vld [vmem:[%s7602_s27 + $0x314] ss:$8 sps:$4 sm:$0xff]  }
 0x175   : > { %2331 = vmatpush1.bf16.msra.mxu0 %v6340_v45  ;;  %2160 = vmatprep.subr.bf16.mxu1 %v6345_v46  ;;  %v6426_v45 = vld [vmem:[%s7602_s27 + $0x714] ss:$8 sps:$4 sm:$0xff]   ;;  %v509_v46 = vpack.c.bf16 %v493_v39, %v477_v36  ;;  %v6499_v36 = vld [vmem:[%s7602_s27 + $0x3e0] ss:$8 sps:$4 sm:$0xff]  }
 0x176   : > { %2332 = vmatprep.subr.bf16.mxu0 %v6348_v47  ;;  %v517_v47 = vpack.c.bf16 %v501_v41, %v485_v40  ;;  %v6510_v39 = vld [vmem:[%s7602_s27 + $0x7f4] ss:$8 sps:$4 sm:$0xff]   ;;  %v6505_v40 = vld [vmem:[%s7602_s27 + $0x3f0] ss:$8 sps:$4 sm:$0xff]  }
 0x177   : > { %v6508_v41 = vld [vmem:[%s7602_s27 + $0x7f0] ss:$8 sps:$4 sm:$0xff]  }
 0x178   : > { %2161 = vmatpush1.bf16.msra.mxu1 %v6343_v48  ;;  %v6421_v48 = vld [vmem:[%s7602_s27 + $0x310] ss:$8 sps:$4 sm:$0xff]  }
 0x179   : > { %2333 = vmatpush1.bf16.msra.mxu0 %v6346_v49  ;;  %2162 = vmatprep.subr.bf16.mxu1 %v6351_v50  ;;  %v6424_v49 = vld [vmem:[%s7602_s27 + $0x710] ss:$8 sps:$4 sm:$0xff]   ;;  %v6429_v50 = vld [vmem:[%s7602_s27 + $0x324] ss:$8 sps:$4 sm:$0xff]  }
 0x17a   : > { %2334 = vmatprep.subr.bf16.mxu0 %v6354_v51  ;;  %v6432_v51 = vld [vmem:[%s7602_s27 + $0x724] ss:$8 sps:$4 sm:$0xff]  }
 0x17c   : > { %2163 = vmatpush1.bf16.msra.mxu1 %v6349_v52  ;;  %v6427_v52 = vld [vmem:[%s7602_s27 + $0x320] ss:$8 sps:$4 sm:$0xff]  }
 0x17d   : > { %2335 = vmatpush1.bf16.msra.mxu0 %v6352_v53  ;;  %2164 = vmatprep.subr.bf16.mxu1 %v6357_v54  ;;  %v6430_v53 = vld [vmem:[%s7602_s27 + $0x720] ss:$8 sps:$4 sm:$0xff]   ;;  %v6435_v54 = vld [vmem:[%s7602_s27 + $0x334] ss:$8 sps:$4 sm:$0xff]  }
 0x17e   : > { %2336 = vmatprep.subr.bf16.mxu0 %v6360_v55  ;;  %v6438_v55 = vld [vmem:[%s7602_s27 + $0x734] ss:$8 sps:$4 sm:$0xff]  }
 0x180   : > { %2165 = vmatpush1.bf16.msra.mxu1 %v6355_v56  ;;  %v6433_v56 = vld [vmem:[%s7602_s27 + $0x330] ss:$8 sps:$4 sm:$0xff]  }
 0x181   : > { %2337 = vmatpush1.bf16.msra.mxu0 %v6358_v57  ;;  %2166 = vmatprep.subr.bf16.mxu1 %v6363_v58  ;;  %v6436_v57 = vld [vmem:[%s7602_s27 + $0x730] ss:$8 sps:$4 sm:$0xff]   ;;  %v6441_v58 = vld [vmem:[%s7602_s27 + $0x344] ss:$8 sps:$4 sm:$0xff]  }
 0x182   : > { %2338 = vmatprep.subr.bf16.mxu0 %v6366_v59  ;;  %v6444_v59 = vld [vmem:[%s7602_s27 + $0x744] ss:$8 sps:$4 sm:$0xff]  }
 0x184   : > { %2167 = vmatpush1.bf16.msra.mxu1 %v6361_v60  ;;  %v6439_v60 = vld [vmem:[%s7602_s27 + $0x340] ss:$8 sps:$4 sm:$0xff]  }
 0x185   : > { %2339 = vmatpush1.bf16.msra.mxu0 %v6364_v61  ;;  %2168 = vmatprep.subr.bf16.mxu1 %v6369_v62  ;;  %v6442_v61 = vld [vmem:[%s7602_s27 + $0x740] ss:$8 sps:$4 sm:$0xff]   ;;  %v6447_v62 = vld [vmem:[%s7602_s27 + $0x354] ss:$8 sps:$4 sm:$0xff]  }
 0x186   : > { %2340 = vmatprep.subr.bf16.mxu0 %v6372_v63  ;;  %v6450_v63 = vld [vmem:[%s7602_s27 + $0x754] ss:$8 sps:$4 sm:$0xff]  }
 0x188   : > { %2169 = vmatpush1.bf16.msra.mxu1 %v6367_v0  ;;  %v6445_v0 = vld [vmem:[%s7602_s27 + $0x350] ss:$8 sps:$4 sm:$0xff]  }
 0x189   : > { %2341 = vmatpush1.bf16.msra.mxu0 %v6370_v1  ;;  %2170 = vmatprep.subr.bf16.mxu1 %v6375_v2  ;;  %v6448_v1 = vld [vmem:[%s7602_s27 + $0x750] ss:$8 sps:$4 sm:$0xff]   ;;  %v6453_v2 = vld [vmem:[%s7602_s27 + $0x364] ss:$8 sps:$4 sm:$0xff]  }
 0x18a   : > { %2342 = vmatprep.subr.bf16.mxu0 %v6378_v3  ;;  %v6456_v3 = vld [vmem:[%s7602_s27 + $0x764] ss:$8 sps:$4 sm:$0xff]  }
 0x18c   : > { %2171 = vmatpush1.bf16.msra.mxu1 %v6373_v4  ;;  %v6451_v4 = vld [vmem:[%s7602_s27 + $0x360] ss:$8 sps:$4 sm:$0xff]  }
 0x18d   : > { %2343 = vmatpush1.bf16.msra.mxu0 %v6376_v5  ;;  %2172 = vmatprep.subr.bf16.mxu1 %v6381_v6  ;;  %v6454_v5 = vld [vmem:[%s7602_s27 + $0x760] ss:$8 sps:$4 sm:$0xff]   ;;  %v6459_v6 = vld [vmem:[%s7602_s27 + $0x374] ss:$8 sps:$4 sm:$0xff]  }
 0x18e   : > { %2344 = vmatprep.subr.bf16.mxu0 %v6384_v7  ;;  %v6462_v7 = vld [vmem:[%s7602_s27 + $0x774] ss:$8 sps:$4 sm:$0xff]  }
 0x190   : > { %2173 = vmatpush1.bf16.msra.mxu1 %v6379_v8  ;;  %v6457_v8 = vld [vmem:[%s7602_s27 + $0x370] ss:$8 sps:$4 sm:$0xff]  }
 0x191   : > { %2345 = vmatpush1.bf16.msra.mxu0 %v6382_v9  ;;  %2174 = vmatprep.subr.bf16.mxu1 %v6387_v10  ;;  %v6460_v9 = vld [vmem:[%s7602_s27 + $0x770] ss:$8 sps:$4 sm:$0xff]   ;;  %v6465_v10 = vld [vmem:[%s7602_s27 + $0x384] ss:$8 sps:$4 sm:$0xff]  }
 0x192   : > { %2346 = vmatprep.subr.bf16.mxu0 %v6390_v11  ;;  %v6468_v11 = vld [vmem:[%s7602_s27 + $0x784] ss:$8 sps:$4 sm:$0xff]  }
 0x194   : > { %2175 = vmatpush1.bf16.msra.mxu1 %v6385_v12  ;;  %v6463_v12 = vld [vmem:[%s7602_s27 + $0x380] ss:$8 sps:$4 sm:$0xff]  }
 0x195   : > { %2347 = vmatpush1.bf16.msra.mxu0 %v6388_v13  ;;  %2176 = vmatprep.subr.bf16.mxu1 %v6393_v14  ;;  %v6466_v13 = vld [vmem:[%s7602_s27 + $0x780] ss:$8 sps:$4 sm:$0xff]   ;;  %v6471_v14 = vld [vmem:[%s7602_s27 + $0x394] ss:$8 sps:$4 sm:$0xff]  }
 0x196   : > { %2348 = vmatprep.subr.bf16.mxu0 %v6396_v15  ;;  %v6474_v15 = vld [vmem:[%s7602_s27 + $0x794] ss:$8 sps:$4 sm:$0xff]  }
 0x198   : > { %2177 = vmatpush1.bf16.msra.mxu1 %v6391_v16  ;;  %v6469_v16 = vld [vmem:[%s7602_s27 + $0x390] ss:$8 sps:$4 sm:$0xff]  }
 0x199   : > { %2349 = vmatpush1.bf16.msra.mxu0 %v6394_v17  ;;  %2178 = vmatprep.subr.bf16.mxu1 %v6399_v18  ;;  %v6472_v17 = vld [vmem:[%s7602_s27 + $0x790] ss:$8 sps:$4 sm:$0xff]   ;;  %v6477_v18 = vld [vmem:[%s7602_s27 + $0x3a4] ss:$8 sps:$4 sm:$0xff]  }
 0x19a   : > { %2350 = vmatprep.subr.bf16.mxu0 %v6402_v19  ;;  %v6480_v19 = vld [vmem:[%s7602_s27 + $0x7a4] ss:$8 sps:$4 sm:$0xff]  }
 0x19c   : > { %2179 = vmatpush1.bf16.msra.mxu1 %v6397_v20  ;;  %v6475_v20 = vld [vmem:[%s7602_s27 + $0x3a0] ss:$8 sps:$4 sm:$0xff]  }
 0x19d   : > { %2351 = vmatpush1.bf16.msra.mxu0 %v6400_v21  ;;  %2180 = vmatprep.subr.bf16.mxu1 %v6405_v22  ;;  %v6478_v21 = vld [vmem:[%s7602_s27 + $0x7a0] ss:$8 sps:$4 sm:$0xff]   ;;  %v6483_v22 = vld [vmem:[%s7602_s27 + $0x3b4] ss:$8 sps:$4 sm:$0xff]  }
 0x19e   : > { %2352 = vmatprep.subr.bf16.mxu0 %v6408_v23  ;;  %v6486_v23 = vld [vmem:[%s7602_s27 + $0x7b4] ss:$8 sps:$4 sm:$0xff]  }
 0x1a0   : > { %2181 = vmatpush1.bf16.msra.mxu1 %v6403_v24  ;;  %v6481_v24 = vld [vmem:[%s7602_s27 + $0x3b0] ss:$8 sps:$4 sm:$0xff]  }
 0x1a1   : > { %2353 = vmatpush1.bf16.msra.mxu0 %v6406_v25  ;;  %2182 = vmatprep.subr.bf16.mxu1 %v6411_v26  ;;  %v6484_v25 = vld [vmem:[%s7602_s27 + $0x7b0] ss:$8 sps:$4 sm:$0xff]   ;;  %v6489_v26 = vld [vmem:[%s7602_s27 + $0x3c4] ss:$8 sps:$4 sm:$0xff]  }
 0x1a2   : > { %2354 = vmatprep.subr.bf16.mxu0 %v6414_v27  ;;  %v6492_v27 = vld [vmem:[%s7602_s27 + $0x7c4] ss:$8 sps:$4 sm:$0xff]  }
 0x1a4   : > { %2183 = vmatpush1.bf16.msra.mxu1 %v6409_v28  ;;  %v6487_v28 = vld [vmem:[%s7602_s27 + $0x3c0] ss:$8 sps:$4 sm:$0xff]  }
 0x1a5   : > { %2355 = vmatpush1.bf16.msra.mxu0 %v6412_v29  ;;  %2195 = vmatprep.subr.bf16.mxu1 %v6417_v34  ;;  %v6490_v29 = vld [vmem:[%s7602_s27 + $0x7c0] ss:$8 sps:$4 sm:$0xff]   ;;  %v6501_v34 = vld [vmem:[%s7602_s27 + $0x3e4] ss:$8 sps:$4 sm:$0xff]  }
 0x1a6   : > { %2367 = vmatprep.subr.bf16.mxu0 %v6420_v35  ;;  %v6504_v35 = vld [vmem:[%s7602_s27 + $0x7e4] ss:$8 sps:$4 sm:$0xff]  }
 0x1a7   : > { %2185 = vmatmul.mubr.bf16.vlgmr.msra.gmra.mrb[0].mxu1 %v506_v37  ;;  %v6502_v37 = vld [vmem:[%s7602_s27 + $0x7e0] ss:$8 sps:$4 sm:$0xff]  }
 0x1a8   : > { %2357 = vmatmul.mubr.bf16.vlgmr.msra.gmra.mrb[0].mxu0 %v514_v38  ;;  %2196 = vmatpush1.bf16.msra.mxu1 %v6415_v42  ;;  %v6507_v38 = vld [vmem:[%s7602_s27 + $0x3f4] ss:$8 sps:$4 sm:$0xff]  }
 0x1a9   : > { %2368 = vmatpush1.bf16.msra.mxu0 %v6418_v43  ;;  %2197 = vmatprep.subr.bf16.mxu1 %v6423_v44  ;;  %v476_v42 = vld [vmem:[#allocation3 + $0x30] sm:$0xff] }
 0x1aa   : > { %2369 = vmatprep.subr.bf16.mxu0 %v6426_v45  ;;  %2227 = vmatprep.mubr.bf16.mxu1 %v509_v46  ;;  %v492_v43 = vld [vmem:[#allocation3 + $0xb0] sm:$0xff] }
 0x1ab   : > { %2399 = vmatprep.mubr.bf16.mxu0 %v517_v47  ;;  %v484_v44 = vld [vmem:[#allocation3 + $0x70] sm:$0xff]  ;;  %v508_v46 = vpack.c.bf16 %v492_v43, %v476_v42 }
 0x1ac   : > { %2198 = vmatpush1.bf16.msra.mxu1 %v6421_v48  ;;  %v500_v45 = vld [vmem:[#allocation3 + $0xf0] sm:$0xff]  ;;  %v776_v48 = vlaneseq }
 0x1ad   : > { %2370 = vmatpush1.bf16.msra.mxu0 %v6424_v49  ;;  %2199 = vmatprep.subr.bf16.mxu1 %v6429_v50  ;;  %v516_v47 = vpack.c.bf16 %v500_v45, %v484_v44 }
 0x1ae   : > { %2371 = vmatprep.subr.bf16.mxu0 %v6432_v51  ;;  %v777_v49 = vshrl.u32 %v776_v48, 7  ;;  %v774_v51 = vld [vmem:[%s415_s12] sm:$0x3] }
 0x1b0   : > { %2200 = vmatpush1.bf16.msra.mxu1 %v6427_v52  ;;  %v7875_v50 = vsub.s32 0, %v777_v49  ;;  %v7879_v52 = vsub.s32 1, %v777_v49 }
 0x1b1   : > { %2372 = vmatpush1.bf16.msra.mxu0 %v6430_v53  ;;  %2201 = vmatprep.subr.bf16.mxu1 %v6435_v54 }
 0x1b2   : > { %2373 = vmatprep.subr.bf16.mxu0 %v6438_v55  ;;  %9981 = vst [vmem:[#allocation23_spill] sm:$0xff] %v7875_v50  ;;  %9982 = vst [vmem:[#allocation24_spill] sm:$0xff] %v7879_v52  ;;  %v779_v53 = vrot.slane %v774_v51, %v7875_v50  ;;  %v783_v54 = vrot.slane %v774_v51, %v7879_v52 }
 0x1b4   : > { %2202 = vmatpush1.bf16.msra.mxu1 %v6433_v56 }
 0x1b5   : > { %2374 = vmatpush1.bf16.msra.mxu0 %v6436_v57  ;;  %2203 = vmatprep.subr.bf16.mxu1 %v6441_v58 }
 0x1b6   : > { %2375 = vmatprep.subr.bf16.mxu0 %v6444_v59 }
 0x1b8   : > { %2204 = vmatpush1.bf16.msra.mxu1 %v6439_v60 }
 0x1b9   : > { %2376 = vmatpush1.bf16.msra.mxu0 %v6442_v61  ;;  %2205 = vmatprep.subr.bf16.mxu1 %v6447_v62 }
 0x1ba   : > { %2377 = vmatprep.subr.bf16.mxu0 %v6450_v63 }
 0x1bc   : > { %2206 = vmatpush1.bf16.msra.mxu1 %v6445_v0 }
 0x1bd   : > { %2378 = vmatpush1.bf16.msra.mxu0 %v6448_v1  ;;  %2207 = vmatprep.subr.bf16.mxu1 %v6453_v2 }
 0x1be   : > { %2379 = vmatprep.subr.bf16.mxu0 %v6456_v3 }
 0x1c0   : > { %2208 = vmatpush1.bf16.msra.mxu1 %v6451_v4 }
 0x1c1   : > { %2380 = vmatpush1.bf16.msra.mxu0 %v6454_v5  ;;  %2209 = vmatprep.subr.bf16.mxu1 %v6459_v6 }
 0x1c2   : > { %2381 = vmatprep.subr.bf16.mxu0 %v6462_v7 }
 0x1c4   : > { %2210 = vmatpush1.bf16.msra.mxu1 %v6457_v8 }
 0x1c5   : > { %2382 = vmatpush1.bf16.msra.mxu0 %v6460_v9  ;;  %2211 = vmatprep.subr.bf16.mxu1 %v6465_v10 }
 0x1c6   : > { %2383 = vmatprep.subr.bf16.mxu0 %v6468_v11 }
 0x1c8   : > { %2212 = vmatpush1.bf16.msra.mxu1 %v6463_v12 }
 0x1c9   : > { %2384 = vmatpush1.bf16.msra.mxu0 %v6466_v13  ;;  %2213 = vmatprep.subr.bf16.mxu1 %v6471_v14 }
 0x1ca   : > { %2385 = vmatprep.subr.bf16.mxu0 %v6474_v15 }
 0x1cc   : > { %2214 = vmatpush1.bf16.msra.mxu1 %v6469_v16 }
 0x1cd   : > { %2386 = vmatpush1.bf16.msra.mxu0 %v6472_v17  ;;  %2215 = vmatprep.subr.bf16.mxu1 %v6477_v18 }
 0x1ce   : > { %2387 = vmatprep.subr.bf16.mxu0 %v6480_v19 }
 0x1d0   : > { %2216 = vmatpush1.bf16.msra.mxu1 %v6475_v20 }
 0x1d1   : > { %2388 = vmatpush1.bf16.msra.mxu0 %v6478_v21  ;;  %2217 = vmatprep.subr.bf16.mxu1 %v6483_v22 }
 0x1d2   : > { %2389 = vmatprep.subr.bf16.mxu0 %v6486_v23 }
 0x1d4   : > { %2218 = vmatpush1.bf16.msra.mxu1 %v6481_v24 }
 0x1d5   : > { %2390 = vmatpush1.bf16.msra.mxu0 %v6484_v25  ;;  %2219 = vmatprep.subr.bf16.mxu1 %v6489_v26 }
 0x1d6   : > { %2391 = vmatprep.subr.bf16.mxu0 %v6492_v27 }
 0x1d8   : > { %2220 = vmatpush1.bf16.msra.mxu1 %v6487_v28 }
 0x1d9   : > { %2392 = vmatpush1.bf16.msra.mxu0 %v6490_v29  ;;  %2221 = vmatprep.subr.bf16.mxu1 %v6495_v30 }
 0x1da   : > { %2393 = vmatprep.subr.bf16.mxu0 %v6498_v31 }
 0x1dc   : > { %2222 = vmatpush1.bf16.msra.mxu1 %v6493_v32 }
 0x1dd   : > { %2394 = vmatpush1.bf16.msra.mxu0 %v6496_v33  ;;  %2223 = vmatprep.subr.bf16.mxu1 %v6501_v34 }
 0x1de   : > { %2395 = vmatprep.subr.bf16.mxu0 %v6504_v35 }
 0x1e0   : > { %2224 = vmatpush1.bf16.msra.mxu1 %v6499_v36 }
 0x1e1   : > { %2396 = vmatpush1.bf16.msra.mxu0 %v6502_v37  ;;  %2225 = vmatprep.subr.bf16.mxu1 %v6507_v38 }
 0x1e2   : > { %2397 = vmatprep.subr.bf16.mxu0 %v6510_v39 }
 0x1e4   : > { %2226 = vmatpush1.bf16.msra.mxu1 %v6505_v40 }
 0x1e5   : > { %2398 = vmatpush1.bf16.msra.mxu0 %v6508_v41 }
 0x1e7   : > { %2228 = vmatmul.mubr.bf16.vlgmr.msra.gmra.mrb[0].mxu1 %v508_v46 }
 0x1e8   : > { %2400 = vmatmul.mubr.bf16.vlgmr.msra.gmra.mrb[0].mxu0 %v516_v47 }
 0x2ba   : > { %v2229_v55 = vpop.f32.mrb[0].mxu1 }
 0x2bb   : > { %v2401_v56 = vpop.f32.mrb[0].mxu0  ;;  %v5984_v57 = vadd.f32 %v2229_v55, %v779_v53  ;;  %v2231_v58 = vpop.f32.mrb[1].mxu1 }
 0x2bc   : > { %v2403_v59 = vpop.f32.mrb[1].mxu0  ;;  %v5986_v60 = vadd.f32 %v2231_v58, %v783_v54  ;;  %v2233_v61 = vpop.f32.mrb[2].mxu1  ;;  %2420 = sbr.rel (%p5737_p1) target bundleno = 3614 (0xe1e), region = 92 }
 0x2bd   : > { %v2405_v62 = vpop.f32.mrb[2].mxu0  ;;  %v5985_v63 = vadd.f32 %v5984_v57, %v2401_v56  ;;  %v5988_v0 = vadd.f32 %v2233_v61, %v779_v53  ;;  %v2235_v1 = vpop.f32.mrb[3].mxu1 }
 0x2be   : > { %v2407_v2 = vpop.f32.mrb[3].mxu0  ;;  %v5987_v3 = vadd.f32 %v5986_v60, %v2403_v59  ;;  %v5990_v4 = vadd.f32 %v2235_v1, %v783_v54 }
 0x2bf   : > { %2413 = vst [vmem:[%s2412_s26] sm:$0xff] %v5985_v63  ;;  %v5989_v5 = vadd.f32 %v5988_v0, %v2405_v62 }
 0x2c0   : > { %2414 = vst [vmem:[%s2412_s26 + $0x8] sm:$0xff] %v5987_v3  ;;  %v5991_v6 = vadd.f32 %v5990_v4, %v2407_v2 }
 0x2c1   : > { %2415 = vst [vmem:[%s2412_s26 + $0x10] sm:$0xff] %v5989_v5 }
 0x2c2   : > { %2416 = vst [vmem:[%s2412_s26 + $0x18] sm:$0xff] %v5991_v6 }
 0x2c3   : > { %v7885_v7 = vld [vmem:[#allocation9 + $0x4] ss:$24 sps:$4 sm:$0xff]   ;;  %v7887_v8 = vld [vmem:[#allocation9] ss:$24 sps:$4 sm:$0xff]   ;;  %v9713_v9 = vmov 0   ;;  %vm3148_vm1 = vcmask 1040384  }
 0x2c4   : > { %3032 = vmatprep.mubr.bf16.mxu0 %v9713_v9  ;;  %3073 = vmatprep.mubr.bf16.mxu1 %v9713_v9  ;;  %v7892_v10 = vld [vmem:[#allocation9 + $0x34] ss:$24 sps:$4 sm:$0xff]   ;;  %v7896_v11 = vld [vmem:[#allocation9 + $0x30] ss:$24 sps:$4 sm:$0xff]   ;;  %v7900_v12 = vld [vmem:[#allocation9 + $0x64] ss:$24 sps:$4 sm:$0xff]  }
 0x2c5   : > { %3000 = vmatprep.subr.bf16.mxu0 %v7885_v7  ;;  %6511 = vset.pattern.permute.xlu0 %v9713_v9  ;;  %v7903_v13 = vld [vmem:[#allocation9 + $0x60] ss:$24 sps:$4 sm:$0xff]   ;;  %v7906_v14 = vld [vmem:[#allocation9 + $0x94] ss:$24 sps:$4 sm:$0xff]   ;;  %v7909_v15 = vld [vmem:[#allocation9 + $0x90] ss:$24 sps:$4 sm:$0xff]  }
 0x2c6   : > { %3001 = vmatpush1.bf16.msra.mxu0 %v7887_v8  ;;  %6512 = vset.pattern.permute.xlu1 %v9713_v9  ;;  %v7912_v16 = vld [vmem:[#allocation9 + $0xc4] ss:$24 sps:$4 sm:$0xff]   ;;  %v7915_v17 = vld [vmem:[#allocation9 + $0xc0] ss:$24 sps:$4 sm:$0xff]   ;;  %v7918_v18 = vld [vmem:[#allocation9 + $0xf4] ss:$24 sps:$4 sm:$0xff]  }
 0x2c7   : > { %3002 = vmatprep.subr.bf16.mxu0 %v7892_v10  ;;  %v7920_v19 = vld [vmem:[#allocation9 + $0xc] ss:$24 sps:$4 sm:$0xff]   ;;  %v7922_v20 = vld [vmem:[#allocation9 + $0x8] ss:$24 sps:$4 sm:$0xff]   ;;  %v7932_v23 = vld [vmem:[#allocation9 + $0x3c] ss:$24 sps:$4 sm:$0xff]  }
 0x2c8   : > { %v7925_v21 = vld [vmem:[#allocation9 + $0xf0] ss:$24 sps:$4 sm:$0xff]   ;;  %3041 = vmatprep.subr.bf16.mxu1 %v7920_v19  ;;  %v7929_v22 = vld [vmem:[#allocation9 + $0x124] ss:$24 sps:$4 sm:$0xff]   ;;  %9983 = vst [vmem:[#allocation25_spill] sm:$0xff] %v7932_v23  ;;  %s10327_s13 = sld [smem:[#allocation96_spill]] }
 0x2c9   : > { %3042 = vmatpush1.bf16.msra.mxu1 %v7922_v20  ;;  %v7934_v24 = vld [vmem:[#allocation9 + $0x38] ss:$24 sps:$4 sm:$0xff]   ;;  %v7940_v26 = vld [vmem:[#allocation9 + $0x154] ss:$24 sps:$4 sm:$0xff]   ;;  %v7946_v28 = vld [vmem:[#allocation9 + $0x68] ss:$24 sps:$4 sm:$0xff]  }
 0x2ca   : > { %3003 = vmatpush1.bf16.msra.mxu0 %v7896_v11  ;;  %9984 = vst [vmem:[#allocation26_spill] sm:$0xff] %v7934_v24  ;;  %3043 = vmatprep.subr.bf16.mxu1 %v7932_v23  ;;  %v7938_v25 = vld [vmem:[#allocation9 + $0x120] ss:$24 sps:$4 sm:$0xff]   ;;  %v7942_v27 = vld [vmem:[#allocation9 + $0x6c] ss:$24 sps:$4 sm:$0xff]   ;;  %9986 = vst [vmem:[#allocation28_spill] sm:$0xff] %v7946_v28 }
 0x2cb   : > { %3004 = vmatprep.subr.bf16.mxu0 %v7900_v12  ;;  %9985 = vst [vmem:[#allocation27_spill] sm:$0xff] %v7942_v27  ;;  %v7949_v29 = vld [vmem:[#allocation9 + $0x9c] ss:$24 sps:$4 sm:$0xff]   ;;  %v7952_v30 = vld [vmem:[#allocation9 + $0x150] ss:$24 sps:$4 sm:$0xff]  }
 0x2cc   : > { %9987 = vst [vmem:[#allocation29_spill] sm:$0xff] %v7949_v29  ;;  %v7955_v31 = vld [vmem:[#allocation9 + $0x184] ss:$24 sps:$4 sm:$0xff]   ;;  %v7958_v32 = vld [vmem:[#allocation9 + $0x98] ss:$24 sps:$4 sm:$0xff]  }
 0x2cd   : > { %3044 = vmatpush1.bf16.msra.mxu1 %v7934_v24  ;;  %9988 = vst [vmem:[#allocation30_spill] sm:$0xff] %v7958_v32  ;;  %v7961_v33 = vld [vmem:[#allocation9 + $0xcc] ss:$24 sps:$4 sm:$0xff]   ;;  %v7964_v34 = vld [vmem:[#allocation9 + $0x180] ss:$24 sps:$4 sm:$0xff]  }
 0x2ce   : > { %3005 = vmatpush1.bf16.msra.mxu0 %v7903_v13  ;;  %3045 = vmatprep.subr.bf16.mxu1 %v7942_v27  ;;  %9989 = vst [vmem:[#allocation31_spill] sm:$0xff] %v7961_v33  ;;  %v7966_v35 = vld [vmem:[#allocation9 + $0x1b4] ss:$24 sps:$4 sm:$0xff]   ;;  %v7970_v36 = vld [vmem:[#allocation9 + $0xc8] ss:$24 sps:$4 sm:$0xff]   ;;  %s10328_s22 = smov %s10327_s13 }
 0x2cf   : > { %3006 = vmatprep.subr.bf16.mxu0 %v7906_v14  ;;  %9990 = vst [vmem:[#allocation32_spill] sm:$0xff] %v7970_v36  ;;  %v7973_v37 = vld [vmem:[#allocation9 + $0xfc] ss:$24 sps:$4 sm:$0xff]   ;;  %v7976_v38 = vld [vmem:[#allocation9 + $0x1b0] ss:$24 sps:$4 sm:$0xff]  }
 0x2d0   : > { %9991 = vst [vmem:[#allocation33_spill] sm:$0xff] %v7973_v37  ;;  %v7979_v39 = vld [vmem:[#allocation9 + $0x1e4] ss:$24 sps:$4 sm:$0xff]   ;;  %v7982_v40 = vld [vmem:[#allocation9 + $0xf8] ss:$24 sps:$4 sm:$0xff]  }
 0x2d1   : > { %3046 = vmatpush1.bf16.msra.mxu1 %v7946_v28  ;;  %9992 = vst [vmem:[#allocation34_spill] sm:$0xff] %v7982_v40  ;;  %v7985_v41 = vld [vmem:[#allocation9 + $0x12c] ss:$24 sps:$4 sm:$0xff]   ;;  %v7988_v42 = vld [vmem:[#allocation9 + $0x1e0] ss:$24 sps:$4 sm:$0xff]  }
 0x2d2   : > { %3007 = vmatpush1.bf16.msra.mxu0 %v7909_v15  ;;  %3047 = vmatprep.subr.bf16.mxu1 %v7949_v29  ;;  %9993 = vst [vmem:[#allocation35_spill] sm:$0xff] %v7985_v41  ;;  %v7990_v43 = vld [vmem:[#allocation9 + $0x214] ss:$24 sps:$4 sm:$0xff]   ;;  %v7994_v44 = vld [vmem:[#allocation9 + $0x128] ss:$24 sps:$4 sm:$0xff]  }
 0x2d3   : > { %3008 = vmatprep.subr.bf16.mxu0 %v7912_v16  ;;  %9994 = vst [vmem:[#allocation36_spill] sm:$0xff] %v7994_v44  ;;  %v7997_v45 = vld [vmem:[#allocation9 + $0x15c] ss:$24 sps:$4 sm:$0xff]   ;;  %v8000_v46 = vld [vmem:[#allocation9 + $0x210] ss:$24 sps:$4 sm:$0xff]  }
 0x2d4   : > { %9995 = vst [vmem:[#allocation37_spill] sm:$0xff] %v7997_v45  ;;  %v8003_v47 = vld [vmem:[#allocation9 + $0x244] ss:$24 sps:$4 sm:$0xff]   ;;  %v8006_v48 = vld [vmem:[#allocation9 + $0x158] ss:$24 sps:$4 sm:$0xff]  }
 0x2d5   : > { %3048 = vmatpush1.bf16.msra.mxu1 %v7958_v32  ;;  %9996 = vst [vmem:[#allocation38_spill] sm:$0xff] %v8006_v48  ;;  %v8009_v49 = vld [vmem:[#allocation9 + $0x18c] ss:$24 sps:$4 sm:$0xff]   ;;  %v8012_v51 = vld [vmem:[#allocation9 + $0x240] ss:$24 sps:$4 sm:$0xff]  }
 0x2d6   : > { %3009 = vmatpush1.bf16.msra.mxu0 %v7915_v17  ;;  %3049 = vmatprep.subr.bf16.mxu1 %v7961_v33  ;;  %9997 = vst [vmem:[#allocation39_spill] sm:$0xff] %v8009_v49  ;;  %v8014_v53 = vld [vmem:[#allocation9 + $0x274] ss:$24 sps:$4 sm:$0xff]   ;;  %v8018_v54 = vld [vmem:[#allocation9 + $0x188] ss:$24 sps:$4 sm:$0xff]  }
 0x2d7   : > { %3010 = vmatprep.subr.bf16.mxu0 %v7918_v18  ;;  %9998 = vst [vmem:[#allocation40_spill] sm:$0xff] %v8018_v54  ;;  %v8021_v55 = vld [vmem:[#allocation9 + $0x1bc] ss:$24 sps:$4 sm:$0xff]   ;;  %v8024_v56 = vld [vmem:[#allocation9 + $0x270] ss:$24 sps:$4 sm:$0xff]  }
 0x2d8   : > { %9999 = vst [vmem:[#allocation41_spill] sm:$0xff] %v8021_v55  ;;  %v8027_v57 = vld [vmem:[#allocation9 + $0x2a4] ss:$24 sps:$4 sm:$0xff]   ;;  %v8030_v58 = vld [vmem:[#allocation9 + $0x1b8] ss:$24 sps:$4 sm:$0xff]  }
 0x2d9   : > { %3050 = vmatpush1.bf16.msra.mxu1 %v7970_v36  ;;  %10000 = vst [vmem:[#allocation42_spill] sm:$0xff] %v8030_v58  ;;  %v8033_v59 = vld [vmem:[#allocation9 + $0x1ec] ss:$24 sps:$4 sm:$0xff]   ;;  %v8036_v60 = vld [vmem:[#allocation9 + $0x2a0] ss:$24 sps:$4 sm:$0xff]  }
 0x2da   : > { %3011 = vmatpush1.bf16.msra.mxu0 %v7925_v21  ;;  %3051 = vmatprep.subr.bf16.mxu1 %v7973_v37  ;;  %10001 = vst [vmem:[#allocation43_spill] sm:$0xff] %v8033_v59  ;;  %v8038_v61 = vld [vmem:[#allocation9 + $0x2d4] ss:$24 sps:$4 sm:$0xff]   ;;  %v8042_v62 = vld [vmem:[#allocation9 + $0x1e8] ss:$24 sps:$4 sm:$0xff]  }
 0x2db   : > { %3012 = vmatprep.subr.bf16.mxu0 %v7929_v22  ;;  %10002 = vst [vmem:[#allocation44_spill] sm:$0xff] %v8042_v62  ;;  %v8045_v63 = vld [vmem:[#allocation9 + $0x21c] ss:$24 sps:$4 sm:$0xff]   ;;  %v8048_v0 = vld [vmem:[#allocation9 + $0x2d0] ss:$24 sps:$4 sm:$0xff]  }
 0x2dc   : > { %10003 = vst [vmem:[#allocation45_spill] sm:$0xff] %v8045_v63  ;;  %v8050_v1 = vld [vmem:[#allocation9 + $0x14] ss:$24 sps:$4 sm:$0xff]   ;;  %v8054_v2 = vld [vmem:[#allocation9 + $0x218] ss:$24 sps:$4 sm:$0xff]  }
 0x2dd   : > { %3052 = vmatpush1.bf16.msra.mxu1 %v7982_v40  ;;  %10004 = vst [vmem:[#allocation46_spill] sm:$0xff] %v8054_v2  ;;  %v8057_v3 = vld [vmem:[#allocation9 + $0x24c] ss:$24 sps:$4 sm:$0xff]   ;;  %v8060_v4 = vld [vmem:[#allocation9 + $0x10] ss:$24 sps:$4 sm:$0xff]  }
 0x2de   : > { %3013 = vmatpush1.bf16.msra.mxu0 %v7938_v25  ;;  %3053 = vmatprep.subr.bf16.mxu1 %v7985_v41  ;;  %10005 = vst [vmem:[#allocation47_spill] sm:$0xff] %v8057_v3  ;;  %10006 = vst [vmem:[#allocation48_spill] sm:$0xff] %v8060_v4  ;;  %v8063_v5 = vld [vmem:[#allocation9 + $0x44] ss:$24 sps:$4 sm:$0xff]   ;;  %v8066_v6 = vld [vmem:[#allocation9 + $0x248] ss:$24 sps:$4 sm:$0xff]  }
 0x2df   : > { %3014 = vmatprep.subr.bf16.mxu0 %v7940_v26  ;;  %10007 = vst [vmem:[#allocation49_spill] sm:$0xff] %v8063_v5  ;;  %10008 = vst [vmem:[#allocation50_spill] sm:$0xff] %v8066_v6  ;;  %v2518_v9 = vld [vmem:[%s9693_s5] sm:$0x3] }
 0x2e0   : > { %v8072_v52 = vld [vmem:[#allocation9 + $0x27c] ss:$24 sps:$4 sm:$0xff]   ;;  %v8074_v50 = vadd.s32 4294967295, %v2518_v9 }
 0x2e1   : > { %3054 = vmatpush1.bf16.msra.mxu1 %v7994_v44  ;;  %10009 = vst [vmem:[#allocation51_spill] sm:$0xff] %v8072_v52 }
 0x2e2   : > { %3015 = vmatpush1.bf16.msra.mxu0 %v7952_v30  ;;  %3055 = vmatprep.subr.bf16.mxu1 %v7997_v45  ;;  %10010 = vst [vmem:[#allocation52_spill] sm:$0xff] %v8074_v50  ;;  %vm3262_vm0 = vcmp.eq.s32.totalorder %v8074_v50, 0  ;;  %v8099_v50 = vld [vmem:[#allocation9 + $0x2a8] ss:$24 sps:$4 sm:$0xff]  }
 0x2e3   : > { %3016 = vmatprep.subr.bf16.mxu0 %v7955_v31  ;;  %10018 = vst [vmem:[#allocation59_spill] sm:$0xff] %v8099_v50 }
 0x2e5   : > { %3056 = vmatpush1.bf16.msra.mxu1 %v8006_v48 }
 0x2e6   : > { %3017 = vmatpush1.bf16.msra.mxu0 %v7964_v34  ;;  %3057 = vmatprep.subr.bf16.mxu1 %v8009_v49 }
 0x2e7   : > { %3018 = vmatprep.subr.bf16.mxu0 %v7966_v35 }
 0x2e9   : > { %3058 = vmatpush1.bf16.msra.mxu1 %v8018_v54 }
 0x2ea   : > { %3019 = vmatpush1.bf16.msra.mxu0 %v7976_v38  ;;  %3059 = vmatprep.subr.bf16.mxu1 %v8021_v55 }
 0x2eb   : > { %3020 = vmatprep.subr.bf16.mxu0 %v7979_v39 }
 0x2ed   : > { %3060 = vmatpush1.bf16.msra.mxu1 %v8030_v58 }
 0x2ee   : > { %3021 = vmatpush1.bf16.msra.mxu0 %v7988_v42  ;;  %3061 = vmatprep.subr.bf16.mxu1 %v8033_v59  ;;  %v8090_v59 = vld [vmem:[#allocation9 + $0x2ac] ss:$24 sps:$4 sm:$0xff]  }
 0x2ef   : > { %3022 = vmatprep.subr.bf16.mxu0 %v7990_v43  ;;  %10015 = vst [vmem:[#allocation56_spill] sm:$0xff] %v8090_v59 }
 0x2f1   : > { %3062 = vmatpush1.bf16.msra.mxu1 %v8042_v62  ;;  %v8078_v62 = vld [vmem:[#allocation9 + $0x40] ss:$24 sps:$4 sm:$0xff]  }
 0x2f2   : > { %3023 = vmatpush1.bf16.msra.mxu0 %v8000_v46  ;;  %3063 = vmatprep.subr.bf16.mxu1 %v8045_v63  ;;  %v10011_v63 = vmov 0   ;;  %10012 = vst [vmem:[#allocation53_spill] sm:$0xff] %v8078_v62 }
 0x2f3   : > { %3024 = vmatprep.subr.bf16.mxu0 %v8003_v47  ;;  %v3263_v9 = vsel %vm3262_vm0, 1, %v10011_v63 }
 0x2f4   : > { %3265 = vperm.xlu0 %6511, %v3263_v9   ;;  %v8108_v9 = vld [vmem:[#allocation9 + $0xd4] ss:$24 sps:$4 sm:$0xff]  }
 0x2f5   : > { %3064 = vmatpush1.bf16.msra.mxu1 %v8054_v2  ;;  %v8083_v2 = vld [vmem:[#allocation9 + $0x74] ss:$24 sps:$4 sm:$0xff]   ;;  %10021 = vst [vmem:[#allocation62_spill] sm:$0xff] %v8108_v9 }
 0x2f6   : > { %3025 = vmatpush1.bf16.msra.mxu0 %v8012_v51  ;;  %3065 = vmatprep.subr.bf16.mxu1 %v8057_v3  ;;  %10013 = vst [vmem:[#allocation54_spill] sm:$0xff] %v8083_v2  ;;  %v8086_v3 = vld [vmem:[#allocation9 + $0x278] ss:$24 sps:$4 sm:$0xff]  }
 0x2f7   : > { %3026 = vmatprep.subr.bf16.mxu0 %v8014_v53  ;;  %10014 = vst [vmem:[#allocation55_spill] sm:$0xff] %v8086_v3 }
 0x2f9   : > { %3066 = vmatpush1.bf16.msra.mxu1 %v8066_v6  ;;  %v8102_v6 = vld [vmem:[#allocation9 + $0x2dc] ss:$24 sps:$4 sm:$0xff]  }
 0x2fa   : > { %3027 = vmatpush1.bf16.msra.mxu0 %v8024_v56  ;;  %3067 = vmatprep.subr.bf16.mxu1 %v8072_v52  ;;  %10019 = vst [vmem:[#allocation60_spill] sm:$0xff] %v8102_v6  ;;  %v8105_v52 = vld [vmem:[#allocation9 + $0xa0] ss:$24 sps:$4 sm:$0xff]  }
 0x2fb   : > { %3028 = vmatprep.subr.bf16.mxu0 %v8027_v57  ;;  %10020 = vst [vmem:[#allocation61_spill] sm:$0xff] %v8105_v52 }
 0x2fd   : > { %3068 = vmatpush1.bf16.msra.mxu1 %v8086_v3 }
 0x2fe   : > { %3029 = vmatpush1.bf16.msra.mxu0 %v8036_v60  ;;  %3069 = vmatprep.subr.bf16.mxu1 %v8090_v59  ;;  %v8118_v59 = vld [vmem:[#allocation9 + $0x104] ss:$24 sps:$4 sm:$0xff]  }
 0x2ff   : > { %3030 = vmatprep.subr.bf16.mxu0 %v8038_v61  ;;  %10024 = vst [vmem:[#allocation65_spill] sm:$0xff] %v8118_v59 }
 0x301   : > { %3070 = vmatpush1.bf16.msra.mxu1 %v8099_v50 }
 0x302   : > { %3031 = vmatpush1.bf16.msra.mxu0 %v8048_v0  ;;  %3071 = vmatprep.subr.bf16.mxu1 %v8102_v6 }
 0x303   : > { %3082 = vmatprep.subr.bf16.mxu0 %v8050_v1 }
 0x305   : > { %3033 = vmatmul.mubr.bf16.vlgmr.msra.gmra.mrb[0].mxu0 %v10011_v63 }
 0x306   : > { %3083 = vmatpush1.bf16.msra.mxu0 %v8060_v4  ;;  %3114 = vmatprep.mubr.bf16.mxu0 %v10011_v63  ;;  %v8093_v4 = vld [vmem:[#allocation9 + $0x70] ss:$24 sps:$4 sm:$0xff]  }
 0x307   : > { %3084 = vmatprep.subr.bf16.mxu0 %v8063_v5  ;;  %10016 = vst [vmem:[#allocation57_spill] sm:$0xff] %v8093_v4  ;;  %v8096_v5 = vld [vmem:[#allocation9 + $0xa4] ss:$24 sps:$4 sm:$0xff]  }
 0x308   : > { %10017 = vst [vmem:[#allocation58_spill] sm:$0xff] %v8096_v5 }
 0x30a   : > { %3085 = vmatpush1.bf16.msra.mxu0 %v8078_v62  ;;  %v8115_v62 = vld [vmem:[#allocation9 + $0xd0] ss:$24 sps:$4 sm:$0xff]  }
 0x30b   : > { %3086 = vmatprep.subr.bf16.mxu0 %v8083_v2  ;;  %v8111_v2 = vld [vmem:[#allocation9 + $0x2d8] ss:$24 sps:$4 sm:$0xff]   ;;  %10023 = vst [vmem:[#allocation64_spill] sm:$0xff] %v8115_v62 }
 0x30c   : > { %10022 = vst [vmem:[#allocation63_spill] sm:$0xff] %v8111_v2  ;;  %3072 = vmatpush1.bf16.msra.mxu1 %v8111_v2 }
 0x30d   : > { %3272 = vmatprep.subr.bf16.mxu1 %v7885_v7 }
 0x30e   : > { %3087 = vmatpush1.bf16.msra.mxu0 %v8093_v4  ;;  %v8127_v4 = vld [vmem:[#allocation9 + $0x134] ss:$24 sps:$4 sm:$0xff]  }
 0x30f   : > { %3088 = vmatprep.subr.bf16.mxu0 %v8096_v5  ;;  %v8123_v5 = vld [vmem:[#allocation9 + $0x100] ss:$24 sps:$4 sm:$0xff]   ;;  %3074 = vmatmul.mubr.bf16.vlgmr.msra.gmra.mrb[0].mxu1 %v10011_v63  ;;  %10026 = vst [vmem:[#allocation67_spill] sm:$0xff] %v8127_v4 }
 0x310   : > { %10025 = vst [vmem:[#allocation66_spill] sm:$0xff] %v8123_v5  ;;  %3273 = vmatpush1.bf16.msra.mxu1 %v7887_v8 }
 0x311   : > { %3274 = vmatprep.subr.bf16.mxu1 %v7892_v10 }
 0x312   : > { %3089 = vmatpush1.bf16.msra.mxu0 %v8105_v52  ;;  %v8135_v52 = vld [vmem:[#allocation9 + $0x164] ss:$24 sps:$4 sm:$0xff]  }
 0x313   : > { %3090 = vmatprep.subr.bf16.mxu0 %v8108_v9  ;;  %v8132_v9 = vld [vmem:[#allocation9 + $0x130] ss:$24 sps:$4 sm:$0xff]   ;;  %10028 = vst [vmem:[#allocation69_spill] sm:$0xff] %v8135_v52 }
 0x314   : > { %10027 = vst [vmem:[#allocation68_spill] sm:$0xff] %v8132_v9  ;;  %3275 = vmatpush1.bf16.msra.mxu1 %v7896_v11 }
 0x315   : > { %3276 = vmatprep.subr.bf16.mxu1 %v7900_v12 }
 0x316   : > { %3091 = vmatpush1.bf16.msra.mxu0 %v8115_v62  ;;  %v8143_v62 = vld [vmem:[#allocation9 + $0x194] ss:$24 sps:$4 sm:$0xff]  }
 0x317   : > { %3092 = vmatprep.subr.bf16.mxu0 %v8118_v59  ;;  %v8140_v59 = vld [vmem:[#allocation9 + $0x160] ss:$24 sps:$4 sm:$0xff]   ;;  %10030 = vst [vmem:[#allocation71_spill] sm:$0xff] %v8143_v62 }
 0x318   : > { %10029 = vst [vmem:[#allocation70_spill] sm:$0xff] %v8140_v59  ;;  %3277 = vmatpush1.bf16.msra.mxu1 %v7903_v13 }
 0x319   : > { %3278 = vmatprep.subr.bf16.mxu1 %v7906_v14 }
 0x31a   : > { %3093 = vmatpush1.bf16.msra.mxu0 %v8123_v5  ;;  %v8151_v5 = vld [vmem:[#allocation9 + $0x1c4] ss:$24 sps:$4 sm:$0xff]  }
 0x31b   : > { %3094 = vmatprep.subr.bf16.mxu0 %v8127_v4  ;;  %v8148_v4 = vld [vmem:[#allocation9 + $0x190] ss:$24 sps:$4 sm:$0xff]   ;;  %10032 = vst [vmem:[#allocation73_spill] sm:$0xff] %v8151_v5 }
 0x31c   : > { %10031 = vst [vmem:[#allocation72_spill] sm:$0xff] %v8148_v4  ;;  %3279 = vmatpush1.bf16.msra.mxu1 %v7909_v15 }
 0x31d   : > { %3280 = vmatprep.subr.bf16.mxu1 %v7912_v16 }
 0x31e   : > { %3095 = vmatpush1.bf16.msra.mxu0 %v8132_v9  ;;  %v8159_v9 = vld [vmem:[#allocation9 + $0x1f4] ss:$24 sps:$4 sm:$0xff]  }
 0x31f   : > { %3096 = vmatprep.subr.bf16.mxu0 %v8135_v52  ;;  %v8156_v52 = vld [vmem:[#allocation9 + $0x1c0] ss:$24 sps:$4 sm:$0xff]   ;;  %10034 = vst [vmem:[#allocation75_spill] sm:$0xff] %v8159_v9 }
 0x320   : > { %10033 = vst [vmem:[#allocation74_spill] sm:$0xff] %v8156_v52  ;;  %3281 = vmatpush1.bf16.msra.mxu1 %v7915_v17 }
 0x321   : > { %3282 = vmatprep.subr.bf16.mxu1 %v7918_v18 }
 0x322   : > { %3097 = vmatpush1.bf16.msra.mxu0 %v8140_v59  ;;  %v8167_v59 = vld [vmem:[#allocation9 + $0x224] ss:$24 sps:$4 sm:$0xff]  }
 0x323   : > { %3098 = vmatprep.subr.bf16.mxu0 %v8143_v62  ;;  %v8164_v62 = vld [vmem:[#allocation9 + $0x1f0] ss:$24 sps:$4 sm:$0xff]   ;;  %10036 = vst [vmem:[#allocation77_spill] sm:$0xff] %v8167_v59 }
 0x324   : > { %10035 = vst [vmem:[#allocation76_spill] sm:$0xff] %v8164_v62  ;;  %3283 = vmatpush1.bf16.msra.mxu1 %v7925_v21 }
 0x325   : > { %3284 = vmatprep.subr.bf16.mxu1 %v7929_v22 }
 0x326   : > { %3099 = vmatpush1.bf16.msra.mxu0 %v8148_v4  ;;  %v8175_v4 = vld [vmem:[#allocation9 + $0x254] ss:$24 sps:$4 sm:$0xff]  }
 0x327   : > { %3100 = vmatprep.subr.bf16.mxu0 %v8151_v5  ;;  %v8172_v5 = vld [vmem:[#allocation9 + $0x220] ss:$24 sps:$4 sm:$0xff]   ;;  %10038 = vst [vmem:[#allocation79_spill] sm:$0xff] %v8175_v4 }
 0x328   : > { %10037 = vst [vmem:[#allocation78_spill] sm:$0xff] %v8172_v5  ;;  %3285 = vmatpush1.bf16.msra.mxu1 %v7938_v25 }
 0x329   : > { %3286 = vmatprep.subr.bf16.mxu1 %v7940_v26 }
 0x32a   : > { %3101 = vmatpush1.bf16.msra.mxu0 %v8156_v52  ;;  %v8183_v52 = vld [vmem:[#allocation9 + $0x284] ss:$24 sps:$4 sm:$0xff]  }
 0x32b   : > { %3102 = vmatprep.subr.bf16.mxu0 %v8159_v9  ;;  %v8180_v9 = vld [vmem:[#allocation9 + $0x250] ss:$24 sps:$4 sm:$0xff]   ;;  %10039 = vst [vmem:[#allocation80_spill] sm:$0xff] %v8183_v52 }
 0x32c   : > { %3287 = vmatpush1.bf16.msra.mxu1 %v7952_v30 }
 0x32d   : > { %3288 = vmatprep.subr.bf16.mxu1 %v7955_v31 }
 0x32e   : > { %3103 = vmatpush1.bf16.msra.mxu0 %v8164_v62  ;;  %v8191_v62 = vld [vmem:[#allocation9 + $0x2b4] ss:$24 sps:$4 sm:$0xff]  }
 0x32f   : > { %3104 = vmatprep.subr.bf16.mxu0 %v8167_v59  ;;  %v8188_v59 = vld [vmem:[#allocation9 + $0x280] ss:$24 sps:$4 sm:$0xff]  }
 0x330   : > { %3289 = vmatpush1.bf16.msra.mxu1 %v7964_v34 }
 0x331   : > { %3290 = vmatprep.subr.bf16.mxu1 %v7966_v35 }
 0x332   : > { %3105 = vmatpush1.bf16.msra.mxu0 %v8172_v5  ;;  %v8199_v5 = vld [vmem:[#allocation9 + $0x2e4] ss:$24 sps:$4 sm:$0xff]  }
 0x333   : > { %3106 = vmatprep.subr.bf16.mxu0 %v8175_v4  ;;  %v8196_v4 = vld [vmem:[#allocation9 + $0x2b0] ss:$24 sps:$4 sm:$0xff]  }
 0x334   : > { %3291 = vmatpush1.bf16.msra.mxu1 %v7976_v38 }
 0x335   : > { %3292 = vmatprep.subr.bf16.mxu1 %v7979_v39 }
 0x336   : > { %3107 = vmatpush1.bf16.msra.mxu0 %v8180_v9 }
 0x337   : > { %3108 = vmatprep.subr.bf16.mxu0 %v8183_v52  ;;  %v8204_v52 = vld [vmem:[#allocation9 + $0x2e0] ss:$24 sps:$4 sm:$0xff]  }
 0x338   : > { %3293 = vmatpush1.bf16.msra.mxu1 %v7988_v42 }
 0x339   : > { %3294 = vmatprep.subr.bf16.mxu1 %v7990_v43 }
 0x33a   : > { %3109 = vmatpush1.bf16.msra.mxu0 %v8188_v59 }
 0x33b   : > { %3110 = vmatprep.subr.bf16.mxu0 %v8191_v62 }
 0x33c   : > { %3295 = vmatpush1.bf16.msra.mxu1 %v8000_v46 }
 0x33d   : > { %3296 = vmatprep.subr.bf16.mxu1 %v8003_v47 }
 0x33e   : > { %3111 = vmatpush1.bf16.msra.mxu0 %v8196_v4 }
 0x33f   : > { %3112 = vmatprep.subr.bf16.mxu0 %v8199_v5 }
 0x340   : > { %3297 = vmatpush1.bf16.msra.mxu1 %v8012_v51 }
 0x341   : > { %3298 = vmatprep.subr.bf16.mxu1 %v8014_v53 }
 0x342   : > { %3113 = vmatpush1.bf16.msra.mxu0 %v8204_v52 }
 0x343   : > { %3313 = vmatprep.subr.bf16.mxu0 %v7920_v19 }
 0x344   : > { %3299 = vmatpush1.bf16.msra.mxu1 %v8024_v56 }
 0x345   : > { %3115 = vmatmul.mubr.bf16.vlgmr.msra.gmra.mrb[4].mxu0 %v10011_v63  ;;  %3300 = vmatprep.subr.bf16.mxu1 %v8027_v57 }
 0x346   : > { %3314 = vmatpush1.bf16.msra.mxu0 %v7922_v20 }
 0x347   : > { %3315 = vmatprep.subr.bf16.mxu0 %v7932_v23 }
 0x348   : > { %3301 = vmatpush1.bf16.msra.mxu1 %v8036_v60 }
 0x349   : > { %3302 = vmatprep.subr.bf16.mxu1 %v8038_v61 }
 0x34a   : > { %3316 = vmatpush1.bf16.msra.mxu0 %v7934_v24 }
 0x34b   : > { %3317 = vmatprep.subr.bf16.mxu0 %v7942_v27 }
 0x34c   : > { %3303 = vmatpush1.bf16.msra.mxu1 %v8048_v0 }
 0x34d   : > { %3354 = vmatprep.subr.bf16.mxu1 %v8050_v1 }
 0x34e   : > { %3318 = vmatpush1.bf16.msra.mxu0 %v7946_v28 }
 0x34f   : > { %3319 = vmatprep.subr.bf16.mxu0 %v7949_v29 }
 0x352   : > { %3320 = vmatpush1.bf16.msra.mxu0 %v7958_v32  ;;  %v3168_v32 = vld [vmem:[#allocation2 + $0x30] ss:$8 sm:$0x3] }
 0x353   : > { %3321 = vmatprep.subr.bf16.mxu0 %v7961_v33 }
 0x356   : > { %3322 = vmatpush1.bf16.msra.mxu0 %v7970_v36  ;;  %v10040_v36 = vld [vmem:[#allocation43_spill] sm:$0xff] }
 0x357   : > { %3323 = vmatprep.subr.bf16.mxu0 %v7973_v37  ;;  %v10041_v37 = vld [vmem:[#allocation44_spill] sm:$0xff] }
 0x35a   : > { %3324 = vmatpush1.bf16.msra.mxu0 %v7982_v40  ;;  %v10042_v40 = vld [vmem:[#allocation45_spill] sm:$0xff] }
 0x35b   : > { %3325 = vmatprep.subr.bf16.mxu0 %v7985_v41  ;;  %v10043_v41 = vld [vmem:[#allocation46_spill] sm:$0xff] }
 0x35e   : > { %3326 = vmatpush1.bf16.msra.mxu0 %v7994_v44  ;;  %v10044_v44 = vld [vmem:[#allocation47_spill] sm:$0xff] }
 0x35f   : > { %3327 = vmatprep.subr.bf16.mxu0 %v7997_v45  ;;  %v10045_v45 = vld [vmem:[#allocation50_spill] sm:$0xff] }
 0x362   : > { %3328 = vmatpush1.bf16.msra.mxu0 %v8006_v48  ;;  %v10046_v48 = vld [vmem:[#allocation51_spill] sm:$0xff] }
 0x363   : > { %3329 = vmatprep.subr.bf16.mxu0 %v8009_v49  ;;  %v10048_v49 = vld [vmem:[#allocation23_spill] sm:$0xff] }
 0x364   : > { %v3184_v24 = vrot.slane %v3168_v32, %v10048_v49 }
 0x366   : > { %3330 = vmatpush1.bf16.msra.mxu0 %v8018_v54  ;;  %v10047_v54 = vld [vmem:[#allocation56_spill] sm:$0xff] }
 0x367   : > { %3331 = vmatprep.subr.bf16.mxu0 %v8021_v55  ;;  %v3123_v55 = vld [vmem:[#allocation2] ss:$8 sm:$0x3] }
 0x36a   : > { %3332 = vmatpush1.bf16.msra.mxu0 %v8030_v58 }
 0x36b   : > { %3333 = vmatprep.subr.bf16.mxu0 %v10040_v36 }
 0x36e   : > { %3334 = vmatpush1.bf16.msra.mxu0 %v10041_v37 }
 0x36f   : > { %3335 = vmatprep.subr.bf16.mxu0 %v10042_v40 }
 0x372   : > { %3336 = vmatpush1.bf16.msra.mxu0 %v10043_v41 }
 0x373   : > { %3337 = vmatprep.subr.bf16.mxu0 %v10044_v44 }
 0x376   : > { %3338 = vmatpush1.bf16.msra.mxu0 %v10045_v45 }
 0x377   : > { %3339 = vmatprep.subr.bf16.mxu0 %v10046_v48 }
 0x37a   : > { %3340 = vmatpush1.bf16.msra.mxu0 %v8086_v3  ;;  %v3125_v3 = vld [vmem:[#allocation2 + $0x10] ss:$8 sm:$0x3] }
 0x37b   : > { %3341 = vmatprep.subr.bf16.mxu0 %v10047_v54  ;;  %v3130_v54 = vrot.slane %v3123_v55, %v10048_v49 }
 0x37e   : > { %3342 = vmatpush1.bf16.msra.mxu0 %v8099_v50  ;;  %v3141_v50 = vrot.slane %v3125_v3, %v10048_v49 }
 0x37f   : > { %3343 = vmatprep.subr.bf16.mxu0 %v8102_v6  ;;  %v10049_v6 = vld [vmem:[#allocation24_spill] sm:$0xff] }
 0x380   : > { %v3134_v33 = vrot.slane %v3123_v55, %v10049_v6 }
 0x382   : > { %3344 = vmatpush1.bf16.msra.mxu0 %v8111_v2  ;;  %v3145_v2 = vrot.slane %v3125_v3, %v10049_v6  ;;  %v3188_v3 = vrot.slane %v3168_v32, %v10049_v6 }
 0x383   : > { %3533 = vmatprep.subr.bf16.mxu0 %v7885_v7  ;;  %v10050_v7 = vld [vmem:[#allocation52_spill] sm:$0xff] }
 0x384   : > { %vm3523_vm2 = vcmp.eq.s32.totalorder %v10050_v7, 1 }
 0x3d8   : > { %v3034_v40 = vpop.f32.mrb[0].mxu0 }
 0x3d9   : > { %v3036_v41 = vpop.f32.mrb[1].mxu0 }
 0x3da   : > { %v3038_v37 = vpop.f32.mrb[2].mxu0 }
 0x3db   : > { %v3039_v44 = vpop.f32.mrb[3].mxu0  ;;  %v3524_v37 = vsel %vm3523_vm2, 1, %v10011_v63  ;;  %vm5222_vm2 = vcmask 523264  }
 0x3dc   : > { %v3149_v44 = vsel %vm3148_vm1, %v3130_v54, %v3141_v50  ;;  %3526 = vperm.xlu0 %6511, %v3524_v37  }
 0x3dd   : > { %v3151_v29 = vadd.f32 %v3149_v44, %v3034_v40 }
 0x3df   : > { %v5835_v7 = vmul.f32 -1.442695, %v3151_v29 }
 0x3e1   : > { %6657 = vpow2.f32 %v5835_v7 }
 0x3e2   : > { %v3075_v36 = vpop.f32.mrb[0].mxu1 }
 0x3e3   : > { %v3077_v45 = vpop.f32.mrb[1].mxu1 }
 0x3e4   : > { %v3079_v58 = vpop.f32.mrb[2].mxu1 }
 0x3e5   : > { %v3080_v48 = vpop.f32.mrb[3].mxu1  ;;  %v3166_v58 = vld [vmem:[#allocation2 + $0x20] ss:$8 sm:$0x3] }
 0x3e6   : > { %v3150_v48 = vsel %vm3148_vm1, %v3134_v33, %v3145_v2  ;;  %v3173_v27 = vrot.slane %v3166_v58, %v10048_v49  ;;  %v3177_v55 = vrot.slane %v3166_v58, %v10049_v6 }
 0x3e7   : > { %v3152_v28 = vadd.f32 %v3150_v48, %v3036_v41 }
 0x3e8   : > { %v3191_v63 = vsel %vm3148_vm1, %v3173_v27, %v3184_v24  ;;  %v3192_v50 = vsel %vm3148_vm1, %v3177_v55, %v3188_v3  ;;  %v3208_v24 = vld [vmem:[#allocation2 + $0x40] ss:$8 sm:$0x3]  ;;  %v3210_v27 = vld [vmem:[#allocation2 + $0x50] ss:$8 sm:$0x3] }
 0x3e9   : > { %v5836_v23 = vmul.f32 -1.442695, %v3152_v28  ;;  %v3193_v33 = vadd.f32 %v3191_v63, %v3075_v36  ;;  %v3194_v54 = vadd.f32 %v3192_v50, %v3077_v45  ;;  %v2517_v28 = vld [vmem:[#allocation11] sm:$0x3]  ;;  %v3215_v45 = vrot.slane %v3208_v24, %v10048_v49 }
 0x3ea   : > { %v3226_v63 = vrot.slane %v3210_v27, %v10048_v49  ;;  %v8274_v7 = vrot.slane %v2517_v28, %v10049_v6  ;;  %v3219_v55 = vrot.slane %v3208_v24, %v10049_v6  ;;  %v3230_v3 = vrot.slane %v3210_v27, %v10049_v6 }
 0x3eb   : > { %6659 = vpow2.f32 %v5836_v23  ;;  %v5837_v40 = vmul.f32 -1.442695, %v3193_v33  ;;  %v5838_v41 = vmul.f32 -1.442695, %v3194_v54  ;;  %v6658_v2 = vpop.eup %6657  ;;  %v8269_v23 = vrot.slane %v2517_v28, %v10048_v49 }
 0x3ec   : > { %v3159_v44 = vadd.f32 1.0, %v6658_v2  ;;  %10052 = vst [vmem:[#allocation82_spill] sm:$0xff] %v8274_v7 }
 0x3ed   : > { %6661 = vpow2.f32 %v5837_v40  ;;  %10051 = vst [vmem:[#allocation81_spill] sm:$0xff] %v8269_v23 }
 0x3ee   : > { %6663 = vpow2.f32 %v5838_v41  ;;  %v3233_v41 = vsel %vm3148_vm1, %v3215_v45, %v3226_v63 }
 0x3ef   : > { %6665 = vrcp.f32 %v3159_v44 }
 0x3f5   : > { %v6660_v37 = vpop.eup %6659 }
 0x3f6   : > { %v3160_v48 = vadd.f32 1.0, %v6660_v37 }
 0x3f7   : > { %v6662_v29 = vpop.eup %6661 }
 0x3f8   : > { %6667 = vrcp.f32 %v3160_v48  ;;  %v6664_v32 = vpop.eup %6663  ;;  %v3201_v58 = vadd.f32 1.0, %v6662_v29  ;;  %v3234_v29 = vsel %vm3148_vm1, %v3219_v55, %v3230_v3 }
 0x3f9   : > { %v3202_v36 = vadd.f32 1.0, %v6664_v32  ;;  %v6666_v40 = vpop.eup %6665 }
 0x3fa   : > { %6669 = vrcp.f32 %v3201_v58 }
 0x3fb   : > { %6671 = vrcp.f32 %v3202_v36 }
 0x402   : > { %v6668_v44 = vpop.eup %6667 }
 0x404   : > { %v6670_v58 = vpop.eup %6669 }
 0x405   : > { %v3258_v63 = vmul.f32 0.0, %v6670_v58 }
 0x418   : > { %v3116_v50 = vpop.f32.mrb[4].mxu0 }
 0x419   : > { %v3246_v33 = vadd.f32 %v8269_v23, %v3116_v50  ;;  %v3118_v54 = vpop.f32.mrb[5].mxu0  ;;  %v6672_v50 = vpop.eup %6671  ;;  %v3254_v23 = vsub.f32 1.0, %v6670_v58  ;;  %v10102_v58 = vld [vmem:[#allocation47_spill] sm:$0xff] }
 0x41a   : > { %v3247_v2 = vadd.f32 %v8274_v7, %v3118_v54  ;;  %v3120_v37 = vpop.f32.mrb[6].mxu0  ;;  %v3255_v6 = vsub.f32 1.0, %v6672_v50 }
 0x41b   : > { %v3248_v48 = vmul.f32 %v6666_v40, %v3246_v33  ;;  %v3121_v28 = vpop.f32.mrb[7].mxu0  ;;  %v3259_v37 = vmul.f32 0.0, %v6672_v50  ;;  %v10058_v40 = vld [vmem:[#allocation54_spill] sm:$0xff] }
 0x41c   : > { %v3249_v32 = vmul.f32 %v6668_v44, %v3247_v2  ;;  %v10060_v2 = vld [vmem:[#allocation58_spill] sm:$0xff]  ;;  %v10061_v44 = vld [vmem:[#allocation61_spill] sm:$0xff]  ;;  %v10098_v28 = vld [vmem:[#allocation43_spill] sm:$0xff] }
 0x41d   : > { %v3250_v24 = vadd.f32 %v3248_v48, %v3233_v41  ;;  %v10059_v41 = vld [vmem:[#allocation57_spill] sm:$0xff]  ;;  %v10103_v50 = vld [vmem:[#allocation50_spill] sm:$0xff] }
 0x41e   : > { %v3251_v27 = vadd.f32 %v3249_v32, %v3234_v29  ;;  %v10096_v48 = vld [vmem:[#allocation41_spill] sm:$0xff]  ;;  %v10097_v29 = vld [vmem:[#allocation42_spill] sm:$0xff]  ;;  %v10099_v32 = vld [vmem:[#allocation44_spill] sm:$0xff] }
 0x41f   : > { %6673 = vtanh.f32 %v3250_v24  ;;  %v10100_v24 = vld [vmem:[#allocation45_spill] sm:$0xff] }
 0x420   : > { %6675 = vtanh.f32 %v3251_v27  ;;  %v10101_v27 = vld [vmem:[#allocation46_spill] sm:$0xff] }
 0x429   : > { %v6674_v36 = vpop.eup %6673 }
 0x42a   : > { %v6676_v49 = vpop.eup %6675  ;;  %v3256_v45 = vmul.f32 %v6674_v36, %v3254_v23  ;;  %v10055_v23 = vld [vmem:[#allocation48_spill] sm:$0xff]  ;;  %v10104_v36 = vld [vmem:[#allocation51_spill] sm:$0xff] }
 0x42b   : > { %v3257_v54 = vmul.f32 %v6676_v49, %v3255_v6  ;;  %v10056_v49 = vld [vmem:[#allocation49_spill] sm:$0xff] }
 0x42c   : > { %v8282_v7 = vadd.f32 %v3258_v63, %v3256_v45  ;;  %v10057_v6 = vld [vmem:[#allocation53_spill] sm:$0xff]  ;;  %v10105_v45 = vld [vmem:[#allocation55_spill] sm:$0xff]  ;;  %v10106_v63 = vld [vmem:[#allocation56_spill] sm:$0xff] }
 0x42d   : > { %v8284_v33 = vadd.f32 %v3259_v37, %v3257_v54  ;;  %v10107_v54 = vld [vmem:[#allocation59_spill] sm:$0xff]  ;;  %v10108_v37 = vld [vmem:[#allocation60_spill] sm:$0xff] }
 0x42e   : > { %10053 = vst [vmem:[#allocation83_spill] sm:$0xff] %v8282_v7  ;;  %v8290_v3 = vpack.c.bf16 %v8282_v7, %v8282_v7 }
 0x42f   : > { %10054 = vst [vmem:[#allocation84_spill] sm:$0xff] %v8284_v33  ;;  %v3271_v55 = vpack.c.bf16 %v8284_v33, %v8284_v33 }
 0x431   : > { %3304 = vmatprep.mubr.bf16.mxu1 %v3271_v55  ;;  %3345 = vmatprep.mubr.bf16.mxu0 %v3271_v55 }
 0x432   : > { %3305 = vmatmul.mubr.bf16.vlgmr.msra.gmra.mrb[4].mxu1 %v8290_v3  ;;  %3346 = vmatmul.mubr.bf16.vlgmr.msra.gmra.mrb[8].mxu0 %v8290_v3 }
 0x433   : > { %3355 = vmatpush1.bf16.msra.mxu1 %v10055_v23  ;;  %3386 = vmatprep.mubr.bf16.mxu1 %v3271_v55  ;;  %v10109_v55 = vld [vmem:[#allocation63_spill] sm:$0xff] }
 0x434   : > { %3356 = vmatprep.subr.bf16.mxu1 %v10056_v49  ;;  %3534 = vmatpush1.bf16.msra.mxu0 %v7887_v8  ;;  %v10062_v8 = vld [vmem:[#allocation62_spill] sm:$0xff] }
 0x435   : > { %3535 = vmatprep.subr.bf16.mxu0 %v7892_v10  ;;  %v10063_v10 = vld [vmem:[#allocation64_spill] sm:$0xff] }
 0x437   : > { %3357 = vmatpush1.bf16.msra.mxu1 %v10057_v6 }
 0x438   : > { %3358 = vmatprep.subr.bf16.mxu1 %v10058_v40  ;;  %3536 = vmatpush1.bf16.msra.mxu0 %v7896_v11  ;;  %v10064_v11 = vld [vmem:[#allocation65_spill] sm:$0xff] }
 0x439   : > { %3537 = vmatprep.subr.bf16.mxu0 %v7900_v12  ;;  %v10065_v12 = vld [vmem:[#allocation66_spill] sm:$0xff] }
 0x43b   : > { %3359 = vmatpush1.bf16.msra.mxu1 %v10059_v41 }
 0x43c   : > { %3360 = vmatprep.subr.bf16.mxu1 %v10060_v2  ;;  %3538 = vmatpush1.bf16.msra.mxu0 %v7903_v13  ;;  %v10066_v13 = vld [vmem:[#allocation67_spill] sm:$0xff] }
 0x43d   : > { %3539 = vmatprep.subr.bf16.mxu0 %v7906_v14  ;;  %v10067_v14 = vld [vmem:[#allocation68_spill] sm:$0xff] }
 0x43f   : > { %3361 = vmatpush1.bf16.msra.mxu1 %v10061_v44 }
 0x440   : > { %3362 = vmatprep.subr.bf16.mxu1 %v10062_v8  ;;  %3540 = vmatpush1.bf16.msra.mxu0 %v7909_v15  ;;  %v10068_v15 = vld [vmem:[#allocation69_spill] sm:$0xff] }
 0x441   : > { %3541 = vmatprep.subr.bf16.mxu0 %v7912_v16  ;;  %v10069_v16 = vld [vmem:[#allocation70_spill] sm:$0xff] }
 0x443   : > { %3363 = vmatpush1.bf16.msra.mxu1 %v10063_v10 }
 0x444   : > { %3364 = vmatprep.subr.bf16.mxu1 %v10064_v11  ;;  %3542 = vmatpush1.bf16.msra.mxu0 %v7915_v17  ;;  %v10070_v17 = vld [vmem:[#allocation71_spill] sm:$0xff] }
 0x445   : > { %3543 = vmatprep.subr.bf16.mxu0 %v7918_v18  ;;  %v10071_v18 = vld [vmem:[#allocation72_spill] sm:$0xff] }
 0x447   : > { %3365 = vmatpush1.bf16.msra.mxu1 %v10065_v12 }
 0x448   : > { %3366 = vmatprep.subr.bf16.mxu1 %v10066_v13  ;;  %3544 = vmatpush1.bf16.msra.mxu0 %v7925_v21  ;;  %v10072_v21 = vld [vmem:[#allocation73_spill] sm:$0xff] }
 0x449   : > { %3545 = vmatprep.subr.bf16.mxu0 %v7929_v22  ;;  %v10073_v22 = vld [vmem:[#allocation74_spill] sm:$0xff] }
 0x44b   : > { %3367 = vmatpush1.bf16.msra.mxu1 %v10067_v14 }
 0x44c   : > { %3368 = vmatprep.subr.bf16.mxu1 %v10068_v15  ;;  %3546 = vmatpush1.bf16.msra.mxu0 %v7938_v25  ;;  %v10074_v25 = vld [vmem:[#allocation75_spill] sm:$0xff] }
 0x44d   : > { %3547 = vmatprep.subr.bf16.mxu0 %v7940_v26  ;;  %v10075_v26 = vld [vmem:[#allocation76_spill] sm:$0xff] }
 0x44f   : > { %3369 = vmatpush1.bf16.msra.mxu1 %v10069_v16 }
 0x450   : > { %3370 = vmatprep.subr.bf16.mxu1 %v10070_v17  ;;  %3548 = vmatpush1.bf16.msra.mxu0 %v7952_v30  ;;  %v10076_v30 = vld [vmem:[#allocation77_spill] sm:$0xff] }
 0x451   : > { %3549 = vmatprep.subr.bf16.mxu0 %v7955_v31  ;;  %v10077_v31 = vld [vmem:[#allocation78_spill] sm:$0xff] }
 0x453   : > { %3371 = vmatpush1.bf16.msra.mxu1 %v10071_v18 }
 0x454   : > { %3372 = vmatprep.subr.bf16.mxu1 %v10072_v21  ;;  %3550 = vmatpush1.bf16.msra.mxu0 %v7964_v34  ;;  %v10078_v34 = vld [vmem:[#allocation79_spill] sm:$0xff] }
 0x455   : > { %3551 = vmatprep.subr.bf16.mxu0 %v7966_v35  ;;  %v10079_v35 = vld [vmem:[#allocation80_spill] sm:$0xff] }
 0x457   : > { %3373 = vmatpush1.bf16.msra.mxu1 %v10073_v22 }
 0x458   : > { %3374 = vmatprep.subr.bf16.mxu1 %v10074_v25  ;;  %3552 = vmatpush1.bf16.msra.mxu0 %v7976_v38  ;;  %v10080_v38 = vld [vmem:[#allocation25_spill] sm:$0xff] }
 0x459   : > { %3553 = vmatprep.subr.bf16.mxu0 %v7979_v39  ;;  %v10081_v39 = vld [vmem:[#allocation26_spill] sm:$0xff] }
 0x45b   : > { %3375 = vmatpush1.bf16.msra.mxu1 %v10075_v26 }
 0x45c   : > { %3376 = vmatprep.subr.bf16.mxu1 %v10076_v30  ;;  %3554 = vmatpush1.bf16.msra.mxu0 %v7988_v42  ;;  %v10082_v42 = vld [vmem:[#allocation27_spill] sm:$0xff] }
 0x45d   : > { %3555 = vmatprep.subr.bf16.mxu0 %v7990_v43  ;;  %v10083_v43 = vld [vmem:[#allocation28_spill] sm:$0xff] }
 0x45f   : > { %3377 = vmatpush1.bf16.msra.mxu1 %v10077_v31 }
 0x460   : > { %3378 = vmatprep.subr.bf16.mxu1 %v10078_v34  ;;  %3556 = vmatpush1.bf16.msra.mxu0 %v8000_v46  ;;  %v10084_v46 = vld [vmem:[#allocation29_spill] sm:$0xff] }
 0x461   : > { %3557 = vmatprep.subr.bf16.mxu0 %v8003_v47  ;;  %v10085_v47 = vld [vmem:[#allocation30_spill] sm:$0xff] }
 0x463   : > { %3379 = vmatpush1.bf16.msra.mxu1 %v8180_v9 }
 0x464   : > { %3380 = vmatprep.subr.bf16.mxu1 %v10079_v35  ;;  %3558 = vmatpush1.bf16.msra.mxu0 %v8012_v51  ;;  %v10087_v51 = vld [vmem:[#allocation32_spill] sm:$0xff] }
 0x465   : > { %3559 = vmatprep.subr.bf16.mxu0 %v8014_v53  ;;  %v10088_v53 = vld [vmem:[#allocation33_spill] sm:$0xff] }
 0x467   : > { %3381 = vmatpush1.bf16.msra.mxu1 %v8188_v59 }
 0x468   : > { %3382 = vmatprep.subr.bf16.mxu1 %v8191_v62  ;;  %3560 = vmatpush1.bf16.msra.mxu0 %v8024_v56  ;;  %v10089_v56 = vld [vmem:[#allocation34_spill] sm:$0xff] }
 0x469   : > { %3561 = vmatprep.subr.bf16.mxu0 %v8027_v57  ;;  %v10091_v57 = vld [vmem:[#allocation36_spill] sm:$0xff] }
 0x46b   : > { %3383 = vmatpush1.bf16.msra.mxu1 %v8196_v4 }
 0x46c   : > { %3384 = vmatprep.subr.bf16.mxu1 %v8199_v5  ;;  %3562 = vmatpush1.bf16.msra.mxu0 %v8036_v60  ;;  %v10092_v60 = vld [vmem:[#allocation37_spill] sm:$0xff] }
 0x46d   : > { %3563 = vmatprep.subr.bf16.mxu0 %v8038_v61  ;;  %v10093_v61 = vld [vmem:[#allocation38_spill] sm:$0xff] }
 0x46f   : > { %3385 = vmatpush1.bf16.msra.mxu1 %v8204_v52 }
 0x470   : > { %3574 = vmatprep.subr.bf16.mxu1 %v7920_v19  ;;  %3564 = vmatpush1.bf16.msra.mxu0 %v8048_v0  ;;  %v10086_v19 = vld [vmem:[#allocation31_spill] sm:$0xff] }
 0x471   : > { %3615 = vmatprep.subr.bf16.mxu0 %v8050_v1  ;;  %v10094_v0 = vld [vmem:[#allocation39_spill] sm:$0xff]  ;;  %v10095_v1 = vld [vmem:[#allocation40_spill] sm:$0xff] }
 0x472   : > { %3387 = vmatmul.mubr.bf16.vlgmr.msra.gmra.mrb[8].mxu1 %v8290_v3  ;;  %v8390_v3 = vld [vmem:[#allocation9 + $0x4] ss:$24 sps:$4 sm:$0xff]  }
 0x473   : > { %3575 = vmatpush1.bf16.msra.mxu1 %v7922_v20  ;;  %v10090_v20 = vld [vmem:[#allocation35_spill] sm:$0xff]  ;;  %10110 = vst [vmem:[#allocation48_spill] sm:$0xff] %v8390_v3 }
 0x474   : > { %3576 = vmatprep.subr.bf16.mxu1 %v10080_v38 }
 0x477   : > { %3577 = vmatpush1.bf16.msra.mxu1 %v10081_v39 }
 0x478   : > { %3578 = vmatprep.subr.bf16.mxu1 %v10082_v42 }
 0x47b   : > { %3579 = vmatpush1.bf16.msra.mxu1 %v10083_v43 }
 0x47c   : > { %3580 = vmatprep.subr.bf16.mxu1 %v10084_v46 }
 0x47f   : > { %3581 = vmatpush1.bf16.msra.mxu1 %v10085_v47 }
 0x480   : > { %3582 = vmatprep.subr.bf16.mxu1 %v10086_v19 }
 0x483   : > { %3583 = vmatpush1.bf16.msra.mxu1 %v10087_v51 }
 0x484   : > { %3584 = vmatprep.subr.bf16.mxu1 %v10088_v53  ;;  %v3396_v53 = vld [vmem:[#allocation2 + $0x1] ss:$8 sm:$0x3] }
 0x487   : > { %3585 = vmatpush1.bf16.msra.mxu1 %v10089_v56  ;;  %v3398_v56 = vld [vmem:[#allocation2 + $0x11] ss:$8 sm:$0x3] }
 0x488   : > { %3586 = vmatprep.subr.bf16.mxu1 %v10090_v20  ;;  %v10111_v20 = vld [vmem:[#allocation23_spill] sm:$0xff] }
 0x48b   : > { %3587 = vmatpush1.bf16.msra.mxu1 %v10091_v57  ;;  %v3403_v57 = vrot.slane %v3396_v53, %v10111_v20 }
 0x48c   : > { %3588 = vmatprep.subr.bf16.mxu1 %v10092_v60  ;;  %v3414_v60 = vrot.slane %v3398_v56, %v10111_v20 }
 0x48f   : > { %3589 = vmatpush1.bf16.msra.mxu1 %v10093_v61  ;;  %v10112_v61 = vld [vmem:[#allocation24_spill] sm:$0xff] }
 0x490   : > { %3590 = vmatprep.subr.bf16.mxu1 %v10094_v0  ;;  %v3407_v0 = vrot.slane %v3396_v53, %v10112_v61 }
 0x493   : > { %3591 = vmatpush1.bf16.msra.mxu1 %v10095_v1  ;;  %v3418_v1 = vrot.slane %v3398_v56, %v10112_v61 }
 0x494   : > { %3592 = vmatprep.subr.bf16.mxu1 %v10096_v48  ;;  %v10113_v48 = vld [vmem:[#allocation52_spill] sm:$0xff] }
 0x495   : > { %vm3784_vm3 = vcmp.eq.s32.totalorder %v10113_v48, 2 }
 0x497   : > { %3593 = vmatpush1.bf16.msra.mxu1 %v10097_v29  ;;  %v10114_v29 = vmov 0  }
 0x498   : > { %3594 = vmatprep.subr.bf16.mxu1 %v10098_v28  ;;  %v3785_v28 = vsel %vm3784_vm3, 1, %v10114_v29  ;;  %vm5296_vm3 = vcmask 82944  }
 0x499   : > { %3787 = vperm.xlu1 %6512, %v3785_v28  }
 0x49b   : > { %3595 = vmatpush1.bf16.msra.mxu1 %v10099_v32  ;;  %v3421_v32 = vsel %vm3148_vm1, %v3403_v57, %v3414_v60 }
 0x49c   : > { %3596 = vmatprep.subr.bf16.mxu1 %v10100_v24  ;;  %v3422_v24 = vsel %vm3148_vm1, %v3407_v0, %v3418_v1 }
 0x49f   : > { %3597 = vmatpush1.bf16.msra.mxu1 %v10101_v27 }
 0x4a0   : > { %3598 = vmatprep.subr.bf16.mxu1 %v10102_v58  ;;  %v3438_v58 = vld [vmem:[#allocation2 + $0x21] ss:$8 sm:$0x3] }
 0x4a3   : > { %3599 = vmatpush1.bf16.msra.mxu1 %v10103_v50  ;;  %v3440_v50 = vld [vmem:[#allocation2 + $0x31] ss:$8 sm:$0x3] }
 0x4a4   : > { %3600 = vmatprep.subr.bf16.mxu1 %v10104_v36  ;;  %v3460_v53 = vrot.slane %v3440_v50, %v10112_v61 }
 0x4a7   : > { %3601 = vmatpush1.bf16.msra.mxu1 %v10105_v45 }
 0x4a8   : > { %3602 = vmatprep.subr.bf16.mxu1 %v10106_v63 }
 0x4ab   : > { %3603 = vmatpush1.bf16.msra.mxu1 %v10107_v54 }
 0x4ac   : > { %3604 = vmatprep.subr.bf16.mxu1 %v10108_v37 }
 0x4af   : > { %3605 = vmatpush1.bf16.msra.mxu1 %v10109_v55 }
 0x4b0   : > { %3794 = vmatprep.subr.bf16.mxu1 %v8390_v3 }
 0x505   : > { %v3306_v38 = vpop.f32.mrb[4].mxu1  ;;  %v3347_v39 = vpop.f32.mrb[8].mxu0 }
 0x506   : > { %v3308_v42 = vpop.f32.mrb[5].mxu1  ;;  %v3349_v43 = vpop.f32.mrb[9].mxu0  ;;  %v3423_v27 = vadd.f32 %v3421_v32, %v3306_v38 }
 0x507   : > { %v3310_v46 = vpop.f32.mrb[6].mxu1  ;;  %v3351_v47 = vpop.f32.mrb[10].mxu0  ;;  %v3424_v36 = vadd.f32 %v3422_v24, %v3308_v42 }
 0x508   : > { %v3311_v19 = vpop.f32.mrb[7].mxu1  ;;  %v3352_v51 = vpop.f32.mrb[11].mxu0  ;;  %v5839_v45 = vmul.f32 -1.442695, %v3423_v27  ;;  %v3445_v46 = vrot.slane %v3438_v58, %v10111_v20  ;;  %v3456_v47 = vrot.slane %v3440_v50, %v10111_v20 }
 0x509   : > { %v5840_v19 = vmul.f32 -1.442695, %v3424_v36  ;;  %v3449_v51 = vrot.slane %v3438_v58, %v10112_v61  ;;  %v3480_v27 = vld [vmem:[#allocation2 + $0x41] ss:$8 sm:$0x3] }
 0x50a   : > { %6677 = vpow2.f32 %v5839_v45  ;;  %v3463_v56 = vsel %vm3148_vm1, %v3445_v46, %v3456_v47  ;;  %v3482_v58 = vld [vmem:[#allocation2 + $0x51] ss:$8 sm:$0x3]  ;;  %v3487_v45 = vrot.slane %v3480_v27, %v10111_v20 }
 0x50b   : > { %6679 = vpow2.f32 %v5840_v19  ;;  %v3464_v57 = vsel %vm3148_vm1, %v3449_v51, %v3460_v53  ;;  %v3465_v38 = vadd.f32 %v3463_v56, %v3347_v39  ;;  %v3498_v46 = vrot.slane %v3482_v58, %v10111_v20  ;;  %v10115_v53 = vld [vmem:[#allocation81_spill] sm:$0xff] }
 0x50c   : > { %v3466_v60 = vadd.f32 %v3464_v57, %v3349_v43  ;;  %v3491_v43 = vrot.slane %v3480_v27, %v10112_v61  ;;  %v3502_v47 = vrot.slane %v3482_v58, %v10112_v61 }
 0x50d   : > { %v5841_v0 = vmul.f32 -1.442695, %v3465_v38 }
 0x50e   : > { %v5842_v42 = vmul.f32 -1.442695, %v3466_v60  ;;  %v3505_v60 = vsel %vm3148_vm1, %v3487_v45, %v3498_v46 }
 0x50f   : > { %6681 = vpow2.f32 %v5841_v0  ;;  %v10116_v0 = vld [vmem:[#allocation82_spill] sm:$0xff] }
 0x510   : > { %6683 = vpow2.f32 %v5842_v42 }
 0x514   : > { %v6678_v1 = vpop.eup %6677 }
 0x515   : > { %v6680_v28 = vpop.eup %6679  ;;  %v3431_v32 = vadd.f32 1.0, %v6678_v1 }
 0x516   : > { %v3432_v24 = vadd.f32 1.0, %v6680_v28 }
 0x517   : > { %6685 = vrcp.f32 %v3431_v32 }
 0x518   : > { %6687 = vrcp.f32 %v3432_v24  ;;  %v3506_v24 = vsel %vm3148_vm1, %v3491_v43, %v3502_v47 }
 0x519   : > { %v6682_v50 = vpop.eup %6681 }
 0x51a   : > { %v6684_v36 = vpop.eup %6683  ;;  %v3473_v39 = vadd.f32 1.0, %v6682_v50 }
 0x51b   : > { %v3474_v19 = vadd.f32 1.0, %v6684_v36 }
 0x51c   : > { %6689 = vrcp.f32 %v3473_v39 }
 0x51d   : > { %6691 = vrcp.f32 %v3474_v19 }
 0x521   : > { %v6686_v38 = vpop.eup %6685 }
 0x522   : > { %v6688_v28 = vpop.eup %6687 }
 0x545   : > { %v3388_v51 = vpop.f32.mrb[8].mxu1 }
 0x546   : > { %v3507_v56 = vadd.f32 %v3388_v51, %v10115_v53  ;;  %v3390_v57 = vpop.f32.mrb[9].mxu1  ;;  %v6690_v51 = vpop.eup %6689 }
 0x547   : > { %v3508_v42 = vadd.f32 %v3390_v57, %v10116_v0  ;;  %v3392_v1 = vpop.f32.mrb[10].mxu1  ;;  %v6692_v53 = vpop.eup %6691  ;;  %v3515_v29 = vsub.f32 1.0, %v6690_v51 }
 0x548   : > { %v3509_v32 = vmul.f32 %v6686_v38, %v3507_v56  ;;  %v3393_v50 = vpop.f32.mrb[11].mxu1  ;;  %v3516_v45 = vsub.f32 1.0, %v6692_v53  ;;  %v3519_v1 = vmul.f32 %v6690_v51, %v8282_v7  ;;  %v3520_v56 = vmul.f32 %v6692_v53, %v8284_v33  ;;  %v8439_v53 = vld [vmem:[#allocation9 + $0x30] ss:$24 sps:$4 sm:$0xff]   ;;  %v8617_v33 = vld [vmem:[#allocation9 + $0x1ec] ss:$24 sps:$4 sm:$0xff]  }
 0x549   : > { %v3510_v27 = vmul.f32 %v6688_v28, %v3508_v42  ;;  %v8563_v42 = vld [vmem:[#allocation9 + $0x3c] ss:$24 sps:$4 sm:$0xff]   ;;  %v8569_v28 = vld [vmem:[#allocation9 + $0x6c] ss:$24 sps:$4 sm:$0xff]   ;;  %v8578_v50 = vld [vmem:[#allocation9 + $0x98] ss:$24 sps:$4 sm:$0xff]  }
 0x54a   : > { %v3511_v58 = vadd.f32 %v3509_v32, %v3505_v60  ;;  %v8450_v60 = vld [vmem:[#allocation9 + $0x94] ss:$24 sps:$4 sm:$0xff]   ;;  %10134 = vst [vmem:[#allocation74_spill] sm:$0xff] %v8563_v42  ;;  %10136 = vst [vmem:[#allocation76_spill] sm:$0xff] %v8569_v28  ;;  %v8572_v32 = vld [vmem:[#allocation9 + $0x68] ss:$24 sps:$4 sm:$0xff]  }
 0x54b   : > { %v3512_v36 = vadd.f32 %v3510_v27, %v3506_v24  ;;  %10137 = vst [vmem:[#allocation77_spill] sm:$0xff] %v8572_v32  ;;  %v8575_v24 = vld [vmem:[#allocation9 + $0x9c] ss:$24 sps:$4 sm:$0xff]   ;;  %10139 = vst [vmem:[#allocation79_spill] sm:$0xff] %v8578_v50  ;;  %v8581_v27 = vld [vmem:[#allocation9 + $0xcc] ss:$24 sps:$4 sm:$0xff]  }
 0x54c   : > { %6693 = vtanh.f32 %v3511_v58  ;;  %10138 = vst [vmem:[#allocation78_spill] sm:$0xff] %v8575_v24  ;;  %10140 = vst [vmem:[#allocation80_spill] sm:$0xff] %v8581_v27  ;;  %v8584_v58 = vld [vmem:[#allocation9 + $0xc8] ss:$24 sps:$4 sm:$0xff]   ;;  %v8590_v51 = vld [vmem:[#allocation9 + $0xf8] ss:$24 sps:$4 sm:$0xff]  }
 0x54d   : > { %6695 = vtanh.f32 %v3512_v36  ;;  %10141 = vst [vmem:[#allocation25_spill] sm:$0xff] %v8584_v58  ;;  %v8587_v36 = vld [vmem:[#allocation9 + $0xfc] ss:$24 sps:$4 sm:$0xff]   ;;  %10143 = vst [vmem:[#allocation27_spill] sm:$0xff] %v8590_v51  ;;  %v8620_v7 = vld [vmem:[#allocation9 + $0x1e8] ss:$24 sps:$4 sm:$0xff]  }
 0x54e   : > { %10142 = vst [vmem:[#allocation26_spill] sm:$0xff] %v8587_v36  ;;  %10152 = vst [vmem:[#allocation36_spill] sm:$0xff] %v8617_v33 }
 0x54f   : > { %10153 = vst [vmem:[#allocation37_spill] sm:$0xff] %v8620_v7 }
 0x556   : > { %v6694_v48 = vpop.eup %6693 }
 0x557   : > { %v6696_v46 = vpop.eup %6695  ;;  %v3517_v57 = vmul.f32 %v6694_v48, %v3515_v29  ;;  %v8431_v48 = vld [vmem:[#allocation9] ss:$24 sps:$4 sm:$0xff]   ;;  %v8434_v29 = vld [vmem:[#allocation9 + $0x34] ss:$24 sps:$4 sm:$0xff]  }
 0x558   : > { %v3518_v39 = vmul.f32 %v6696_v46, %v3516_v45  ;;  %v8593_v45 = vld [vmem:[#allocation9 + $0x12c] ss:$24 sps:$4 sm:$0xff]   ;;  %v8596_v46 = vld [vmem:[#allocation9 + $0x128] ss:$24 sps:$4 sm:$0xff]  }
 0x559   : > { %v8417_v43 = vadd.f32 %v3519_v1, %v3517_v57  ;;  %10144 = vst [vmem:[#allocation28_spill] sm:$0xff] %v8593_v45  ;;  %10145 = vst [vmem:[#allocation29_spill] sm:$0xff] %v8596_v46  ;;  %v8599_v57 = vld [vmem:[#allocation9 + $0x15c] ss:$24 sps:$4 sm:$0xff]   ;;  %v8602_v1 = vld [vmem:[#allocation9 + $0x158] ss:$24 sps:$4 sm:$0xff]  }
 0x55a   : > { %v8419_v47 = vadd.f32 %v3520_v56, %v3518_v39  ;;  %10146 = vst [vmem:[#allocation30_spill] sm:$0xff] %v8599_v57  ;;  %10147 = vst [vmem:[#allocation31_spill] sm:$0xff] %v8602_v1  ;;  %v8605_v39 = vld [vmem:[#allocation9 + $0x18c] ss:$24 sps:$4 sm:$0xff]   ;;  %v8608_v56 = vld [vmem:[#allocation9 + $0x188] ss:$24 sps:$4 sm:$0xff]  }
 0x55b   : > { %10117 = vst [vmem:[#allocation49_spill] sm:$0xff] %v8417_v43  ;;  %v8425_v38 = vpack.c.bf16 %v8417_v43, %v8417_v43  ;;  %10148 = vst [vmem:[#allocation32_spill] sm:$0xff] %v8605_v39 }
 0x55c   : > { %10118 = vst [vmem:[#allocation53_spill] sm:$0xff] %v8419_v47  ;;  %v3532_v19 = vpack.c.bf16 %v8419_v47, %v8419_v47  ;;  %10149 = vst [vmem:[#allocation33_spill] sm:$0xff] %v8608_v56 }
 0x55e   : > { %3565 = vmatprep.mubr.bf16.mxu0 %v3532_v19  ;;  %3606 = vmatprep.mubr.bf16.mxu1 %v3532_v19 }
 0x55f   : > { %3566 = vmatmul.mubr.bf16.vlgmr.msra.gmra.mrb[12].mxu0 %v8425_v38  ;;  %3607 = vmatmul.mubr.bf16.vlgmr.msra.gmra.mrb[12].mxu1 %v8425_v38 }
 0x560   : > { %3616 = vmatpush1.bf16.msra.mxu0 %v10055_v23  ;;  %3647 = vmatprep.mubr.bf16.mxu0 %v3532_v19  ;;  %v8442_v23 = vld [vmem:[#allocation9 + $0x64] ss:$24 sps:$4 sm:$0xff]  }
 0x561   : > { %3617 = vmatprep.subr.bf16.mxu0 %v10056_v49  ;;  %3795 = vmatpush1.bf16.msra.mxu1 %v8431_v48  ;;  %v8447_v49 = vld [vmem:[#allocation9 + $0x60] ss:$24 sps:$4 sm:$0xff]   ;;  %v8611_v19 = vld [vmem:[#allocation9 + $0x1bc] ss:$24 sps:$4 sm:$0xff]  }
 0x562   : > { %3796 = vmatprep.subr.bf16.mxu1 %v8434_v29  ;;  %10150 = vst [vmem:[#allocation34_spill] sm:$0xff] %v8611_v19 }
 0x564   : > { %3618 = vmatpush1.bf16.msra.mxu0 %v10057_v6  ;;  %v8455_v6 = vld [vmem:[#allocation9 + $0x90] ss:$24 sps:$4 sm:$0xff]  }
 0x565   : > { %3619 = vmatprep.subr.bf16.mxu0 %v10058_v40  ;;  %3797 = vmatpush1.bf16.msra.mxu1 %v8439_v53  ;;  %v8458_v40 = vld [vmem:[#allocation9 + $0xc4] ss:$24 sps:$4 sm:$0xff]  }
 0x566   : > { %3798 = vmatprep.subr.bf16.mxu1 %v8442_v23 }
 0x568   : > { %3620 = vmatpush1.bf16.msra.mxu0 %v10059_v41  ;;  %v8463_v41 = vld [vmem:[#allocation9 + $0xc0] ss:$24 sps:$4 sm:$0xff]  }
 0x569   : > { %3621 = vmatprep.subr.bf16.mxu0 %v10060_v2  ;;  %3799 = vmatpush1.bf16.msra.mxu1 %v8447_v49  ;;  %v8466_v2 = vld [vmem:[#allocation9 + $0xf4] ss:$24 sps:$4 sm:$0xff]  }
 0x56a   : > { %3800 = vmatprep.subr.bf16.mxu1 %v8450_v60 }
 0x56c   : > { %3622 = vmatpush1.bf16.msra.mxu0 %v10061_v44  ;;  %v8471_v44 = vld [vmem:[#allocation9 + $0xf0] ss:$24 sps:$4 sm:$0xff]  }
 0x56d   : > { %3623 = vmatprep.subr.bf16.mxu0 %v10062_v8  ;;  %3801 = vmatpush1.bf16.msra.mxu1 %v8455_v6  ;;  %v8474_v8 = vld [vmem:[#allocation9 + $0x124] ss:$24 sps:$4 sm:$0xff]  }
 0x56e   : > { %3802 = vmatprep.subr.bf16.mxu1 %v8458_v40 }
 0x570   : > { %3624 = vmatpush1.bf16.msra.mxu0 %v10063_v10  ;;  %v8479_v10 = vld [vmem:[#allocation9 + $0x120] ss:$24 sps:$4 sm:$0xff]  }
 0x571   : > { %3625 = vmatprep.subr.bf16.mxu0 %v10064_v11  ;;  %3803 = vmatpush1.bf16.msra.mxu1 %v8463_v41  ;;  %v8482_v11 = vld [vmem:[#allocation9 + $0x154] ss:$24 sps:$4 sm:$0xff]  }
 0x572   : > { %3804 = vmatprep.subr.bf16.mxu1 %v8466_v2 }
 0x574   : > { %3626 = vmatpush1.bf16.msra.mxu0 %v10065_v12  ;;  %v8487_v12 = vld [vmem:[#allocation9 + $0x150] ss:$24 sps:$4 sm:$0xff]  }
 0x575   : > { %3627 = vmatprep.subr.bf16.mxu0 %v10066_v13  ;;  %3805 = vmatpush1.bf16.msra.mxu1 %v8471_v44  ;;  %v8490_v13 = vld [vmem:[#allocation9 + $0x184] ss:$24 sps:$4 sm:$0xff]  }
 0x576   : > { %3806 = vmatprep.subr.bf16.mxu1 %v8474_v8 }
 0x578   : > { %3628 = vmatpush1.bf16.msra.mxu0 %v10067_v14  ;;  %v8495_v14 = vld [vmem:[#allocation9 + $0x180] ss:$24 sps:$4 sm:$0xff]  }
 0x579   : > { %3629 = vmatprep.subr.bf16.mxu0 %v10068_v15  ;;  %3807 = vmatpush1.bf16.msra.mxu1 %v8479_v10  ;;  %v8498_v15 = vld [vmem:[#allocation9 + $0x1b4] ss:$24 sps:$4 sm:$0xff]  }
 0x57a   : > { %3808 = vmatprep.subr.bf16.mxu1 %v8482_v11 }
 0x57c   : > { %3630 = vmatpush1.bf16.msra.mxu0 %v10069_v16  ;;  %v8503_v16 = vld [vmem:[#allocation9 + $0x1b0] ss:$24 sps:$4 sm:$0xff]  }
 0x57d   : > { %3631 = vmatprep.subr.bf16.mxu0 %v10070_v17  ;;  %3809 = vmatpush1.bf16.msra.mxu1 %v8487_v12  ;;  %v8506_v17 = vld [vmem:[#allocation9 + $0x1e4] ss:$24 sps:$4 sm:$0xff]  }
 0x57e   : > { %3810 = vmatprep.subr.bf16.mxu1 %v8490_v13  ;;  %10119 = vst [vmem:[#allocation54_spill] sm:$0xff] %v8506_v17 }
 0x580   : > { %3632 = vmatpush1.bf16.msra.mxu0 %v10071_v18  ;;  %v8511_v18 = vld [vmem:[#allocation9 + $0x1e0] ss:$24 sps:$4 sm:$0xff]  }
 0x581   : > { %3633 = vmatprep.subr.bf16.mxu0 %v10072_v21  ;;  %3811 = vmatpush1.bf16.msra.mxu1 %v8495_v14  ;;  %10120 = vst [vmem:[#allocation57_spill] sm:$0xff] %v8511_v18  ;;  %v8514_v21 = vld [vmem:[#allocation9 + $0x214] ss:$24 sps:$4 sm:$0xff]  }
 0x582   : > { %3812 = vmatprep.subr.bf16.mxu1 %v8498_v15  ;;  %10121 = vst [vmem:[#allocation58_spill] sm:$0xff] %v8514_v21 }
 0x584   : > { %3634 = vmatpush1.bf16.msra.mxu0 %v10073_v22  ;;  %v8519_v22 = vld [vmem:[#allocation9 + $0x210] ss:$24 sps:$4 sm:$0xff]  }
 0x585   : > { %3635 = vmatprep.subr.bf16.mxu0 %v10074_v25  ;;  %3813 = vmatpush1.bf16.msra.mxu1 %v8503_v16  ;;  %10122 = vst [vmem:[#allocation61_spill] sm:$0xff] %v8519_v22  ;;  %v8522_v25 = vld [vmem:[#allocation9 + $0x244] ss:$24 sps:$4 sm:$0xff]  }
 0x586   : > { %3814 = vmatprep.subr.bf16.mxu1 %v8506_v17  ;;  %10123 = vst [vmem:[#allocation62_spill] sm:$0xff] %v8522_v25 }
 0x588   : > { %3636 = vmatpush1.bf16.msra.mxu0 %v10075_v26  ;;  %v8527_v26 = vld [vmem:[#allocation9 + $0x240] ss:$24 sps:$4 sm:$0xff]  }
 0x589   : > { %3637 = vmatprep.subr.bf16.mxu0 %v10076_v30  ;;  %3815 = vmatpush1.bf16.msra.mxu1 %v8511_v18  ;;  %10124 = vst [vmem:[#allocation64_spill] sm:$0xff] %v8527_v26  ;;  %v8530_v30 = vld [vmem:[#allocation9 + $0x274] ss:$24 sps:$4 sm:$0xff]  }
 0x58a   : > { %3816 = vmatprep.subr.bf16.mxu1 %v8514_v21  ;;  %10125 = vst [vmem:[#allocation65_spill] sm:$0xff] %v8530_v30 }
 0x58c   : > { %3638 = vmatpush1.bf16.msra.mxu0 %v10077_v31  ;;  %v8535_v31 = vld [vmem:[#allocation9 + $0x270] ss:$24 sps:$4 sm:$0xff]  }
 0x58d   : > { %3639 = vmatprep.subr.bf16.mxu0 %v10078_v34  ;;  %3817 = vmatpush1.bf16.msra.mxu1 %v8519_v22  ;;  %10126 = vst [vmem:[#allocation66_spill] sm:$0xff] %v8535_v31  ;;  %v8538_v34 = vld [vmem:[#allocation9 + $0x2a4] ss:$24 sps:$4 sm:$0xff]  }
 0x58e   : > { %3818 = vmatprep.subr.bf16.mxu1 %v8522_v25  ;;  %10127 = vst [vmem:[#allocation67_spill] sm:$0xff] %v8538_v34 }
 0x590   : > { %3640 = vmatpush1.bf16.msra.mxu0 %v8180_v9  ;;  %v8543_v9 = vld [vmem:[#allocation9 + $0x2a0] ss:$24 sps:$4 sm:$0xff]  }
 0x591   : > { %3641 = vmatprep.subr.bf16.mxu0 %v10079_v35  ;;  %3819 = vmatpush1.bf16.msra.mxu1 %v8527_v26  ;;  %10128 = vst [vmem:[#allocation68_spill] sm:$0xff] %v8543_v9  ;;  %v8546_v35 = vld [vmem:[#allocation9 + $0x2d4] ss:$24 sps:$4 sm:$0xff]  }
 0x592   : > { %3820 = vmatprep.subr.bf16.mxu1 %v8530_v30  ;;  %10129 = vst [vmem:[#allocation69_spill] sm:$0xff] %v8546_v35 }
 0x594   : > { %3642 = vmatpush1.bf16.msra.mxu0 %v8188_v59  ;;  %v8550_v59 = vld [vmem:[#allocation9 + $0xc] ss:$24 sps:$4 sm:$0xff]  }
 0x595   : > { %3643 = vmatprep.subr.bf16.mxu0 %v8191_v62  ;;  %3821 = vmatpush1.bf16.msra.mxu1 %v8535_v31  ;;  %10130 = vst [vmem:[#allocation70_spill] sm:$0xff] %v8550_v59  ;;  %v8553_v62 = vld [vmem:[#allocation9 + $0x2d0] ss:$24 sps:$4 sm:$0xff]  }
 0x596   : > { %3822 = vmatprep.subr.bf16.mxu1 %v8538_v34  ;;  %10131 = vst [vmem:[#allocation71_spill] sm:$0xff] %v8553_v62 }
 0x598   : > { %3644 = vmatpush1.bf16.msra.mxu0 %v8196_v4  ;;  %v8556_v4 = vld [vmem:[#allocation9 + $0x14] ss:$24 sps:$4 sm:$0xff]  }
 0x599   : > { %3645 = vmatprep.subr.bf16.mxu0 %v8199_v5  ;;  %3823 = vmatpush1.bf16.msra.mxu1 %v8543_v9  ;;  %10132 = vst [vmem:[#allocation72_spill] sm:$0xff] %v8556_v4  ;;  %v8560_v5 = vld [vmem:[#allocation9 + $0x8] ss:$24 sps:$4 sm:$0xff]  }
 0x59a   : > { %3824 = vmatprep.subr.bf16.mxu1 %v8546_v35  ;;  %10133 = vst [vmem:[#allocation73_spill] sm:$0xff] %v8560_v5 }
 0x59c   : > { %3646 = vmatpush1.bf16.msra.mxu0 %v8204_v52  ;;  %v8566_v52 = vld [vmem:[#allocation9 + $0x38] ss:$24 sps:$4 sm:$0xff]  }
 0x59d   : > { %3835 = vmatprep.subr.bf16.mxu0 %v8550_v59  ;;  %3825 = vmatpush1.bf16.msra.mxu1 %v8553_v62  ;;  %10135 = vst [vmem:[#allocation75_spill] sm:$0xff] %v8566_v52 }
 0x59e   : > { %3876 = vmatprep.subr.bf16.mxu1 %v8556_v4 }
 0x59f   : > { %3648 = vmatmul.mubr.bf16.vlgmr.msra.gmra.mrb[16].mxu0 %v8425_v38  ;;  %v8614_v38 = vld [vmem:[#allocation9 + $0x1b8] ss:$24 sps:$4 sm:$0xff]  }
 0x5a0   : > { %3836 = vmatpush1.bf16.msra.mxu0 %v8560_v5  ;;  %10151 = vst [vmem:[#allocation35_spill] sm:$0xff] %v8614_v38 }
 0x5a1   : > { %3837 = vmatprep.subr.bf16.mxu0 %v8563_v42 }
 0x5a4   : > { %3838 = vmatpush1.bf16.msra.mxu0 %v8566_v52 }
 0x5a5   : > { %3839 = vmatprep.subr.bf16.mxu0 %v8569_v28 }
 0x5a8   : > { %3840 = vmatpush1.bf16.msra.mxu0 %v8572_v32 }
 0x5a9   : > { %3841 = vmatprep.subr.bf16.mxu0 %v8575_v24 }
 0x5ac   : > { %3842 = vmatpush1.bf16.msra.mxu0 %v8578_v50 }
 0x5ad   : > { %3843 = vmatprep.subr.bf16.mxu0 %v8581_v27 }
 0x5b0   : > { %3844 = vmatpush1.bf16.msra.mxu0 %v8584_v58 }
 0x5b1   : > { %3845 = vmatprep.subr.bf16.mxu0 %v8587_v36 }
 0x5b4   : > { %3846 = vmatpush1.bf16.msra.mxu0 %v8590_v51  ;;  %v10160_v51 = vld [vmem:[#allocation52_spill] sm:$0xff] }
 0x5b5   : > { %3847 = vmatprep.subr.bf16.mxu0 %v8593_v45  ;;  %v3657_v45 = vld [vmem:[#allocation2 + $0x2] ss:$8 sm:$0x3]  ;;  %vm4045_vm4 = vcmp.eq.s32.totalorder %v10160_v51, 3 }
 0x5b8   : > { %3848 = vmatpush1.bf16.msra.mxu0 %v8596_v46 }
 0x5b9   : > { %3849 = vmatprep.subr.bf16.mxu0 %v8599_v57 }
 0x5bc   : > { %3850 = vmatpush1.bf16.msra.mxu0 %v8602_v1 }
 0x5bd   : > { %3851 = vmatprep.subr.bf16.mxu0 %v8605_v39  ;;  %v8623_v39 = vld [vmem:[#allocation9 + $0x21c] ss:$24 sps:$4 sm:$0xff]  }
 0x5be   : > { %10154 = vst [vmem:[#allocation38_spill] sm:$0xff] %v8623_v39 }
 0x5c0   : > { %3852 = vmatpush1.bf16.msra.mxu0 %v8608_v56  ;;  %v8626_v56 = vld [vmem:[#allocation9 + $0x218] ss:$24 sps:$4 sm:$0xff]  }
 0x5c1   : > { %3853 = vmatprep.subr.bf16.mxu0 %v8611_v19  ;;  %10155 = vst [vmem:[#allocation39_spill] sm:$0xff] %v8626_v56  ;;  %v8629_v19 = vld [vmem:[#allocation9 + $0x24c] ss:$24 sps:$4 sm:$0xff]  }
 0x5c2   : > { %10156 = vst [vmem:[#allocation40_spill] sm:$0xff] %v8629_v19 }
 0x5c4   : > { %3854 = vmatpush1.bf16.msra.mxu0 %v8614_v38  ;;  %v8632_v38 = vld [vmem:[#allocation9 + $0x248] ss:$24 sps:$4 sm:$0xff]  }
 0x5c5   : > { %3855 = vmatprep.subr.bf16.mxu0 %v8617_v33  ;;  %10157 = vst [vmem:[#allocation41_spill] sm:$0xff] %v8632_v38  ;;  %v8635_v33 = vld [vmem:[#allocation9 + $0x27c] ss:$24 sps:$4 sm:$0xff]  }
 0x5c6   : > { %10158 = vst [vmem:[#allocation42_spill] sm:$0xff] %v8635_v33 }
 0x5c8   : > { %3856 = vmatpush1.bf16.msra.mxu0 %v8620_v7  ;;  %v8638_v7 = vld [vmem:[#allocation9 + $0x278] ss:$24 sps:$4 sm:$0xff]  }
 0x5c9   : > { %3857 = vmatprep.subr.bf16.mxu0 %v8623_v39  ;;  %10159 = vst [vmem:[#allocation43_spill] sm:$0xff] %v8638_v7 }
 0x5cc   : > { %3858 = vmatpush1.bf16.msra.mxu0 %v8626_v56 }
 0x5cd   : > { %3859 = vmatprep.subr.bf16.mxu0 %v8629_v19 }
 0x5d0   : > { %3860 = vmatpush1.bf16.msra.mxu0 %v8632_v38 }
 0x5d1   : > { %3861 = vmatprep.subr.bf16.mxu0 %v8635_v33 }
 0x5d4   : > { %3862 = vmatpush1.bf16.msra.mxu0 %v8638_v7  ;;  %v3659_v7 = vld [vmem:[#allocation2 + $0x12] ss:$8 sm:$0x3] }
 0x5d5   : > { %3863 = vmatprep.subr.bf16.mxu0 %v10106_v63  ;;  %v3664_v63 = vrot.slane %v3657_v45, %v10111_v20 }
 0x5d8   : > { %3864 = vmatpush1.bf16.msra.mxu0 %v10107_v54  ;;  %v3675_v54 = vrot.slane %v3659_v7, %v10111_v20 }
 0x5d9   : > { %3865 = vmatprep.subr.bf16.mxu0 %v10108_v37  ;;  %v3668_v37 = vrot.slane %v3657_v45, %v10112_v61 }
 0x5da   : > { %v3682_v58 = vsel %vm3148_vm1, %v3664_v63, %v3675_v54 }
 0x5dc   : > { %3866 = vmatpush1.bf16.msra.mxu0 %v10109_v55  ;;  %v3679_v55 = vrot.slane %v3659_v7, %v10112_v61 }
 0x5dd   : > { %4055 = vmatprep.subr.bf16.mxu0 %v8390_v3  ;;  %v10161_v3 = vmov 0  }
 0x5de   : > { %v4046_v36 = vsel %vm4045_vm4, 1, %v10161_v3 }
 0x5df   : > { %4048 = vperm.xlu1 %6512, %v4046_v36  }
 0x632   : > { %v3567_v19 = vpop.f32.mrb[12].mxu0  ;;  %v3608_v38 = vpop.f32.mrb[12].mxu1 }
 0x633   : > { %v3569_v56 = vpop.f32.mrb[13].mxu0  ;;  %v3610_v39 = vpop.f32.mrb[13].mxu1 }
 0x634   : > { %v3571_v1 = vpop.f32.mrb[14].mxu0  ;;  %v3612_v33 = vpop.f32.mrb[14].mxu1 }
 0x635   : > { %v3572_v57 = vpop.f32.mrb[15].mxu0  ;;  %v3613_v46 = vpop.f32.mrb[15].mxu1  ;;  %v3683_v33 = vsel %vm3148_vm1, %v3668_v37, %v3679_v55  ;;  %v3701_v1 = vld [vmem:[#allocation2 + $0x32] ss:$8 sm:$0x3] }
 0x636   : > { %v3684_v46 = vadd.f32 %v3682_v58, %v3567_v19  ;;  %v3699_v57 = vld [vmem:[#allocation2 + $0x22] ss:$8 sm:$0x3]  ;;  %v3685_v27 = vadd.f32 %v3683_v33, %v3569_v56  ;;  %v3717_v45 = vrot.slane %v3701_v1, %v10111_v20  ;;  %v3721_v51 = vrot.slane %v3701_v1, %v10112_v61 }
 0x637   : > { %v3706_v24 = vrot.slane %v3699_v57, %v10111_v20  ;;  %v3710_v7 = vrot.slane %v3699_v57, %v10112_v61  ;;  %v3743_v57 = vld [vmem:[#allocation2 + $0x52] ss:$8 sm:$0x3] }
 0x638   : > { %v5843_v50 = vmul.f32 -1.442695, %v3684_v46  ;;  %v5844_v32 = vmul.f32 -1.442695, %v3685_v27 }
 0x639   : > { %v3724_v63 = vsel %vm3148_vm1, %v3706_v24, %v3717_v45  ;;  %v3725_v36 = vsel %vm3148_vm1, %v3710_v7, %v3721_v51  ;;  %v3741_v46 = vld [vmem:[#allocation2 + $0x42] ss:$8 sm:$0x3]  ;;  %v3759_v24 = vrot.slane %v3743_v57, %v10111_v20 }
 0x63a   : > { %6697 = vpow2.f32 %v5843_v50  ;;  %v3726_v58 = vadd.f32 %v3724_v63, %v3608_v38  ;;  %v3727_v19 = vadd.f32 %v3725_v36, %v3610_v39  ;;  %v3752_v39 = vrot.slane %v3741_v46, %v10112_v61  ;;  %v10162_v63 = vld [vmem:[#allocation81_spill] sm:$0xff] }
 0x63b   : > { %6699 = vpow2.f32 %v5844_v32  ;;  %v3748_v32 = vrot.slane %v3741_v46, %v10111_v20  ;;  %v3763_v38 = vrot.slane %v3743_v57, %v10112_v61 }
 0x63c   : > { %v5845_v54 = vmul.f32 -1.442695, %v3726_v58  ;;  %v5846_v56 = vmul.f32 -1.442695, %v3727_v19 }
 0x63e   : > { %6701 = vpow2.f32 %v5845_v54  ;;  %v3766_v54 = vsel %vm3148_vm1, %v3748_v32, %v3759_v24 }
 0x63f   : > { %6703 = vpow2.f32 %v5846_v56 }
 0x644   : > { %v6698_v37 = vpop.eup %6697 }
 0x645   : > { %v6700_v55 = vpop.eup %6699  ;;  %v3692_v33 = vadd.f32 1.0, %v6698_v37 }
 0x646   : > { %v3693_v27 = vadd.f32 1.0, %v6700_v55 }
 0x647   : > { %6705 = vrcp.f32 %v3692_v33 }
 0x648   : > { %6707 = vrcp.f32 %v3693_v27  ;;  %v6702_v50 = vpop.eup %6701  ;;  %v3767_v27 = vsel %vm3148_vm1, %v3752_v39, %v3763_v38 }
 0x649   : > { %v6704_v1 = vpop.eup %6703  ;;  %v3734_v51 = vadd.f32 1.0, %v6702_v50 }
 0x64a   : > { %v3735_v45 = vadd.f32 1.0, %v6704_v1 }
 0x64b   : > { %6709 = vrcp.f32 %v3734_v51 }
 0x64c   : > { %6711 = vrcp.f32 %v3735_v45 }
 0x651   : > { %v6706_v19 = vpop.eup %6705 }
 0x652   : > { %v6708_v55 = vpop.eup %6707 }
 0x672   : > { %v3649_v7 = vpop.f32.mrb[16].mxu0 }
 0x673   : > { %v3768_v36 = vadd.f32 %v3649_v7, %v10162_v63  ;;  %v3651_v58 = vpop.f32.mrb[17].mxu0  ;;  %v6710_v7 = vpop.eup %6709 }
 0x674   : > { %v3769_v56 = vadd.f32 %v3651_v58, %v10116_v0  ;;  %v3653_v37 = vpop.f32.mrb[18].mxu0  ;;  %v6712_v63 = vpop.eup %6711  ;;  %v3776_v3 = vsub.f32 1.0, %v6710_v7 }
 0x675   : > { %v3770_v33 = vmul.f32 %v6706_v19, %v3768_v36  ;;  %v3654_v50 = vpop.f32.mrb[19].mxu0  ;;  %v3777_v32 = vsub.f32 1.0, %v6712_v63  ;;  %v3780_v37 = vmul.f32 %v6710_v7, %v8417_v43  ;;  %v3781_v36 = vmul.f32 %v6712_v63, %v8419_v47  ;;  %v8690_v63 = vld [vmem:[#allocation9 + $0x40] ss:$24 sps:$4 sm:$0xff]   ;;  %v8730_v7 = vld [vmem:[#allocation9 + $0x130] ss:$24 sps:$4 sm:$0xff]  }
 0x676   : > { %v3771_v46 = vmul.f32 %v6708_v55, %v3769_v56  ;;  %v8698_v56 = vld [vmem:[#allocation9 + $0x70] ss:$24 sps:$4 sm:$0xff]   ;;  %v8701_v55 = vld [vmem:[#allocation9 + $0xa4] ss:$24 sps:$4 sm:$0xff]  }
 0x677   : > { %v3772_v57 = vadd.f32 %v3770_v33, %v3766_v54  ;;  %v8693_v54 = vld [vmem:[#allocation9 + $0x74] ss:$24 sps:$4 sm:$0xff]   ;;  %v8706_v33 = vld [vmem:[#allocation9 + $0xa0] ss:$24 sps:$4 sm:$0xff]   ;;  %v8714_v50 = vld [vmem:[#allocation9 + $0xd0] ss:$24 sps:$4 sm:$0xff]  }
 0x678   : > { %v3773_v1 = vadd.f32 %v3771_v46, %v3767_v27  ;;  %v8709_v27 = vld [vmem:[#allocation9 + $0xd4] ss:$24 sps:$4 sm:$0xff]   ;;  %v8717_v46 = vld [vmem:[#allocation9 + $0x104] ss:$24 sps:$4 sm:$0xff]   ;;  %v8762_v47 = vld [vmem:[#allocation9 + $0x1f0] ss:$24 sps:$4 sm:$0xff]  }
 0x679   : > { %6713 = vtanh.f32 %v3772_v57  ;;  %v8722_v57 = vld [vmem:[#allocation9 + $0x100] ss:$24 sps:$4 sm:$0xff]   ;;  %10167 = vst [vmem:[#allocation50_spill] sm:$0xff] %v8762_v47  ;;  %v8765_v43 = vld [vmem:[#allocation9 + $0x224] ss:$24 sps:$4 sm:$0xff]  }
 0x67a   : > { %6715 = vtanh.f32 %v3773_v1  ;;  %v8725_v1 = vld [vmem:[#allocation9 + $0x134] ss:$24 sps:$4 sm:$0xff]   ;;  %10168 = vst [vmem:[#allocation51_spill] sm:$0xff] %v8765_v43 }
 0x683   : > { %v6714_v61 = vpop.eup %6713 }
 0x684   : > { %v6716_v24 = vpop.eup %6715  ;;  %v3778_v58 = vmul.f32 %v6714_v61, %v3776_v3  ;;  %v8682_v3 = vld [vmem:[#allocation9 + $0x10] ss:$24 sps:$4 sm:$0xff]   ;;  %v8685_v61 = vld [vmem:[#allocation9 + $0x44] ss:$24 sps:$4 sm:$0xff]  }
 0x685   : > { %v3779_v51 = vmul.f32 %v6716_v24, %v3777_v32  ;;  %v8733_v32 = vld [vmem:[#allocation9 + $0x164] ss:$24 sps:$4 sm:$0xff]   ;;  %v8738_v24 = vld [vmem:[#allocation9 + $0x160] ss:$24 sps:$4 sm:$0xff]  }
 0x686   : > { %v8670_v39 = vadd.f32 %v3780_v37, %v3778_v58  ;;  %v8741_v58 = vld [vmem:[#allocation9 + $0x194] ss:$24 sps:$4 sm:$0xff]   ;;  %v8746_v37 = vld [vmem:[#allocation9 + $0x190] ss:$24 sps:$4 sm:$0xff]  }
 0x687   : > { %v8672_v38 = vadd.f32 %v3781_v36, %v3779_v51  ;;  %v8749_v51 = vld [vmem:[#allocation9 + $0x1c4] ss:$24 sps:$4 sm:$0xff]   ;;  %v8754_v36 = vld [vmem:[#allocation9 + $0x1c0] ss:$24 sps:$4 sm:$0xff]  }
 0x688   : > { %10163 = vst [vmem:[#allocation44_spill] sm:$0xff] %v8670_v39  ;;  %v8678_v19 = vpack.c.bf16 %v8670_v39, %v8670_v39  ;;  %10165 = vst [vmem:[#allocation46_spill] sm:$0xff] %v8754_v36 }
 0x689   : > { %10164 = vst [vmem:[#allocation45_spill] sm:$0xff] %v8672_v38  ;;  %v3793_v45 = vpack.c.bf16 %v8672_v38, %v8672_v38 }
 0x68b   : > { %3826 = vmatprep.mubr.bf16.mxu1 %v3793_v45  ;;  %3867 = vmatprep.mubr.bf16.mxu0 %v3793_v45 }
 0x68c   : > { %3827 = vmatmul.mubr.bf16.vlgmr.msra.gmra.mrb[16].mxu1 %v8678_v19  ;;  %3868 = vmatmul.mubr.bf16.vlgmr.msra.gmra.mrb[20].mxu0 %v8678_v19 }
 0x68d   : > { %3877 = vmatpush1.bf16.msra.mxu1 %v8682_v3  ;;  %3908 = vmatprep.mubr.bf16.mxu1 %v3793_v45  ;;  %v8757_v45 = vld [vmem:[#allocation9 + $0x1f4] ss:$24 sps:$4 sm:$0xff]  }
 0x68e   : > { %3878 = vmatprep.subr.bf16.mxu1 %v8685_v61  ;;  %4056 = vmatpush1.bf16.msra.mxu0 %v8431_v48  ;;  %10166 = vst [vmem:[#allocation47_spill] sm:$0xff] %v8757_v45 }
 0x68f   : > { %4057 = vmatprep.subr.bf16.mxu0 %v8434_v29 }
 0x691   : > { %3879 = vmatpush1.bf16.msra.mxu1 %v8690_v63 }
 0x692   : > { %3880 = vmatprep.subr.bf16.mxu1 %v8693_v54  ;;  %4058 = vmatpush1.bf16.msra.mxu0 %v8439_v53 }
 0x693   : > { %4059 = vmatprep.subr.bf16.mxu0 %v8442_v23 }
 0x695   : > { %3881 = vmatpush1.bf16.msra.mxu1 %v8698_v56 }
 0x696   : > { %3882 = vmatprep.subr.bf16.mxu1 %v8701_v55  ;;  %4060 = vmatpush1.bf16.msra.mxu0 %v8447_v49 }
 0x697   : > { %4061 = vmatprep.subr.bf16.mxu0 %v8450_v60 }
 0x699   : > { %3883 = vmatpush1.bf16.msra.mxu1 %v8706_v33 }
 0x69a   : > { %3884 = vmatprep.subr.bf16.mxu1 %v8709_v27  ;;  %4062 = vmatpush1.bf16.msra.mxu0 %v8455_v6 }
 0x69b   : > { %4063 = vmatprep.subr.bf16.mxu0 %v8458_v40 }
 0x69d   : > { %3885 = vmatpush1.bf16.msra.mxu1 %v8714_v50 }
 0x69e   : > { %3886 = vmatprep.subr.bf16.mxu1 %v8717_v46  ;;  %4064 = vmatpush1.bf16.msra.mxu0 %v8463_v41 }
 0x69f   : > { %4065 = vmatprep.subr.bf16.mxu0 %v8466_v2 }
 0x6a1   : > { %3887 = vmatpush1.bf16.msra.mxu1 %v8722_v57 }
 0x6a2   : > { %3888 = vmatprep.subr.bf16.mxu1 %v8725_v1  ;;  %4066 = vmatpush1.bf16.msra.mxu0 %v8471_v44 }
 0x6a3   : > { %4067 = vmatprep.subr.bf16.mxu0 %v8474_v8 }
 0x6a5   : > { %3889 = vmatpush1.bf16.msra.mxu1 %v8730_v7 }
 0x6a6   : > { %3890 = vmatprep.subr.bf16.mxu1 %v8733_v32  ;;  %4068 = vmatpush1.bf16.msra.mxu0 %v8479_v10 }
 0x6a7   : > { %4069 = vmatprep.subr.bf16.mxu0 %v8482_v11 }
 0x6a9   : > { %3891 = vmatpush1.bf16.msra.mxu1 %v8738_v24 }
 0x6aa   : > { %3892 = vmatprep.subr.bf16.mxu1 %v8741_v58  ;;  %4070 = vmatpush1.bf16.msra.mxu0 %v8487_v12 }
 0x6ab   : > { %4071 = vmatprep.subr.bf16.mxu0 %v8490_v13 }
 0x6ad   : > { %3893 = vmatpush1.bf16.msra.mxu1 %v8746_v37 }
 0x6ae   : > { %3894 = vmatprep.subr.bf16.mxu1 %v8749_v51  ;;  %4072 = vmatpush1.bf16.msra.mxu0 %v8495_v14 }
 0x6af   : > { %4073 = vmatprep.subr.bf16.mxu0 %v8498_v15 }
 0x6b1   : > { %3895 = vmatpush1.bf16.msra.mxu1 %v8754_v36  ;;  %v8770_v36 = vld [vmem:[#allocation9 + $0x220] ss:$24 sps:$4 sm:$0xff]  }
 0x6b2   : > { %3896 = vmatprep.subr.bf16.mxu1 %v8757_v45  ;;  %4074 = vmatpush1.bf16.msra.mxu0 %v8503_v16  ;;  %10169 = vst [vmem:[#allocation55_spill] sm:$0xff] %v8770_v36  ;;  %v8773_v45 = vld [vmem:[#allocation9 + $0x254] ss:$24 sps:$4 sm:$0xff]  }
 0x6b3   : > { %4075 = vmatprep.subr.bf16.mxu0 %v8506_v17  ;;  %10170 = vst [vmem:[#allocation56_spill] sm:$0xff] %v8773_v45 }
 0x6b5   : > { %3897 = vmatpush1.bf16.msra.mxu1 %v8762_v47  ;;  %v8778_v47 = vld [vmem:[#allocation9 + $0x250] ss:$24 sps:$4 sm:$0xff]  }
 0x6b6   : > { %3898 = vmatprep.subr.bf16.mxu1 %v8765_v43  ;;  %4076 = vmatpush1.bf16.msra.mxu0 %v8511_v18  ;;  %10171 = vst [vmem:[#allocation59_spill] sm:$0xff] %v8778_v47  ;;  %v8781_v43 = vld [vmem:[#allocation9 + $0x284] ss:$24 sps:$4 sm:$0xff]  }
 0x6b7   : > { %4077 = vmatprep.subr.bf16.mxu0 %v8514_v21  ;;  %10172 = vst [vmem:[#allocation60_spill] sm:$0xff] %v8781_v43 }
 0x6b9   : > { %3899 = vmatpush1.bf16.msra.mxu1 %v8770_v36  ;;  %v8786_v36 = vld [vmem:[#allocation9 + $0x280] ss:$24 sps:$4 sm:$0xff]  }
 0x6ba   : > { %3900 = vmatprep.subr.bf16.mxu1 %v8773_v45  ;;  %4078 = vmatpush1.bf16.msra.mxu0 %v8519_v22  ;;  %10173 = vst [vmem:[#allocation63_spill] sm:$0xff] %v8786_v36  ;;  %v8789_v45 = vld [vmem:[#allocation9 + $0x2b4] ss:$24 sps:$4 sm:$0xff]  }
 0x6bb   : > { %4079 = vmatprep.subr.bf16.mxu0 %v8522_v25  ;;  %10174 = vst [vmem:[#allocation82_spill] sm:$0xff] %v8789_v45 }
 0x6bd   : > { %3901 = vmatpush1.bf16.msra.mxu1 %v8778_v47  ;;  %v8794_v47 = vld [vmem:[#allocation9 + $0x2b0] ss:$24 sps:$4 sm:$0xff]  }
 0x6be   : > { %3902 = vmatprep.subr.bf16.mxu1 %v8781_v43  ;;  %4080 = vmatpush1.bf16.msra.mxu0 %v8527_v26  ;;  %10175 = vst [vmem:[#allocation85_spill] sm:$0xff] %v8794_v47  ;;  %v8797_v43 = vld [vmem:[#allocation9 + $0x2e4] ss:$24 sps:$4 sm:$0xff]  }
 0x6bf   : > { %4081 = vmatprep.subr.bf16.mxu0 %v8530_v30  ;;  %10176 = vst [vmem:[#allocation86_spill] sm:$0xff] %v8797_v43  ;;  %v10207_v30 = vld [vmem:[#allocation52_spill] sm:$0xff] }
 0x6c0   : > { %vm4306_vm5 = vcmp.eq.s32.totalorder %v10207_v30, 4 }
 0x6c1   : > { %3903 = vmatpush1.bf16.msra.mxu1 %v8786_v36  ;;  %v8802_v36 = vld [vmem:[#allocation9 + $0x2e0] ss:$24 sps:$4 sm:$0xff]  }
 0x6c2   : > { %3904 = vmatprep.subr.bf16.mxu1 %v8789_v45  ;;  %4082 = vmatpush1.bf16.msra.mxu0 %v8535_v31  ;;  %10177 = vst [vmem:[#allocation87_spill] sm:$0xff] %v8802_v36  ;;  %v10206_v31 = vld [vmem:[#allocation24_spill] sm:$0xff] }
 0x6c3   : > { %4083 = vmatprep.subr.bf16.mxu0 %v8538_v34 }
 0x6c5   : > { %3905 = vmatpush1.bf16.msra.mxu1 %v8794_v47  ;;  %v3918_v47 = vld [vmem:[#allocation2 + $0x3] ss:$8 sm:$0x3] }
 0x6c6   : > { %3906 = vmatprep.subr.bf16.mxu1 %v8797_v43  ;;  %4084 = vmatpush1.bf16.msra.mxu0 %v8543_v9  ;;  %v10179_v9 = vld [vmem:[#allocation78_spill] sm:$0xff]  ;;  %v3925_v34 = vrot.slane %v3918_v47, %v10111_v20  ;;  %v3929_v45 = vrot.slane %v3918_v47, %v10206_v31 }
 0x6c7   : > { %4085 = vmatprep.subr.bf16.mxu0 %v8546_v35  ;;  %v10178_v35 = vld [vmem:[#allocation77_spill] sm:$0xff] }
 0x6c9   : > { %3907 = vmatpush1.bf16.msra.mxu1 %v8802_v36  ;;  %v10180_v36 = vld [vmem:[#allocation79_spill] sm:$0xff] }
 0x6ca   : > { %4096 = vmatprep.subr.bf16.mxu1 %v8550_v59  ;;  %4086 = vmatpush1.bf16.msra.mxu0 %v8553_v62  ;;  %v10181_v59 = vld [vmem:[#allocation80_spill] sm:$0xff]  ;;  %v10182_v62 = vld [vmem:[#allocation25_spill] sm:$0xff] }
 0x6cb   : > { %4137 = vmatprep.subr.bf16.mxu0 %v8556_v4  ;;  %v10183_v4 = vld [vmem:[#allocation26_spill] sm:$0xff] }
 0x6cc   : > { %3909 = vmatmul.mubr.bf16.vlgmr.msra.gmra.mrb[20].mxu1 %v8678_v19  ;;  %v10184_v19 = vld [vmem:[#allocation27_spill] sm:$0xff] }
 0x6cd   : > { %4097 = vmatpush1.bf16.msra.mxu1 %v8560_v5  ;;  %v10185_v5 = vld [vmem:[#allocation28_spill] sm:$0xff] }
 0x6ce   : > { %4098 = vmatprep.subr.bf16.mxu1 %v8563_v42  ;;  %v10186_v42 = vld [vmem:[#allocation29_spill] sm:$0xff] }
 0x6d1   : > { %4099 = vmatpush1.bf16.msra.mxu1 %v8566_v52  ;;  %v10187_v52 = vld [vmem:[#allocation30_spill] sm:$0xff] }
 0x6d2   : > { %4100 = vmatprep.subr.bf16.mxu1 %v8569_v28  ;;  %v10188_v28 = vld [vmem:[#allocation31_spill] sm:$0xff] }
 0x6d5   : > { %4101 = vmatpush1.bf16.msra.mxu1 %v10178_v35  ;;  %v10189_v35 = vld [vmem:[#allocation32_spill] sm:$0xff] }
 0x6d6   : > { %4102 = vmatprep.subr.bf16.mxu1 %v10179_v9  ;;  %v10190_v9 = vld [vmem:[#allocation33_spill] sm:$0xff] }
 0x6d9   : > { %4103 = vmatpush1.bf16.msra.mxu1 %v10180_v36  ;;  %v10191_v36 = vld [vmem:[#allocation34_spill] sm:$0xff] }
 0x6da   : > { %4104 = vmatprep.subr.bf16.mxu1 %v10181_v59  ;;  %v10192_v59 = vld [vmem:[#allocation35_spill] sm:$0xff] }
 0x6dd   : > { %4105 = vmatpush1.bf16.msra.mxu1 %v10182_v62  ;;  %v10193_v62 = vld [vmem:[#allocation36_spill] sm:$0xff] }
 0x6de   : > { %4106 = vmatprep.subr.bf16.mxu1 %v10183_v4  ;;  %v10194_v4 = vld [vmem:[#allocation37_spill] sm:$0xff] }
 0x6e1   : > { %4107 = vmatpush1.bf16.msra.mxu1 %v10184_v19  ;;  %v10195_v19 = vld [vmem:[#allocation38_spill] sm:$0xff] }
 0x6e2   : > { %4108 = vmatprep.subr.bf16.mxu1 %v10185_v5  ;;  %v10196_v5 = vld [vmem:[#allocation39_spill] sm:$0xff] }
 0x6e5   : > { %4109 = vmatpush1.bf16.msra.mxu1 %v10186_v42  ;;  %v10197_v42 = vld [vmem:[#allocation40_spill] sm:$0xff] }
 0x6e6   : > { %4110 = vmatprep.subr.bf16.mxu1 %v10187_v52  ;;  %v10198_v52 = vld [vmem:[#allocation41_spill] sm:$0xff] }
 0x6e9   : > { %4111 = vmatpush1.bf16.msra.mxu1 %v10188_v28  ;;  %v10199_v28 = vld [vmem:[#allocation42_spill] sm:$0xff] }
 0x6ea   : > { %4112 = vmatprep.subr.bf16.mxu1 %v10189_v35  ;;  %v10200_v35 = vld [vmem:[#allocation43_spill] sm:$0xff] }
 0x6ed   : > { %4113 = vmatpush1.bf16.msra.mxu1 %v10190_v9  ;;  %v8836_v9 = vld [vmem:[#allocation9 + $0x2ac] ss:$24 sps:$4 sm:$0xff]  }
 0x6ee   : > { %4114 = vmatprep.subr.bf16.mxu1 %v10191_v36  ;;  %10201 = vst [vmem:[#allocation88_spill] sm:$0xff] %v8836_v9 }
 0x6f1   : > { %4115 = vmatpush1.bf16.msra.mxu1 %v10192_v59  ;;  %v8839_v59 = vld [vmem:[#allocation9 + $0x2a8] ss:$24 sps:$4 sm:$0xff]  }
 0x6f2   : > { %4116 = vmatprep.subr.bf16.mxu1 %v10193_v62  ;;  %10202 = vst [vmem:[#allocation89_spill] sm:$0xff] %v8839_v59 }
 0x6f5   : > { %4117 = vmatpush1.bf16.msra.mxu1 %v10194_v4  ;;  %v8842_v4 = vld [vmem:[#allocation9 + $0x2dc] ss:$24 sps:$4 sm:$0xff]  }
 0x6f6   : > { %4118 = vmatprep.subr.bf16.mxu1 %v10195_v19  ;;  %10203 = vst [vmem:[#allocation90_spill] sm:$0xff] %v8842_v4 }
 0x6f9   : > { %4119 = vmatpush1.bf16.msra.mxu1 %v10196_v5  ;;  %v8845_v5 = vld [vmem:[#allocation9 + $0x2d8] ss:$24 sps:$4 sm:$0xff]  }
 0x6fa   : > { %4120 = vmatprep.subr.bf16.mxu1 %v10197_v42  ;;  %10204 = vst [vmem:[#allocation91_spill] sm:$0xff] %v8845_v5 }
 0x6fd   : > { %4121 = vmatpush1.bf16.msra.mxu1 %v10198_v52  ;;  %v10205_v52 = vld [vmem:[#allocation48_spill] sm:$0xff] }
 0x6fe   : > { %4122 = vmatprep.subr.bf16.mxu1 %v10199_v28 }
 0x701   : > { %4123 = vmatpush1.bf16.msra.mxu1 %v10200_v35 }
 0x702   : > { %4124 = vmatprep.subr.bf16.mxu1 %v8836_v9 }
 0x705   : > { %4125 = vmatpush1.bf16.msra.mxu1 %v8839_v59  ;;  %v3920_v59 = vld [vmem:[#allocation2 + $0x13] ss:$8 sm:$0x3] }
 0x706   : > { %4126 = vmatprep.subr.bf16.mxu1 %v8842_v4  ;;  %v3936_v4 = vrot.slane %v3920_v59, %v10111_v20 }
 0x708   : > { %v3943_v25 = vsel %vm3148_vm1, %v3925_v34, %v3936_v4 }
 0x709   : > { %4127 = vmatpush1.bf16.msra.mxu1 %v8845_v5  ;;  %v3940_v5 = vrot.slane %v3920_v59, %v10206_v31 }
 0x70a   : > { %4316 = vmatprep.subr.bf16.mxu1 %v10205_v52  ;;  %v10208_v52 = vmov 0  }
 0x70b   : > { %v4307_v26 = vsel %vm4306_vm5, 1, %v10208_v52 }
 0x70c   : > { %4309 = vperm.xlu0 %6511, %v4307_v26  }
 0x75f   : > { %v3828_v28 = vpop.f32.mrb[16].mxu1  ;;  %v3869_v35 = vpop.f32.mrb[20].mxu0 }
 0x760   : > { %v3830_v42 = vpop.f32.mrb[17].mxu1  ;;  %v3871_v19 = vpop.f32.mrb[21].mxu0 }
 0x761   : > { %v3832_v62 = vpop.f32.mrb[18].mxu1  ;;  %v3873_v9 = vpop.f32.mrb[22].mxu0 }
 0x762   : > { %v3833_v36 = vpop.f32.mrb[19].mxu1  ;;  %v3874_v43 = vpop.f32.mrb[23].mxu0  ;;  %v3944_v9 = vsel %vm3148_vm1, %v3929_v45, %v3940_v5  ;;  %v3960_v62 = vld [vmem:[#allocation2 + $0x23] ss:$8 sm:$0x3] }
 0x763   : > { %v3945_v43 = vadd.f32 %v3943_v25, %v3828_v28  ;;  %v3962_v36 = vld [vmem:[#allocation2 + $0x33] ss:$8 sm:$0x3]  ;;  %v3946_v22 = vadd.f32 %v3944_v9, %v3830_v42  ;;  %v3967_v18 = vrot.slane %v3960_v62, %v10111_v20  ;;  %v3971_v59 = vrot.slane %v3960_v62, %v10206_v31 }
 0x764   : > { %v3978_v47 = vrot.slane %v3962_v36, %v10111_v20  ;;  %v3982_v30 = vrot.slane %v3962_v36, %v10206_v31  ;;  %v4004_v62 = vld [vmem:[#allocation2 + $0x53] ss:$8 sm:$0x3] }
 0x765   : > { %v5847_v21 = vmul.f32 -1.442695, %v3945_v43  ;;  %v5848_v17 = vmul.f32 -1.442695, %v3946_v22 }
 0x766   : > { %v3985_v34 = vsel %vm3148_vm1, %v3967_v18, %v3978_v47  ;;  %v3986_v26 = vsel %vm3148_vm1, %v3971_v59, %v3982_v30  ;;  %v4002_v43 = vld [vmem:[#allocation2 + $0x43] ss:$8 sm:$0x3]  ;;  %v4020_v18 = vrot.slane %v4004_v62, %v10111_v20 }
 0x767   : > { %6717 = vpow2.f32 %v5847_v21  ;;  %v3987_v25 = vadd.f32 %v3985_v34, %v3869_v35  ;;  %v3988_v4 = vadd.f32 %v3986_v26, %v3871_v19  ;;  %v4013_v35 = vrot.slane %v4002_v43, %v10206_v31  ;;  %v10209_v34 = vld [vmem:[#allocation81_spill] sm:$0xff] }
 0x768   : > { %6719 = vpow2.f32 %v5848_v17  ;;  %v4009_v17 = vrot.slane %v4002_v43, %v10111_v20  ;;  %v4024_v19 = vrot.slane %v4004_v62, %v10206_v31 }
 0x769   : > { %v5849_v5 = vmul.f32 -1.442695, %v3987_v25  ;;  %v5850_v42 = vmul.f32 -1.442695, %v3988_v4 }
 0x76b   : > { %6721 = vpow2.f32 %v5849_v5  ;;  %v4027_v5 = vsel %vm3148_vm1, %v4009_v17, %v4020_v18 }
 0x76c   : > { %6723 = vpow2.f32 %v5850_v42 }
 0x771   : > { %v6718_v28 = vpop.eup %6717 }
 0x772   : > { %v6720_v45 = vpop.eup %6719  ;;  %v3953_v9 = vadd.f32 1.0, %v6718_v28 }
 0x773   : > { %v3954_v22 = vadd.f32 1.0, %v6720_v45 }
 0x774   : > { %6725 = vrcp.f32 %v3953_v9 }
 0x775   : > { %6727 = vrcp.f32 %v3954_v22  ;;  %v6722_v21 = vpop.eup %6721  ;;  %v4028_v22 = vsel %vm3148_vm1, %v4013_v35, %v4024_v19 }
 0x776   : > { %v6724_v36 = vpop.eup %6723  ;;  %v3995_v30 = vadd.f32 1.0, %v6722_v21 }
 0x777   : > { %v3996_v47 = vadd.f32 1.0, %v6724_v36 }
 0x778   : > { %6729 = vrcp.f32 %v3995_v30 }
 0x779   : > { %6731 = vrcp.f32 %v3996_v47 }
 0x77e   : > { %v6726_v4 = vpop.eup %6725 }
 0x77f   : > { %v6728_v45 = vpop.eup %6727 }
 0x79f   : > { %v3910_v59 = vpop.f32.mrb[20].mxu1 }
 0x7a0   : > { %v4029_v26 = vadd.f32 %v3910_v59, %v10209_v34  ;;  %v3912_v25 = vpop.f32.mrb[21].mxu1  ;;  %v6730_v59 = vpop.eup %6729 }
 0x7a1   : > { %v4030_v42 = vadd.f32 %v3912_v25, %v10116_v0  ;;  %v3914_v28 = vpop.f32.mrb[22].mxu1  ;;  %v6732_v34 = vpop.eup %6731  ;;  %v4037_v52 = vsub.f32 1.0, %v6730_v59 }
 0x7a2   : > { %v4031_v9 = vmul.f32 %v6726_v4, %v4029_v26  ;;  %v3915_v21 = vpop.f32.mrb[23].mxu1  ;;  %v4038_v17 = vsub.f32 1.0, %v6732_v34  ;;  %v4041_v28 = vmul.f32 %v6730_v59, %v8670_v39  ;;  %v4042_v26 = vmul.f32 %v6732_v34, %v8672_v38  ;;  %v10233_v34 = vld [vmem:[#allocation68_spill] sm:$0xff]  ;;  %v10243_v59 = vld [vmem:[#allocation77_spill] sm:$0xff] }
 0x7a3   : > { %v4032_v43 = vmul.f32 %v6728_v45, %v4030_v42  ;;  %v10235_v42 = vld [vmem:[#allocation87_spill] sm:$0xff]  ;;  %v10236_v45 = vld [vmem:[#allocation70_spill] sm:$0xff]  ;;  %v10239_v21 = vld [vmem:[#allocation73_spill] sm:$0xff] }
 0x7a4   : > { %v4033_v62 = vadd.f32 %v4031_v9, %v4027_v5  ;;  %v10234_v5 = vld [vmem:[#allocation69_spill] sm:$0xff]  ;;  %v10237_v9 = vld [vmem:[#allocation71_spill] sm:$0xff] }
 0x7a5   : > { %v4034_v36 = vadd.f32 %v4032_v43, %v4028_v22  ;;  %v10238_v22 = vld [vmem:[#allocation72_spill] sm:$0xff]  ;;  %v10240_v43 = vld [vmem:[#allocation74_spill] sm:$0xff] }
 0x7a6   : > { %6733 = vtanh.f32 %v4033_v62  ;;  %v10241_v62 = vld [vmem:[#allocation75_spill] sm:$0xff] }
 0x7a7   : > { %6735 = vtanh.f32 %v4034_v36  ;;  %v10242_v36 = vld [vmem:[#allocation76_spill] sm:$0xff] }
 0x7b0   : > { %v6734_v31 = vpop.eup %6733 }
 0x7b1   : > { %v6736_v18 = vpop.eup %6735  ;;  %v4039_v25 = vmul.f32 %v6734_v31, %v4037_v52  ;;  %v10231_v31 = vld [vmem:[#allocation85_spill] sm:$0xff]  ;;  %v10232_v52 = vld [vmem:[#allocation86_spill] sm:$0xff] }
 0x7b2   : > { %v4040_v30 = vmul.f32 %v6736_v18, %v4038_v17  ;;  %v10244_v17 = vld [vmem:[#allocation78_spill] sm:$0xff]  ;;  %v10245_v18 = vld [vmem:[#allocation79_spill] sm:$0xff] }
 0x7b3   : > { %v8873_v35 = vadd.f32 %v4041_v28, %v4039_v25  ;;  %v10246_v25 = vld [vmem:[#allocation80_spill] sm:$0xff]  ;;  %v10247_v28 = vld [vmem:[#allocation25_spill] sm:$0xff] }
 0x7b4   : > { %v8875_v19 = vadd.f32 %v4042_v26, %v4040_v30  ;;  %v10248_v30 = vld [vmem:[#allocation26_spill] sm:$0xff]  ;;  %v10249_v26 = vld [vmem:[#allocation27_spill] sm:$0xff] }
 0x7b5   : > { %10210 = vst [vmem:[#allocation48_spill] sm:$0xff] %v8873_v35  ;;  %v8881_v4 = vpack.c.bf16 %v8873_v35, %v8873_v35 }
 0x7b6   : > { %10211 = vst [vmem:[#allocation92_spill] sm:$0xff] %v8875_v19  ;;  %v4054_v47 = vpack.c.bf16 %v8875_v19, %v8875_v19 }
 0x7b8   : > { %4087 = vmatprep.mubr.bf16.mxu0 %v4054_v47  ;;  %4128 = vmatprep.mubr.bf16.mxu1 %v4054_v47 }
 0x7b9   : > { %4088 = vmatmul.mubr.bf16.vlgmr.msra.gmra.mrb[24].mxu0 %v8881_v4  ;;  %4129 = vmatmul.mubr.bf16.vlgmr.msra.gmra.mrb[24].mxu1 %v8881_v4 }
 0x7ba   : > { %4138 = vmatpush1.bf16.msra.mxu0 %v8682_v3  ;;  %4169 = vmatprep.mubr.bf16.mxu0 %v4054_v47  ;;  %v10250_v47 = vld [vmem:[#allocation28_spill] sm:$0xff] }
 0x7bb   : > { %4139 = vmatprep.subr.bf16.mxu0 %v8685_v61  ;;  %4317 = vmatpush1.bf16.msra.mxu1 %v8431_v48  ;;  %v10212_v48 = vld [vmem:[#allocation46_spill] sm:$0xff] }
 0x7bc   : > { %4318 = vmatprep.subr.bf16.mxu1 %v8434_v29  ;;  %v10213_v29 = vld [vmem:[#allocation47_spill] sm:$0xff] }
 0x7be   : > { %4140 = vmatpush1.bf16.msra.mxu0 %v8690_v63 }
 0x7bf   : > { %4141 = vmatprep.subr.bf16.mxu0 %v8693_v54  ;;  %4319 = vmatpush1.bf16.msra.mxu1 %v8439_v53  ;;  %v10214_v53 = vld [vmem:[#allocation54_spill] sm:$0xff] }
 0x7c0   : > { %4320 = vmatprep.subr.bf16.mxu1 %v8442_v23  ;;  %v10215_v23 = vld [vmem:[#allocation50_spill] sm:$0xff] }
 0x7c2   : > { %4142 = vmatpush1.bf16.msra.mxu0 %v8698_v56 }
 0x7c3   : > { %4143 = vmatprep.subr.bf16.mxu0 %v8701_v55  ;;  %4321 = vmatpush1.bf16.msra.mxu1 %v8447_v49  ;;  %v10216_v49 = vld [vmem:[#allocation51_spill] sm:$0xff] }
 0x7c4   : > { %4322 = vmatprep.subr.bf16.mxu1 %v8450_v60  ;;  %v10217_v60 = vld [vmem:[#allocation57_spill] sm:$0xff] }
 0x7c6   : > { %4144 = vmatpush1.bf16.msra.mxu0 %v8706_v33 }
 0x7c7   : > { %4145 = vmatprep.subr.bf16.mxu0 %v8709_v27  ;;  %4323 = vmatpush1.bf16.msra.mxu1 %v8455_v6  ;;  %v10218_v6 = vld [vmem:[#allocation58_spill] sm:$0xff] }
 0x7c8   : > { %4324 = vmatprep.subr.bf16.mxu1 %v8458_v40  ;;  %v10219_v40 = vld [vmem:[#allocation55_spill] sm:$0xff] }
 0x7ca   : > { %4146 = vmatpush1.bf16.msra.mxu0 %v8714_v50 }
 0x7cb   : > { %4147 = vmatprep.subr.bf16.mxu0 %v8717_v46  ;;  %4325 = vmatpush1.bf16.msra.mxu1 %v8463_v41  ;;  %v10220_v41 = vld [vmem:[#allocation56_spill] sm:$0xff] }
 0x7cc   : > { %4326 = vmatprep.subr.bf16.mxu1 %v8466_v2  ;;  %v10221_v2 = vld [vmem:[#allocation61_spill] sm:$0xff] }
 0x7ce   : > { %4148 = vmatpush1.bf16.msra.mxu0 %v8722_v57 }
 0x7cf   : > { %4149 = vmatprep.subr.bf16.mxu0 %v8725_v1  ;;  %4327 = vmatpush1.bf16.msra.mxu1 %v8471_v44  ;;  %v10222_v44 = vld [vmem:[#allocation62_spill] sm:$0xff] }
 0x7d0   : > { %4328 = vmatprep.subr.bf16.mxu1 %v8474_v8  ;;  %v10223_v8 = vld [vmem:[#allocation59_spill] sm:$0xff] }
 0x7d2   : > { %4150 = vmatpush1.bf16.msra.mxu0 %v8730_v7 }
 0x7d3   : > { %4151 = vmatprep.subr.bf16.mxu0 %v8733_v32  ;;  %4329 = vmatpush1.bf16.msra.mxu1 %v8479_v10  ;;  %v10224_v10 = vld [vmem:[#allocation60_spill] sm:$0xff] }
 0x7d4   : > { %4330 = vmatprep.subr.bf16.mxu1 %v8482_v11  ;;  %v10225_v11 = vld [vmem:[#allocation64_spill] sm:$0xff] }
 0x7d6   : > { %4152 = vmatpush1.bf16.msra.mxu0 %v8738_v24 }
 0x7d7   : > { %4153 = vmatprep.subr.bf16.mxu0 %v8741_v58  ;;  %4331 = vmatpush1.bf16.msra.mxu1 %v8487_v12  ;;  %v10226_v12 = vld [vmem:[#allocation65_spill] sm:$0xff] }
 0x7d8   : > { %4332 = vmatprep.subr.bf16.mxu1 %v8490_v13  ;;  %v10227_v13 = vld [vmem:[#allocation63_spill] sm:$0xff] }
 0x7da   : > { %4154 = vmatpush1.bf16.msra.mxu0 %v8746_v37 }
 0x7db   : > { %4155 = vmatprep.subr.bf16.mxu0 %v8749_v51  ;;  %4333 = vmatpush1.bf16.msra.mxu1 %v8495_v14  ;;  %v10228_v14 = vld [vmem:[#allocation82_spill] sm:$0xff] }
 0x7dc   : > { %4334 = vmatprep.subr.bf16.mxu1 %v8498_v15  ;;  %v10229_v15 = vld [vmem:[#allocation66_spill] sm:$0xff] }
 0x7de   : > { %4156 = vmatpush1.bf16.msra.mxu0 %v10212_v48 }
 0x7df   : > { %4157 = vmatprep.subr.bf16.mxu0 %v10213_v29  ;;  %4335 = vmatpush1.bf16.msra.mxu1 %v8503_v16  ;;  %v10230_v16 = vld [vmem:[#allocation67_spill] sm:$0xff] }
 0x7e0   : > { %4336 = vmatprep.subr.bf16.mxu1 %v10214_v53  ;;  %v10252_v53 = vld [vmem:[#allocation30_spill] sm:$0xff] }
 0x7e2   : > { %4158 = vmatpush1.bf16.msra.mxu0 %v10215_v23 }
 0x7e3   : > { %4159 = vmatprep.subr.bf16.mxu0 %v10216_v49  ;;  %4337 = vmatpush1.bf16.msra.mxu1 %v10217_v60  ;;  %v10253_v60 = vld [vmem:[#allocation31_spill] sm:$0xff] }
 0x7e4   : > { %4338 = vmatprep.subr.bf16.mxu1 %v10218_v6  ;;  %v10254_v6 = vld [vmem:[#allocation32_spill] sm:$0xff] }
 0x7e6   : > { %4160 = vmatpush1.bf16.msra.mxu0 %v10219_v40 }
 0x7e7   : > { %4161 = vmatprep.subr.bf16.mxu0 %v10220_v41  ;;  %4339 = vmatpush1.bf16.msra.mxu1 %v10221_v2  ;;  %v10255_v2 = vld [vmem:[#allocation33_spill] sm:$0xff] }
 0x7e8   : > { %4340 = vmatprep.subr.bf16.mxu1 %v10222_v44  ;;  %v10256_v44 = vld [vmem:[#allocation34_spill] sm:$0xff] }
 0x7ea   : > { %4162 = vmatpush1.bf16.msra.mxu0 %v10223_v8 }
 0x7eb   : > { %4163 = vmatprep.subr.bf16.mxu0 %v10224_v10  ;;  %4341 = vmatpush1.bf16.msra.mxu1 %v10225_v11  ;;  %v10257_v11 = vld [vmem:[#allocation35_spill] sm:$0xff] }
 0x7ec   : > { %4342 = vmatprep.subr.bf16.mxu1 %v10226_v12  ;;  %v10258_v12 = vld [vmem:[#allocation36_spill] sm:$0xff] }
 0x7ee   : > { %4164 = vmatpush1.bf16.msra.mxu0 %v10227_v13 }
 0x7ef   : > { %4165 = vmatprep.subr.bf16.mxu0 %v10228_v14  ;;  %4343 = vmatpush1.bf16.msra.mxu1 %v10229_v15  ;;  %v10259_v15 = vld [vmem:[#allocation37_spill] sm:$0xff] }
 0x7f0   : > { %4344 = vmatprep.subr.bf16.mxu1 %v10230_v16  ;;  %v10260_v16 = vld [vmem:[#allocation38_spill] sm:$0xff] }
 0x7f2   : > { %4166 = vmatpush1.bf16.msra.mxu0 %v10231_v31 }
 0x7f3   : > { %4167 = vmatprep.subr.bf16.mxu0 %v10232_v52  ;;  %4345 = vmatpush1.bf16.msra.mxu1 %v10233_v34  ;;  %v10261_v34 = vld [vmem:[#allocation39_spill] sm:$0xff] }
 0x7f4   : > { %4346 = vmatprep.subr.bf16.mxu1 %v10234_v5  ;;  %v10262_v5 = vld [vmem:[#allocation40_spill] sm:$0xff] }
 0x7f6   : > { %4168 = vmatpush1.bf16.msra.mxu0 %v10235_v42 }
 0x7f7   : > { %4357 = vmatprep.subr.bf16.mxu0 %v10236_v45  ;;  %4347 = vmatpush1.bf16.msra.mxu1 %v10237_v9  ;;  %v10263_v45 = vld [vmem:[#allocation41_spill] sm:$0xff]  ;;  %v10264_v9 = vld [vmem:[#allocation42_spill] sm:$0xff] }
 0x7f8   : > { %4398 = vmatprep.subr.bf16.mxu1 %v10238_v22  ;;  %v10265_v22 = vld [vmem:[#allocation43_spill] sm:$0xff] }
 0x7f9   : > { %4170 = vmatmul.mubr.bf16.vlgmr.msra.gmra.mrb[28].mxu0 %v8881_v4  ;;  %v10251_v4 = vld [vmem:[#allocation29_spill] sm:$0xff] }
 0x7fa   : > { %4358 = vmatpush1.bf16.msra.mxu0 %v10239_v21  ;;  %v10266_v21 = vld [vmem:[#allocation88_spill] sm:$0xff] }
 0x7fb   : > { %4359 = vmatprep.subr.bf16.mxu0 %v10240_v43  ;;  %v10267_v43 = vld [vmem:[#allocation89_spill] sm:$0xff] }
 0x7fe   : > { %4360 = vmatpush1.bf16.msra.mxu0 %v10241_v62  ;;  %v10268_v62 = vld [vmem:[#allocation90_spill] sm:$0xff] }
 0x7ff   : > { %4361 = vmatprep.subr.bf16.mxu0 %v10242_v36  ;;  %v10269_v36 = vld [vmem:[#allocation91_spill] sm:$0xff] }
 0x802   : > { %4362 = vmatpush1.bf16.msra.mxu0 %v10243_v59  ;;  %v8981_v59 = vld [vmem:[#allocation9 + $0x4] ss:$24 sps:$4 sm:$0xff]  }
 0x803   : > { %4363 = vmatprep.subr.bf16.mxu0 %v10244_v17 }
 0x806   : > { %4364 = vmatpush1.bf16.msra.mxu0 %v10245_v18 }
 0x807   : > { %4365 = vmatprep.subr.bf16.mxu0 %v10246_v25 }
 0x80a   : > { %4366 = vmatpush1.bf16.msra.mxu0 %v10247_v28 }
 0x80b   : > { %4367 = vmatprep.subr.bf16.mxu0 %v10248_v30 }
 0x80e   : > { %4368 = vmatpush1.bf16.msra.mxu0 %v10249_v26 }
 0x80f   : > { %4369 = vmatprep.subr.bf16.mxu0 %v10250_v47 }
 0x812   : > { %4370 = vmatpush1.bf16.msra.mxu0 %v10251_v4 }
 0x813   : > { %4371 = vmatprep.subr.bf16.mxu0 %v10252_v53  ;;  %v4179_v53 = vld [vmem:[#allocation2 + $0x4] ss:$8 sm:$0x3] }
 0x816   : > { %4372 = vmatpush1.bf16.msra.mxu0 %v10253_v60  ;;  %v4181_v60 = vld [vmem:[#allocation2 + $0x14] ss:$8 sm:$0x3] }
 0x817   : > { %4373 = vmatprep.subr.bf16.mxu0 %v10254_v6  ;;  %v4186_v6 = vrot.slane %v4179_v53, %v10111_v20 }
 0x81a   : > { %4374 = vmatpush1.bf16.msra.mxu0 %v10255_v2  ;;  %v4197_v2 = vrot.slane %v4181_v60, %v10111_v20 }
 0x81b   : > { %4375 = vmatprep.subr.bf16.mxu0 %v10256_v44  ;;  %v10270_v44 = vld [vmem:[#allocation24_spill] sm:$0xff] }
 0x81e   : > { %4376 = vmatpush1.bf16.msra.mxu0 %v10257_v11  ;;  %v4190_v11 = vrot.slane %v4179_v53, %v10270_v44 }
 0x81f   : > { %4377 = vmatprep.subr.bf16.mxu0 %v10258_v12  ;;  %v4201_v12 = vrot.slane %v4181_v60, %v10270_v44 }
 0x822   : > { %4378 = vmatpush1.bf16.msra.mxu0 %v10259_v15  ;;  %v10271_v15 = vld [vmem:[#allocation52_spill] sm:$0xff] }
 0x823   : > { %4379 = vmatprep.subr.bf16.mxu0 %v10260_v16  ;;  %vm4567_vm6 = vcmp.eq.s32.totalorder %v10271_v15, 5  ;;  %v10272_v16 = vmov 0  }
 0x826   : > { %4380 = vmatpush1.bf16.msra.mxu0 %v10261_v34  ;;  %v4568_v34 = vsel %vm4567_vm6, 1, %v10272_v16 }
 0x827   : > { %4381 = vmatprep.subr.bf16.mxu0 %v10262_v5  ;;  %v4204_v5 = vsel %vm3148_vm1, %v4186_v6, %v4197_v2  ;;  %4570 = vperm.xlu1 %6512, %v4568_v34  }
 0x82a   : > { %4382 = vmatpush1.bf16.msra.mxu0 %v10263_v45  ;;  %v4205_v45 = vsel %vm3148_vm1, %v4190_v11, %v4201_v12 }
 0x82b   : > { %4383 = vmatprep.subr.bf16.mxu0 %v10264_v9 }
 0x82e   : > { %4384 = vmatpush1.bf16.msra.mxu0 %v10265_v22  ;;  %v4221_v22 = vld [vmem:[#allocation2 + $0x24] ss:$8 sm:$0x3] }
 0x82f   : > { %4385 = vmatprep.subr.bf16.mxu0 %v10266_v21  ;;  %v4232_v60 = vrot.slane %v4221_v22, %v10270_v44 }
 0x832   : > { %4386 = vmatpush1.bf16.msra.mxu0 %v10267_v43 }
 0x833   : > { %4387 = vmatprep.subr.bf16.mxu0 %v10268_v62 }
 0x836   : > { %4388 = vmatpush1.bf16.msra.mxu0 %v10269_v36 }
 0x837   : > { %4577 = vmatprep.subr.bf16.mxu0 %v8981_v59 }
 0x88c   : > { %v4089_v17 = vpop.f32.mrb[24].mxu0  ;;  %v4130_v18 = vpop.f32.mrb[24].mxu1 }
 0x88d   : > { %v4091_v25 = vpop.f32.mrb[25].mxu0  ;;  %v4132_v28 = vpop.f32.mrb[25].mxu1  ;;  %v4206_v9 = vadd.f32 %v4204_v5, %v4089_v17 }
 0x88e   : > { %v4093_v30 = vpop.f32.mrb[26].mxu0  ;;  %v4134_v26 = vpop.f32.mrb[26].mxu1 }
 0x88f   : > { %v4094_v47 = vpop.f32.mrb[27].mxu0  ;;  %v4135_v4 = vpop.f32.mrb[27].mxu1  ;;  %v4223_v30 = vld [vmem:[#allocation2 + $0x34] ss:$8 sm:$0x3]  ;;  %v4207_v26 = vadd.f32 %v4205_v45, %v4091_v25 }
 0x890   : > { %v5851_v47 = vmul.f32 -1.442695, %v4206_v9  ;;  %v4228_v4 = vrot.slane %v4221_v22, %v10111_v20  ;;  %v4239_v53 = vrot.slane %v4223_v30, %v10111_v20  ;;  %v4243_v39 = vrot.slane %v4223_v30, %v10270_v44  ;;  %v4263_v22 = vld [vmem:[#allocation2 + $0x44] ss:$8 sm:$0x3] }
 0x891   : > { %v5852_v38 = vmul.f32 -1.442695, %v4207_v26  ;;  %v4265_v30 = vld [vmem:[#allocation2 + $0x54] ss:$8 sm:$0x3] }
 0x892   : > { %6737 = vpow2.f32 %v5851_v47  ;;  %v4246_v6 = vsel %vm3148_vm1, %v4228_v4, %v4239_v53  ;;  %v4247_v2 = vsel %vm3148_vm1, %v4232_v60, %v4243_v39  ;;  %v4281_v39 = vrot.slane %v4265_v30, %v10111_v20 }
 0x893   : > { %6739 = vpow2.f32 %v5852_v38  ;;  %v4248_v17 = vadd.f32 %v4246_v6, %v4130_v18  ;;  %v4249_v11 = vadd.f32 %v4247_v2, %v4132_v28  ;;  %v4270_v38 = vrot.slane %v4263_v22, %v10111_v20  ;;  %v10273_v6 = vld [vmem:[#allocation81_spill] sm:$0xff] }
 0x894   : > { %v4274_v28 = vrot.slane %v4263_v22, %v10270_v44  ;;  %v4285_v4 = vrot.slane %v4265_v30, %v10270_v44 }
 0x895   : > { %v5853_v12 = vmul.f32 -1.442695, %v4248_v17  ;;  %v5854_v25 = vmul.f32 -1.442695, %v4249_v11 }
 0x897   : > { %6741 = vpow2.f32 %v5853_v12  ;;  %v4288_v12 = vsel %vm3148_vm1, %v4270_v38, %v4281_v39 }
 0x898   : > { %6743 = vpow2.f32 %v5854_v25 }
 0x89c   : > { %v6738_v34 = vpop.eup %6737 }
 0x89d   : > { %v6740_v5 = vpop.eup %6739  ;;  %v4214_v45 = vadd.f32 1.0, %v6738_v34 }
 0x89e   : > { %v4215_v9 = vadd.f32 1.0, %v6740_v5 }
 0x89f   : > { %6745 = vrcp.f32 %v4214_v45 }
 0x8a0   : > { %6747 = vrcp.f32 %v4215_v9  ;;  %v4289_v9 = vsel %vm3148_vm1, %v4274_v28, %v4285_v4 }
 0x8a1   : > { %v6742_v26 = vpop.eup %6741 }
 0x8a2   : > { %v6744_v47 = vpop.eup %6743  ;;  %v4256_v18 = vadd.f32 1.0, %v6742_v26 }
 0x8a3   : > { %v4257_v53 = vadd.f32 1.0, %v6744_v47 }
 0x8a4   : > { %6749 = vrcp.f32 %v4256_v18 }
 0x8a5   : > { %6751 = vrcp.f32 %v4257_v53 }
 0x8a9   : > { %v6746_v11 = vpop.eup %6745 }
 0x8aa   : > { %v6748_v5 = vpop.eup %6747 }
 0x8cc   : > { %v4171_v60 = vpop.f32.mrb[28].mxu0 }
 0x8cd   : > { %v4290_v2 = vadd.f32 %v4171_v60, %v10273_v6  ;;  %v4173_v17 = vpop.f32.mrb[29].mxu0  ;;  %v6750_v60 = vpop.eup %6749 }
 0x8ce   : > { %v4291_v25 = vadd.f32 %v4173_v17, %v10116_v0  ;;  %v4175_v34 = vpop.f32.mrb[30].mxu0  ;;  %v6752_v6 = vpop.eup %6751  ;;  %v4298_v16 = vsub.f32 1.0, %v6750_v60 }
 0x8cf   : > { %v4292_v45 = vmul.f32 %v6746_v11, %v4290_v2  ;;  %v4176_v26 = vpop.f32.mrb[31].mxu0  ;;  %v4299_v38 = vsub.f32 1.0, %v6752_v6  ;;  %v4302_v34 = vmul.f32 %v6750_v60, %v8873_v35  ;;  %v4303_v2 = vmul.f32 %v6752_v6, %v8875_v19  ;;  %v9030_v6 = vld [vmem:[#allocation9 + $0x30] ss:$24 sps:$4 sm:$0xff]   ;;  %v9208_v35 = vld [vmem:[#allocation9 + $0x1ec] ss:$24 sps:$4 sm:$0xff]  }
 0x8d0   : > { %v4293_v22 = vmul.f32 %v6748_v5, %v4291_v25  ;;  %v9154_v25 = vld [vmem:[#allocation9 + $0x3c] ss:$24 sps:$4 sm:$0xff]   ;;  %v9160_v5 = vld [vmem:[#allocation9 + $0x6c] ss:$24 sps:$4 sm:$0xff]   ;;  %v9169_v26 = vld [vmem:[#allocation9 + $0x98] ss:$24 sps:$4 sm:$0xff]  }
 0x8d1   : > { %v4294_v30 = vadd.f32 %v4292_v45, %v4288_v12  ;;  %v9041_v12 = vld [vmem:[#allocation9 + $0x94] ss:$24 sps:$4 sm:$0xff]   ;;  %v9163_v45 = vld [vmem:[#allocation9 + $0x68] ss:$24 sps:$4 sm:$0xff]   ;;  %10276 = vst [vmem:[#allocation54_spill] sm:$0xff] %v9169_v26  ;;  %10289 = vst [vmem:[#allocation63_spill] sm:$0xff] %v9208_v35 }
 0x8d2   : > { %v4295_v47 = vadd.f32 %v4293_v22, %v4289_v9  ;;  %10274 = vst [vmem:[#allocation46_spill] sm:$0xff] %v9163_v45  ;;  %v9166_v9 = vld [vmem:[#allocation9 + $0x9c] ss:$24 sps:$4 sm:$0xff]   ;;  %v9172_v22 = vld [vmem:[#allocation9 + $0xcc] ss:$24 sps:$4 sm:$0xff]  }
 0x8d3   : > { %6753 = vtanh.f32 %v4294_v30  ;;  %10275 = vst [vmem:[#allocation47_spill] sm:$0xff] %v9166_v9  ;;  %10277 = vst [vmem:[#allocation50_spill] sm:$0xff] %v9172_v22  ;;  %v9175_v30 = vld [vmem:[#allocation9 + $0xc8] ss:$24 sps:$4 sm:$0xff]   ;;  %v9181_v60 = vld [vmem:[#allocation9 + $0xf8] ss:$24 sps:$4 sm:$0xff]  }
 0x8d4   : > { %6755 = vtanh.f32 %v4295_v47  ;;  %10278 = vst [vmem:[#allocation51_spill] sm:$0xff] %v9175_v30  ;;  %v9178_v47 = vld [vmem:[#allocation9 + $0xfc] ss:$24 sps:$4 sm:$0xff]   ;;  %10280 = vst [vmem:[#allocation58_spill] sm:$0xff] %v9181_v60  ;;  %v9211_v19 = vld [vmem:[#allocation9 + $0x1e8] ss:$24 sps:$4 sm:$0xff]  }
 0x8d5   : > { %10279 = vst [vmem:[#allocation57_spill] sm:$0xff] %v9178_v47  ;;  %10290 = vst [vmem:[#allocation82_spill] sm:$0xff] %v9211_v19 }
 0x8dd   : > { %v6754_v15 = vpop.eup %6753 }
 0x8de   : > { %v6756_v39 = vpop.eup %6755  ;;  %v4300_v17 = vmul.f32 %v6754_v15, %v4298_v16  ;;  %v9022_v15 = vld [vmem:[#allocation9] ss:$24 sps:$4 sm:$0xff]   ;;  %v9025_v16 = vld [vmem:[#allocation9 + $0x34] ss:$24 sps:$4 sm:$0xff]  }
 0x8df   : > { %v4301_v18 = vmul.f32 %v6756_v39, %v4299_v38  ;;  %v9184_v38 = vld [vmem:[#allocation9 + $0x12c] ss:$24 sps:$4 sm:$0xff]   ;;  %v9187_v39 = vld [vmem:[#allocation9 + $0x128] ss:$24 sps:$4 sm:$0xff]  }
 0x8e0   : > { %v9008_v28 = vadd.f32 %v4302_v34, %v4300_v17  ;;  %10281 = vst [vmem:[#allocation55_spill] sm:$0xff] %v9184_v38  ;;  %10282 = vst [vmem:[#allocation56_spill] sm:$0xff] %v9187_v39  ;;  %v9190_v17 = vld [vmem:[#allocation9 + $0x15c] ss:$24 sps:$4 sm:$0xff]   ;;  %v9193_v34 = vld [vmem:[#allocation9 + $0x158] ss:$24 sps:$4 sm:$0xff]  }
 0x8e1   : > { %v9010_v4 = vadd.f32 %v4303_v2, %v4301_v18  ;;  %10283 = vst [vmem:[#allocation61_spill] sm:$0xff] %v9190_v17  ;;  %10284 = vst [vmem:[#allocation62_spill] sm:$0xff] %v9193_v34  ;;  %v9196_v18 = vld [vmem:[#allocation9 + $0x18c] ss:$24 sps:$4 sm:$0xff]   ;;  %v9199_v2 = vld [vmem:[#allocation9 + $0x188] ss:$24 sps:$4 sm:$0xff]  }
 0x8e2   : > { %v9016_v11 = vpack.c.bf16 %v9008_v28, %v9008_v28  ;;  %10285 = vst [vmem:[#allocation59_spill] sm:$0xff] %v9196_v18  ;;  %10286 = vst [vmem:[#allocation60_spill] sm:$0xff] %v9199_v2 }
 0x8e3   : > { %v4315_v53 = vpack.c.bf16 %v9010_v4, %v9010_v4 }
 0x8e5   : > { %4348 = vmatprep.mubr.bf16.mxu1 %v4315_v53  ;;  %4389 = vmatprep.mubr.bf16.mxu0 %v4315_v53 }
 0x8e6   : > { %4349 = vmatmul.mubr.bf16.vlgmr.msra.gmra.mrb[28].mxu1 %v9016_v11  ;;  %4390 = vmatmul.mubr.bf16.vlgmr.msra.gmra.mrb[32].mxu0 %v9016_v11 }
 0x8e7   : > { %4399 = vmatpush1.bf16.msra.mxu1 %v8682_v3  ;;  %4430 = vmatprep.mubr.bf16.mxu1 %v4315_v53  ;;  %v9033_v3 = vld [vmem:[#allocation9 + $0x64] ss:$24 sps:$4 sm:$0xff]  }
 0x8e8   : > { %4400 = vmatprep.subr.bf16.mxu1 %v8685_v61  ;;  %4578 = vmatpush1.bf16.msra.mxu0 %v9022_v15  ;;  %v9038_v61 = vld [vmem:[#allocation9 + $0x60] ss:$24 sps:$4 sm:$0xff]   ;;  %v9202_v53 = vld [vmem:[#allocation9 + $0x1bc] ss:$24 sps:$4 sm:$0xff]  }
 0x8e9   : > { %4579 = vmatprep.subr.bf16.mxu0 %v9025_v16  ;;  %10287 = vst [vmem:[#allocation64_spill] sm:$0xff] %v9202_v53 }
 0x8eb   : > { %4401 = vmatpush1.bf16.msra.mxu1 %v8690_v63  ;;  %v9046_v63 = vld [vmem:[#allocation9 + $0x90] ss:$24 sps:$4 sm:$0xff]  }
 0x8ec   : > { %4402 = vmatprep.subr.bf16.mxu1 %v8693_v54  ;;  %4580 = vmatpush1.bf16.msra.mxu0 %v9030_v6  ;;  %v9049_v54 = vld [vmem:[#allocation9 + $0xc4] ss:$24 sps:$4 sm:$0xff]  }
 0x8ed   : > { %4581 = vmatprep.subr.bf16.mxu0 %v9033_v3 }
 0x8ef   : > { %4403 = vmatpush1.bf16.msra.mxu1 %v8698_v56  ;;  %v9054_v56 = vld [vmem:[#allocation9 + $0xc0] ss:$24 sps:$4 sm:$0xff]  }
 0x8f0   : > { %4404 = vmatprep.subr.bf16.mxu1 %v8701_v55  ;;  %4582 = vmatpush1.bf16.msra.mxu0 %v9038_v61  ;;  %v9057_v55 = vld [vmem:[#allocation9 + $0xf4] ss:$24 sps:$4 sm:$0xff]  }
 0x8f1   : > { %4583 = vmatprep.subr.bf16.mxu0 %v9041_v12 }
 0x8f3   : > { %4405 = vmatpush1.bf16.msra.mxu1 %v8706_v33  ;;  %v9062_v33 = vld [vmem:[#allocation9 + $0xf0] ss:$24 sps:$4 sm:$0xff]  }
 0x8f4   : > { %4406 = vmatprep.subr.bf16.mxu1 %v8709_v27  ;;  %4584 = vmatpush1.bf16.msra.mxu0 %v9046_v63  ;;  %v9065_v27 = vld [vmem:[#allocation9 + $0x124] ss:$24 sps:$4 sm:$0xff]  }
 0x8f5   : > { %4585 = vmatprep.subr.bf16.mxu0 %v9049_v54 }
 0x8f7   : > { %4407 = vmatpush1.bf16.msra.mxu1 %v8714_v50  ;;  %v9070_v50 = vld [vmem:[#allocation9 + $0x120] ss:$24 sps:$4 sm:$0xff]  }
 0x8f8   : > { %4408 = vmatprep.subr.bf16.mxu1 %v8717_v46  ;;  %4586 = vmatpush1.bf16.msra.mxu0 %v9054_v56  ;;  %v9073_v46 = vld [vmem:[#allocation9 + $0x154] ss:$24 sps:$4 sm:$0xff]  }
 0x8f9   : > { %4587 = vmatprep.subr.bf16.mxu0 %v9057_v55 }
 0x8fb   : > { %4409 = vmatpush1.bf16.msra.mxu1 %v8722_v57  ;;  %v9078_v57 = vld [vmem:[#allocation9 + $0x150] ss:$24 sps:$4 sm:$0xff]  }
 0x8fc   : > { %4410 = vmatprep.subr.bf16.mxu1 %v8725_v1  ;;  %4588 = vmatpush1.bf16.msra.mxu0 %v9062_v33  ;;  %v9081_v1 = vld [vmem:[#allocation9 + $0x184] ss:$24 sps:$4 sm:$0xff]  }
 0x8fd   : > { %4589 = vmatprep.subr.bf16.mxu0 %v9065_v27 }
 0x8ff   : > { %4411 = vmatpush1.bf16.msra.mxu1 %v8730_v7  ;;  %v9086_v7 = vld [vmem:[#allocation9 + $0x180] ss:$24 sps:$4 sm:$0xff]  }
 0x900   : > { %4412 = vmatprep.subr.bf16.mxu1 %v8733_v32  ;;  %4590 = vmatpush1.bf16.msra.mxu0 %v9070_v50  ;;  %v9089_v32 = vld [vmem:[#allocation9 + $0x1b4] ss:$24 sps:$4 sm:$0xff]  }
 0x901   : > { %4591 = vmatprep.subr.bf16.mxu0 %v9073_v46 }
 0x903   : > { %4413 = vmatpush1.bf16.msra.mxu1 %v8738_v24  ;;  %v9094_v24 = vld [vmem:[#allocation9 + $0x1b0] ss:$24 sps:$4 sm:$0xff]  }
 0x904   : > { %4414 = vmatprep.subr.bf16.mxu1 %v8741_v58  ;;  %4592 = vmatpush1.bf16.msra.mxu0 %v9078_v57  ;;  %v9097_v58 = vld [vmem:[#allocation9 + $0x1e4] ss:$24 sps:$4 sm:$0xff]  }
 0x905   : > { %4593 = vmatprep.subr.bf16.mxu0 %v9081_v1 }
 0x907   : > { %4415 = vmatpush1.bf16.msra.mxu1 %v8746_v37  ;;  %v9102_v37 = vld [vmem:[#allocation9 + $0x1e0] ss:$24 sps:$4 sm:$0xff]  }
 0x908   : > { %4416 = vmatprep.subr.bf16.mxu1 %v8749_v51  ;;  %4594 = vmatpush1.bf16.msra.mxu0 %v9086_v7  ;;  %v9105_v51 = vld [vmem:[#allocation9 + $0x214] ss:$24 sps:$4 sm:$0xff]  }
 0x909   : > { %4595 = vmatprep.subr.bf16.mxu0 %v9089_v32 }
 0x90b   : > { %4417 = vmatpush1.bf16.msra.mxu1 %v10212_v48  ;;  %v9110_v48 = vld [vmem:[#allocation9 + $0x210] ss:$24 sps:$4 sm:$0xff]  }
 0x90c   : > { %4418 = vmatprep.subr.bf16.mxu1 %v10213_v29  ;;  %4596 = vmatpush1.bf16.msra.mxu0 %v9094_v24  ;;  %v9113_v29 = vld [vmem:[#allocation9 + $0x244] ss:$24 sps:$4 sm:$0xff]  }
 0x90d   : > { %4597 = vmatprep.subr.bf16.mxu0 %v9097_v58 }
 0x90f   : > { %4419 = vmatpush1.bf16.msra.mxu1 %v10215_v23  ;;  %v9118_v23 = vld [vmem:[#allocation9 + $0x240] ss:$24 sps:$4 sm:$0xff]  }
 0x910   : > { %4420 = vmatprep.subr.bf16.mxu1 %v10216_v49  ;;  %4598 = vmatpush1.bf16.msra.mxu0 %v9102_v37  ;;  %v9121_v49 = vld [vmem:[#allocation9 + $0x274] ss:$24 sps:$4 sm:$0xff]  }
 0x911   : > { %4599 = vmatprep.subr.bf16.mxu0 %v9105_v51 }
 0x913   : > { %4421 = vmatpush1.bf16.msra.mxu1 %v10219_v40  ;;  %v9126_v40 = vld [vmem:[#allocation9 + $0x270] ss:$24 sps:$4 sm:$0xff]  }
 0x914   : > { %4422 = vmatprep.subr.bf16.mxu1 %v10220_v41  ;;  %4600 = vmatpush1.bf16.msra.mxu0 %v9110_v48  ;;  %v9129_v41 = vld [vmem:[#allocation9 + $0x2a4] ss:$24 sps:$4 sm:$0xff]  }
 0x915   : > { %4601 = vmatprep.subr.bf16.mxu0 %v9113_v29 }
 0x917   : > { %4423 = vmatpush1.bf16.msra.mxu1 %v10223_v8  ;;  %v9134_v8 = vld [vmem:[#allocation9 + $0x2a0] ss:$24 sps:$4 sm:$0xff]  }
 0x918   : > { %4424 = vmatprep.subr.bf16.mxu1 %v10224_v10  ;;  %4602 = vmatpush1.bf16.msra.mxu0 %v9118_v23  ;;  %v9137_v10 = vld [vmem:[#allocation9 + $0x2d4] ss:$24 sps:$4 sm:$0xff]  }
 0x919   : > { %4603 = vmatprep.subr.bf16.mxu0 %v9121_v49 }
 0x91b   : > { %4425 = vmatpush1.bf16.msra.mxu1 %v10227_v13  ;;  %v9141_v13 = vld [vmem:[#allocation9 + $0xc] ss:$24 sps:$4 sm:$0xff]  }
 0x91c   : > { %4426 = vmatprep.subr.bf16.mxu1 %v10228_v14  ;;  %4604 = vmatpush1.bf16.msra.mxu0 %v9126_v40  ;;  %v9144_v14 = vld [vmem:[#allocation9 + $0x2d0] ss:$24 sps:$4 sm:$0xff]  }
 0x91d   : > { %4605 = vmatprep.subr.bf16.mxu0 %v9129_v41 }
 0x91f   : > { %4427 = vmatpush1.bf16.msra.mxu1 %v10231_v31  ;;  %v9147_v31 = vld [vmem:[#allocation9 + $0x14] ss:$24 sps:$4 sm:$0xff]  }
 0x920   : > { %4428 = vmatprep.subr.bf16.mxu1 %v10232_v52  ;;  %4606 = vmatpush1.bf16.msra.mxu0 %v9134_v8  ;;  %v9151_v52 = vld [vmem:[#allocation9 + $0x8] ss:$24 sps:$4 sm:$0xff]  }
 0x921   : > { %4607 = vmatprep.subr.bf16.mxu0 %v9137_v10 }
 0x923   : > { %4429 = vmatpush1.bf16.msra.mxu1 %v10235_v42  ;;  %v9157_v42 = vld [vmem:[#allocation9 + $0x38] ss:$24 sps:$4 sm:$0xff]  }
 0x924   : > { %4618 = vmatprep.subr.bf16.mxu1 %v9141_v13  ;;  %4608 = vmatpush1.bf16.msra.mxu0 %v9144_v14 }
 0x925   : > { %4659 = vmatprep.subr.bf16.mxu0 %v9147_v31 }
 0x926   : > { %4431 = vmatmul.mubr.bf16.vlgmr.msra.gmra.mrb[32].mxu1 %v9016_v11  ;;  %v9205_v11 = vld [vmem:[#allocation9 + $0x1b8] ss:$24 sps:$4 sm:$0xff]  }
 0x927   : > { %4619 = vmatpush1.bf16.msra.mxu1 %v9151_v52  ;;  %10288 = vst [vmem:[#allocation65_spill] sm:$0xff] %v9205_v11 }
 0x928   : > { %4620 = vmatprep.subr.bf16.mxu1 %v9154_v25 }
 0x92b   : > { %4621 = vmatpush1.bf16.msra.mxu1 %v9157_v42 }
 0x92c   : > { %4622 = vmatprep.subr.bf16.mxu1 %v9160_v5 }
 0x92f   : > { %4623 = vmatpush1.bf16.msra.mxu1 %v9163_v45 }
 0x930   : > { %4624 = vmatprep.subr.bf16.mxu1 %v9166_v9 }
 0x933   : > { %4625 = vmatpush1.bf16.msra.mxu1 %v9169_v26 }
 0x934   : > { %4626 = vmatprep.subr.bf16.mxu1 %v9172_v22 }
 0x937   : > { %4627 = vmatpush1.bf16.msra.mxu1 %v9175_v30 }
 0x938   : > { %4628 = vmatprep.subr.bf16.mxu1 %v9178_v47 }
 0x93b   : > { %4629 = vmatpush1.bf16.msra.mxu1 %v9181_v60  ;;  %v10297_v60 = vld [vmem:[#allocation52_spill] sm:$0xff] }
 0x93c   : > { %4630 = vmatprep.subr.bf16.mxu1 %v9184_v38  ;;  %v4440_v38 = vld [vmem:[#allocation2 + $0x5] ss:$8 sm:$0x3]  ;;  %vm4828_vm7 = vcmp.eq.s32.totalorder %v10297_v60, 6 }
 0x93f   : > { %4631 = vmatpush1.bf16.msra.mxu1 %v9187_v39 }
 0x940   : > { %4632 = vmatprep.subr.bf16.mxu1 %v9190_v17 }
 0x943   : > { %4633 = vmatpush1.bf16.msra.mxu1 %v9193_v34 }
 0x944   : > { %4634 = vmatprep.subr.bf16.mxu1 %v9196_v18  ;;  %v9214_v18 = vld [vmem:[#allocation9 + $0x21c] ss:$24 sps:$4 sm:$0xff]  }
 0x945   : > { %10291 = vst [vmem:[#allocation66_spill] sm:$0xff] %v9214_v18 }
 0x947   : > { %4635 = vmatpush1.bf16.msra.mxu1 %v9199_v2  ;;  %v9217_v2 = vld [vmem:[#allocation9 + $0x218] ss:$24 sps:$4 sm:$0xff]  }
 0x948   : > { %4636 = vmatprep.subr.bf16.mxu1 %v9202_v53  ;;  %10292 = vst [vmem:[#allocation67_spill] sm:$0xff] %v9217_v2  ;;  %v9220_v53 = vld [vmem:[#allocation9 + $0x24c] ss:$24 sps:$4 sm:$0xff]  }
 0x949   : > { %10293 = vst [vmem:[#allocation85_spill] sm:$0xff] %v9220_v53 }
 0x94b   : > { %4637 = vmatpush1.bf16.msra.mxu1 %v9205_v11  ;;  %v9223_v11 = vld [vmem:[#allocation9 + $0x248] ss:$24 sps:$4 sm:$0xff]  }
 0x94c   : > { %4638 = vmatprep.subr.bf16.mxu1 %v9208_v35  ;;  %10294 = vst [vmem:[#allocation86_spill] sm:$0xff] %v9223_v11  ;;  %v9226_v35 = vld [vmem:[#allocation9 + $0x27c] ss:$24 sps:$4 sm:$0xff]  }
 0x94d   : > { %10295 = vst [vmem:[#allocation68_spill] sm:$0xff] %v9226_v35 }
 0x94f   : > { %4639 = vmatpush1.bf16.msra.mxu1 %v9211_v19  ;;  %v9229_v19 = vld [vmem:[#allocation9 + $0x278] ss:$24 sps:$4 sm:$0xff]  }
 0x950   : > { %4640 = vmatprep.subr.bf16.mxu1 %v9214_v18  ;;  %10296 = vst [vmem:[#allocation69_spill] sm:$0xff] %v9229_v19 }
 0x953   : > { %4641 = vmatpush1.bf16.msra.mxu1 %v9217_v2 }
 0x954   : > { %4642 = vmatprep.subr.bf16.mxu1 %v9220_v53 }
 0x957   : > { %4643 = vmatpush1.bf16.msra.mxu1 %v9223_v11 }
 0x958   : > { %4644 = vmatprep.subr.bf16.mxu1 %v9226_v35 }
 0x95b   : > { %4645 = vmatpush1.bf16.msra.mxu1 %v9229_v19  ;;  %v4442_v19 = vld [vmem:[#allocation2 + $0x15] ss:$8 sm:$0x3] }
 0x95c   : > { %4646 = vmatprep.subr.bf16.mxu1 %v10266_v21  ;;  %v4447_v21 = vrot.slane %v4440_v38, %v10111_v20 }
 0x95f   : > { %4647 = vmatpush1.bf16.msra.mxu1 %v10267_v43  ;;  %v4458_v43 = vrot.slane %v4442_v19, %v10111_v20 }
 0x960   : > { %4648 = vmatprep.subr.bf16.mxu1 %v10268_v62  ;;  %v4451_v62 = vrot.slane %v4440_v38, %v10270_v44 }
 0x961   : > { %v4465_v30 = vsel %vm3148_vm1, %v4447_v21, %v4458_v43 }
 0x963   : > { %4649 = vmatpush1.bf16.msra.mxu1 %v10269_v36  ;;  %v4462_v36 = vrot.slane %v4442_v19, %v10270_v44 }
 0x964   : > { %4838 = vmatprep.subr.bf16.mxu1 %v8981_v59  ;;  %v10298_v59 = vmov 0  }
 0x965   : > { %v4829_v47 = vsel %vm4828_vm7, 1, %v10298_v59 }
 0x966   : > { %4831 = vperm.xlu0 %6511, %v4829_v47  }
 0x9b9   : > { %v4350_v53 = vpop.f32.mrb[28].mxu1  ;;  %v4391_v11 = vpop.f32.mrb[32].mxu0 }
 0x9ba   : > { %v4352_v2 = vpop.f32.mrb[29].mxu1  ;;  %v4393_v18 = vpop.f32.mrb[33].mxu0 }
 0x9bb   : > { %v4354_v34 = vpop.f32.mrb[30].mxu1  ;;  %v4395_v35 = vpop.f32.mrb[34].mxu0 }
 0x9bc   : > { %v4355_v17 = vpop.f32.mrb[31].mxu1  ;;  %v4396_v39 = vpop.f32.mrb[35].mxu0  ;;  %v4466_v35 = vsel %vm3148_vm1, %v4451_v62, %v4462_v36  ;;  %v4484_v34 = vld [vmem:[#allocation2 + $0x35] ss:$8 sm:$0x3] }
 0x9bd   : > { %v4467_v39 = vadd.f32 %v4465_v30, %v4350_v53  ;;  %v4482_v17 = vld [vmem:[#allocation2 + $0x25] ss:$8 sm:$0x3]  ;;  %v4468_v22 = vadd.f32 %v4466_v35, %v4352_v2  ;;  %v4500_v38 = vrot.slane %v4484_v34, %v10111_v20  ;;  %v4504_v60 = vrot.slane %v4484_v34, %v10270_v44 }
 0x9be   : > { %v4489_v9 = vrot.slane %v4482_v17, %v10111_v20  ;;  %v4493_v19 = vrot.slane %v4482_v17, %v10270_v44  ;;  %v4526_v17 = vld [vmem:[#allocation2 + $0x55] ss:$8 sm:$0x3] }
 0x9bf   : > { %v5855_v26 = vmul.f32 -1.442695, %v4467_v39  ;;  %v5856_v45 = vmul.f32 -1.442695, %v4468_v22 }
 0x9c0   : > { %v4507_v21 = vsel %vm3148_vm1, %v4489_v9, %v4500_v38  ;;  %v4508_v47 = vsel %vm3148_vm1, %v4493_v19, %v4504_v60  ;;  %v4524_v39 = vld [vmem:[#allocation2 + $0x45] ss:$8 sm:$0x3]  ;;  %v4542_v9 = vrot.slane %v4526_v17, %v10111_v20 }
 0x9c1   : > { %6757 = vpow2.f32 %v5855_v26  ;;  %v4509_v30 = vadd.f32 %v4507_v21, %v4391_v11  ;;  %v4510_v53 = vadd.f32 %v4508_v47, %v4393_v18  ;;  %v4535_v18 = vrot.slane %v4524_v39, %v10270_v44  ;;  %v10299_v21 = vld [vmem:[#allocation81_spill] sm:$0xff] }
 0x9c2   : > { %6759 = vpow2.f32 %v5856_v45  ;;  %v4531_v45 = vrot.slane %v4524_v39, %v10111_v20  ;;  %v4546_v11 = vrot.slane %v4526_v17, %v10270_v44 }
 0x9c3   : > { %v5857_v43 = vmul.f32 -1.442695, %v4509_v30  ;;  %v5858_v2 = vmul.f32 -1.442695, %v4510_v53 }
 0x9c5   : > { %6761 = vpow2.f32 %v5857_v43  ;;  %v4549_v43 = vsel %vm3148_vm1, %v4531_v45, %v4542_v9 }
 0x9c6   : > { %6763 = vpow2.f32 %v5858_v2 }
 0x9cb   : > { %v6758_v62 = vpop.eup %6757 }
 0x9cc   : > { %v6760_v36 = vpop.eup %6759  ;;  %v4475_v35 = vadd.f32 1.0, %v6758_v62 }
 0x9cd   : > { %v4476_v22 = vadd.f32 1.0, %v6760_v36 }
 0x9ce   : > { %6765 = vrcp.f32 %v4475_v35 }
 0x9cf   : > { %6767 = vrcp.f32 %v4476_v22  ;;  %v6762_v26 = vpop.eup %6761  ;;  %v4550_v22 = vsel %vm3148_vm1, %v4535_v18, %v4546_v11 }
 0x9d0   : > { %v6764_v34 = vpop.eup %6763  ;;  %v4517_v60 = vadd.f32 1.0, %v6762_v26 }
 0x9d1   : > { %v4518_v38 = vadd.f32 1.0, %v6764_v34 }
 0x9d2   : > { %6769 = vrcp.f32 %v4517_v60 }
 0x9d3   : > { %6771 = vrcp.f32 %v4518_v38 }
 0x9d8   : > { %v6766_v53 = vpop.eup %6765 }
 0x9d9   : > { %v6768_v36 = vpop.eup %6767 }
 0x9f9   : > { %v4432_v19 = vpop.f32.mrb[32].mxu1 }
 0x9fa   : > { %v4551_v47 = vadd.f32 %v4432_v19, %v10299_v21  ;;  %v4434_v30 = vpop.f32.mrb[33].mxu1  ;;  %v6770_v19 = vpop.eup %6769 }
 0x9fb   : > { %v4552_v2 = vadd.f32 %v4434_v30, %v10116_v0  ;;  %v4436_v62 = vpop.f32.mrb[34].mxu1  ;;  %v6772_v21 = vpop.eup %6771  ;;  %v4559_v59 = vsub.f32 1.0, %v6770_v19 }
 0x9fc   : > { %v4553_v35 = vmul.f32 %v6766_v53, %v4551_v47  ;;  %v4437_v26 = vpop.f32.mrb[35].mxu1  ;;  %v4560_v45 = vsub.f32 1.0, %v6772_v21  ;;  %v4563_v62 = vmul.f32 %v6770_v19, %v9008_v28  ;;  %v4564_v47 = vmul.f32 %v6772_v21, %v9010_v4  ;;  %v9281_v21 = vld [vmem:[#allocation9 + $0x40] ss:$24 sps:$4 sm:$0xff]   ;;  %v10318_v19 = vld [vmem:[#allocation67_spill] sm:$0xff] }
 0x9fd   : > { %v4554_v39 = vmul.f32 %v6768_v36, %v4552_v2  ;;  %v9289_v2 = vld [vmem:[#allocation9 + $0x70] ss:$24 sps:$4 sm:$0xff]   ;;  %v9292_v36 = vld [vmem:[#allocation9 + $0xa4] ss:$24 sps:$4 sm:$0xff]  }
 0x9fe   : > { %v4555_v17 = vadd.f32 %v4553_v35, %v4549_v43  ;;  %v9284_v43 = vld [vmem:[#allocation9 + $0x74] ss:$24 sps:$4 sm:$0xff]   ;;  %v10314_v26 = vld [vmem:[#allocation65_spill] sm:$0xff] }
 0x9ff   : > { %v4556_v34 = vadd.f32 %v4554_v39, %v4550_v22  ;;  %v10312_v35 = vld [vmem:[#allocation60_spill] sm:$0xff]  ;;  %v10315_v39 = vld [vmem:[#allocation63_spill] sm:$0xff] }
 0xa00   : > { %6773 = vtanh.f32 %v4555_v17  ;;  %v10313_v22 = vld [vmem:[#allocation64_spill] sm:$0xff]  ;;  %v10316_v17 = vld [vmem:[#allocation82_spill] sm:$0xff] }
 0xa01   : > { %6775 = vtanh.f32 %v4556_v34  ;;  %v10317_v34 = vld [vmem:[#allocation66_spill] sm:$0xff] }
 0xa0a   : > { %v6774_v44 = vpop.eup %6773 }
 0xa0b   : > { %v6776_v9 = vpop.eup %6775  ;;  %v4561_v30 = vmul.f32 %v6774_v44, %v4559_v59  ;;  %v9273_v44 = vld [vmem:[#allocation9 + $0x10] ss:$24 sps:$4 sm:$0xff]   ;;  %v9276_v59 = vld [vmem:[#allocation9 + $0x44] ss:$24 sps:$4 sm:$0xff]  }
 0xa0c   : > { %v4562_v60 = vmul.f32 %v6776_v9, %v4560_v45  ;;  %v10319_v45 = vld [vmem:[#allocation85_spill] sm:$0xff]  ;;  %v10320_v9 = vld [vmem:[#allocation86_spill] sm:$0xff] }
 0xa0d   : > { %v9261_v18 = vadd.f32 %v4563_v62, %v4561_v30  ;;  %v10321_v30 = vld [vmem:[#allocation68_spill] sm:$0xff]  ;;  %v10322_v62 = vld [vmem:[#allocation69_spill] sm:$0xff] }
 0xa0e   : > { %v9263_v11 = vadd.f32 %v4564_v47, %v4562_v60  ;;  %v7005_v60 = vld [vmem:[#allocation9 + $0x2ac] ss:$24 sps:$4 sm:$0xff]   ;;  %v7006_v47 = vld [vmem:[#allocation9 + $0x2a8] ss:$24 sps:$4 sm:$0xff]  }
 0xa0f   : > { %v9269_v53 = vpack.c.bf16 %v9261_v18, %v9261_v18 }
 0xa10   : > { %v4576_v38 = vpack.c.bf16 %v9263_v11, %v9263_v11 }
 0xa12   : > { %4609 = vmatprep.mubr.bf16.mxu0 %v4576_v38  ;;  %4650 = vmatprep.mubr.bf16.mxu1 %v4576_v38 }
 0xa13   : > { %4610 = vmatmul.mubr.bf16.vlgmr.msra.gmra.mrb[36].mxu0 %v9269_v53  ;;  %4651 = vmatmul.mubr.bf16.vlgmr.msra.gmra.mrb[36].mxu1 %v9269_v53 }
 0xa14   : > { %4660 = vmatpush1.bf16.msra.mxu0 %v9273_v44  ;;  %4691 = vmatprep.mubr.bf16.mxu0 %v4576_v38  ;;  %v7007_v38 = vld [vmem:[#allocation9 + $0x2dc] ss:$24 sps:$4 sm:$0xff]  }
 0xa15   : > { %4661 = vmatprep.subr.bf16.mxu0 %v9276_v59  ;;  %4839 = vmatpush1.bf16.msra.mxu1 %v9022_v15  ;;  %v9297_v15 = vld [vmem:[#allocation9 + $0xa0] ss:$24 sps:$4 sm:$0xff]  }
 0xa16   : > { %4840 = vmatprep.subr.bf16.mxu1 %v9025_v16  ;;  %v9300_v16 = vld [vmem:[#allocation9 + $0xd4] ss:$24 sps:$4 sm:$0xff]  }
 0xa18   : > { %4662 = vmatpush1.bf16.msra.mxu0 %v9281_v21 }
 0xa19   : > { %4663 = vmatprep.subr.bf16.mxu0 %v9284_v43  ;;  %4841 = vmatpush1.bf16.msra.mxu1 %v9030_v6  ;;  %v9305_v6 = vld [vmem:[#allocation9 + $0xd0] ss:$24 sps:$4 sm:$0xff]  }
 0xa1a   : > { %4842 = vmatprep.subr.bf16.mxu1 %v9033_v3  ;;  %v9308_v3 = vld [vmem:[#allocation9 + $0x104] ss:$24 sps:$4 sm:$0xff]  }
 0xa1c   : > { %4664 = vmatpush1.bf16.msra.mxu0 %v9289_v2 }
 0xa1d   : > { %4665 = vmatprep.subr.bf16.mxu0 %v9292_v36  ;;  %4843 = vmatpush1.bf16.msra.mxu1 %v9038_v61  ;;  %v9313_v61 = vld [vmem:[#allocation9 + $0x100] ss:$24 sps:$4 sm:$0xff]  }
 0xa1e   : > { %4844 = vmatprep.subr.bf16.mxu1 %v9041_v12  ;;  %v9316_v12 = vld [vmem:[#allocation9 + $0x134] ss:$24 sps:$4 sm:$0xff]  }
 0xa20   : > { %4666 = vmatpush1.bf16.msra.mxu0 %v9297_v15 }
 0xa21   : > { %4667 = vmatprep.subr.bf16.mxu0 %v9300_v16  ;;  %4845 = vmatpush1.bf16.msra.mxu1 %v9046_v63  ;;  %v9321_v63 = vld [vmem:[#allocation9 + $0x130] ss:$24 sps:$4 sm:$0xff]  }
 0xa22   : > { %4846 = vmatprep.subr.bf16.mxu1 %v9049_v54  ;;  %v9324_v54 = vld [vmem:[#allocation9 + $0x164] ss:$24 sps:$4 sm:$0xff]  }
 0xa24   : > { %4668 = vmatpush1.bf16.msra.mxu0 %v9305_v6 }
 0xa25   : > { %4669 = vmatprep.subr.bf16.mxu0 %v9308_v3  ;;  %4847 = vmatpush1.bf16.msra.mxu1 %v9054_v56  ;;  %v9329_v56 = vld [vmem:[#allocation9 + $0x160] ss:$24 sps:$4 sm:$0xff]  }
 0xa26   : > { %4848 = vmatprep.subr.bf16.mxu1 %v9057_v55  ;;  %v9332_v55 = vld [vmem:[#allocation9 + $0x194] ss:$24 sps:$4 sm:$0xff]  }
 0xa28   : > { %4670 = vmatpush1.bf16.msra.mxu0 %v9313_v61 }
 0xa29   : > { %4671 = vmatprep.subr.bf16.mxu0 %v9316_v12  ;;  %4849 = vmatpush1.bf16.msra.mxu1 %v9062_v33  ;;  %v9337_v33 = vld [vmem:[#allocation9 + $0x190] ss:$24 sps:$4 sm:$0xff]  }
 0xa2a   : > { %4850 = vmatprep.subr.bf16.mxu1 %v9065_v27  ;;  %v9340_v27 = vld [vmem:[#allocation9 + $0x1c4] ss:$24 sps:$4 sm:$0xff]  }
 0xa2c   : > { %4672 = vmatpush1.bf16.msra.mxu0 %v9321_v63 }
 0xa2d   : > { %4673 = vmatprep.subr.bf16.mxu0 %v9324_v54  ;;  %4851 = vmatpush1.bf16.msra.mxu1 %v9070_v50  ;;  %v9345_v50 = vld [vmem:[#allocation9 + $0x1c0] ss:$24 sps:$4 sm:$0xff]  }
 0xa2e   : > { %4852 = vmatprep.subr.bf16.mxu1 %v9073_v46  ;;  %v9348_v46 = vld [vmem:[#allocation9 + $0x1f4] ss:$24 sps:$4 sm:$0xff]  }
 0xa30   : > { %4674 = vmatpush1.bf16.msra.mxu0 %v9329_v56 }
 0xa31   : > { %4675 = vmatprep.subr.bf16.mxu0 %v9332_v55  ;;  %4853 = vmatpush1.bf16.msra.mxu1 %v9078_v57  ;;  %v9353_v57 = vld [vmem:[#allocation9 + $0x1f0] ss:$24 sps:$4 sm:$0xff]  }
 0xa32   : > { %4854 = vmatprep.subr.bf16.mxu1 %v9081_v1  ;;  %v9356_v1 = vld [vmem:[#allocation9 + $0x224] ss:$24 sps:$4 sm:$0xff]  }
 0xa34   : > { %4676 = vmatpush1.bf16.msra.mxu0 %v9337_v33 }
 0xa35   : > { %4677 = vmatprep.subr.bf16.mxu0 %v9340_v27  ;;  %4855 = vmatpush1.bf16.msra.mxu1 %v9086_v7  ;;  %v9361_v7 = vld [vmem:[#allocation9 + $0x220] ss:$24 sps:$4 sm:$0xff]  }
 0xa36   : > { %4856 = vmatprep.subr.bf16.mxu1 %v9089_v32  ;;  %v9364_v32 = vld [vmem:[#allocation9 + $0x254] ss:$24 sps:$4 sm:$0xff]  }
 0xa38   : > { %4678 = vmatpush1.bf16.msra.mxu0 %v9345_v50 }
 0xa39   : > { %4679 = vmatprep.subr.bf16.mxu0 %v9348_v46  ;;  %4857 = vmatpush1.bf16.msra.mxu1 %v9094_v24  ;;  %v9369_v24 = vld [vmem:[#allocation9 + $0x250] ss:$24 sps:$4 sm:$0xff]  }
 0xa3a   : > { %4858 = vmatprep.subr.bf16.mxu1 %v9097_v58  ;;  %v9372_v58 = vld [vmem:[#allocation9 + $0x284] ss:$24 sps:$4 sm:$0xff]  }
 0xa3c   : > { %4680 = vmatpush1.bf16.msra.mxu0 %v9353_v57 }
 0xa3d   : > { %4681 = vmatprep.subr.bf16.mxu0 %v9356_v1  ;;  %4859 = vmatpush1.bf16.msra.mxu1 %v9102_v37  ;;  %v9377_v37 = vld [vmem:[#allocation9 + $0x280] ss:$24 sps:$4 sm:$0xff]  }
 0xa3e   : > { %4860 = vmatprep.subr.bf16.mxu1 %v9105_v51  ;;  %v9380_v51 = vld [vmem:[#allocation9 + $0x2b4] ss:$24 sps:$4 sm:$0xff]  }
 0xa40   : > { %4682 = vmatpush1.bf16.msra.mxu0 %v9361_v7 }
 0xa41   : > { %4683 = vmatprep.subr.bf16.mxu0 %v9364_v32  ;;  %4861 = vmatpush1.bf16.msra.mxu1 %v9110_v48  ;;  %v9385_v48 = vld [vmem:[#allocation9 + $0x2b0] ss:$24 sps:$4 sm:$0xff]  }
 0xa42   : > { %4862 = vmatprep.subr.bf16.mxu1 %v9113_v29  ;;  %v9388_v29 = vld [vmem:[#allocation9 + $0x2e4] ss:$24 sps:$4 sm:$0xff]  }
 0xa44   : > { %4684 = vmatpush1.bf16.msra.mxu0 %v9369_v24 }
 0xa45   : > { %4685 = vmatprep.subr.bf16.mxu0 %v9372_v58  ;;  %4863 = vmatpush1.bf16.msra.mxu1 %v9118_v23  ;;  %v9393_v23 = vld [vmem:[#allocation9 + $0x2e0] ss:$24 sps:$4 sm:$0xff]  }
 0xa46   : > { %4864 = vmatprep.subr.bf16.mxu1 %v9121_v49  ;;  %v10300_v49 = vld [vmem:[#allocation46_spill] sm:$0xff] }
 0xa48   : > { %4686 = vmatpush1.bf16.msra.mxu0 %v9377_v37 }
 0xa49   : > { %4687 = vmatprep.subr.bf16.mxu0 %v9380_v51  ;;  %4865 = vmatpush1.bf16.msra.mxu1 %v9126_v40  ;;  %v10301_v40 = vld [vmem:[#allocation47_spill] sm:$0xff] }
 0xa4a   : > { %4866 = vmatprep.subr.bf16.mxu1 %v9129_v41  ;;  %v10302_v41 = vld [vmem:[#allocation54_spill] sm:$0xff] }
 0xa4c   : > { %4688 = vmatpush1.bf16.msra.mxu0 %v9385_v48 }
 0xa4d   : > { %4689 = vmatprep.subr.bf16.mxu0 %v9388_v29  ;;  %4867 = vmatpush1.bf16.msra.mxu1 %v9134_v8  ;;  %v10303_v8 = vld [vmem:[#allocation50_spill] sm:$0xff] }
 0xa4e   : > { %4868 = vmatprep.subr.bf16.mxu1 %v9137_v10  ;;  %v10304_v10 = vld [vmem:[#allocation51_spill] sm:$0xff] }
 0xa50   : > { %4690 = vmatpush1.bf16.msra.mxu0 %v9393_v23 }
 0xa51   : > { %4879 = vmatprep.subr.bf16.mxu0 %v9141_v13  ;;  %4869 = vmatpush1.bf16.msra.mxu1 %v9144_v14  ;;  %v10305_v13 = vld [vmem:[#allocation57_spill] sm:$0xff]  ;;  %v10306_v14 = vld [vmem:[#allocation58_spill] sm:$0xff] }
 0xa52   : > { %4920 = vmatprep.subr.bf16.mxu1 %v9147_v31  ;;  %v10307_v31 = vld [vmem:[#allocation55_spill] sm:$0xff] }
 0xa53   : > { %4692 = vmatmul.mubr.bf16.vlgmr.msra.gmra.mrb[40].mxu0 %v9269_v53  ;;  %v7008_v53 = vld [vmem:[#allocation9 + $0x2d8] ss:$24 sps:$4 sm:$0xff]  }
 0xa54   : > { %4880 = vmatpush1.bf16.msra.mxu0 %v9151_v52  ;;  %v10308_v52 = vld [vmem:[#allocation56_spill] sm:$0xff] }
 0xa55   : > { %4881 = vmatprep.subr.bf16.mxu0 %v9154_v25  ;;  %v10309_v25 = vld [vmem:[#allocation61_spill] sm:$0xff] }
 0xa58   : > { %4882 = vmatpush1.bf16.msra.mxu0 %v9157_v42  ;;  %v10310_v42 = vld [vmem:[#allocation62_spill] sm:$0xff] }
 0xa59   : > { %4883 = vmatprep.subr.bf16.mxu0 %v9160_v5  ;;  %v10311_v5 = vld [vmem:[#allocation59_spill] sm:$0xff] }
 0xa5c   : > { %4884 = vmatpush1.bf16.msra.mxu0 %v10300_v49 }
 0xa5d   : > { %4885 = vmatprep.subr.bf16.mxu0 %v10301_v40 }
 0xa60   : > { %4886 = vmatpush1.bf16.msra.mxu0 %v10302_v41 }
 0xa61   : > { %4887 = vmatprep.subr.bf16.mxu0 %v10303_v8 }
 0xa64   : > { %4888 = vmatpush1.bf16.msra.mxu0 %v10304_v10 }
 0xa65   : > { %4889 = vmatprep.subr.bf16.mxu0 %v10305_v13 }
 0xa68   : > { %4890 = vmatpush1.bf16.msra.mxu0 %v10306_v14 }
 0xa69   : > { %4891 = vmatprep.subr.bf16.mxu0 %v10307_v31 }
 0xa6c   : > { %4892 = vmatpush1.bf16.msra.mxu0 %v10308_v52  ;;  %v4701_v52 = vld [vmem:[#allocation2 + $0x6] ss:$8 sm:$0x3] }
 0xa6d   : > { %4893 = vmatprep.subr.bf16.mxu0 %v10309_v25  ;;  %v4703_v25 = vld [vmem:[#allocation2 + $0x16] ss:$8 sm:$0x3] }
 0xa70   : > { %4894 = vmatpush1.bf16.msra.mxu0 %v10310_v42  ;;  %v4708_v42 = vrot.slane %v4701_v52, %v10111_v20 }
 0xa71   : > { %4895 = vmatprep.subr.bf16.mxu0 %v10311_v5  ;;  %v4719_v5 = vrot.slane %v4703_v25, %v10111_v20 }
 0xa74   : > { %4896 = vmatpush1.bf16.msra.mxu0 %v10312_v35  ;;  %v10323_v35 = vld [vmem:[#allocation24_spill] sm:$0xff] }
 0xa75   : > { %4897 = vmatprep.subr.bf16.mxu0 %v10313_v22  ;;  %v4712_v22 = vrot.slane %v4701_v52, %v10323_v35 }
 0xa78   : > { %4898 = vmatpush1.bf16.msra.mxu0 %v10314_v26  ;;  %v4723_v26 = vrot.slane %v4703_v25, %v10323_v35 }
 0xa79   : > { %4899 = vmatprep.subr.bf16.mxu0 %v10315_v39  ;;  %v10324_v39 = vld [vmem:[#allocation52_spill] sm:$0xff] }
 0xa7a   : > { %vm5089_vm8 = vcmp.eq.s32.totalorder %v10324_v39, 7 }
 0xa7c   : > { %4900 = vmatpush1.bf16.msra.mxu0 %v10316_v17  ;;  %v10325_v17 = vmov 0  }
 0xa7d   : > { %4901 = vmatprep.subr.bf16.mxu0 %v10317_v34  ;;  %v5090_v34 = vsel %vm5089_vm8, 1, %v10325_v17  ;;  %v4785_v17 = vld [vmem:[#allocation2 + $0x46] ss:$8 sm:$0x3] }
 0xa7e   : > { %5092 = vperm.xlu1 %6512, %v5090_v34   ;;  %v4787_v34 = vld [vmem:[#allocation2 + $0x56] ss:$8 sm:$0x3] }
 0xa80   : > { %4902 = vmatpush1.bf16.msra.mxu0 %v10318_v19  ;;  %v4726_v19 = vsel %vm3148_vm1, %v4708_v42, %v4719_v5 }
 0xa81   : > { %4903 = vmatprep.subr.bf16.mxu0 %v10319_v45  ;;  %v4727_v45 = vsel %vm3148_vm1, %v4712_v22, %v4723_v26 }
 0xa84   : > { %4904 = vmatpush1.bf16.msra.mxu0 %v10320_v9 }
 0xa85   : > { %4905 = vmatprep.subr.bf16.mxu0 %v10321_v30  ;;  %v4743_v30 = vld [vmem:[#allocation2 + $0x26] ss:$8 sm:$0x3] }
 0xa88   : > { %4906 = vmatpush1.bf16.msra.mxu0 %v10322_v62  ;;  %v4745_v62 = vld [vmem:[#allocation2 + $0x36] ss:$8 sm:$0x3] }
 0xa89   : > { %4907 = vmatprep.subr.bf16.mxu0 %v7005_v60 }
 0xa8c   : > { %4908 = vmatpush1.bf16.msra.mxu0 %v7006_v47 }
 0xa8d   : > { %4909 = vmatprep.subr.bf16.mxu0 %v7007_v38  ;;  %v4750_v38 = vrot.slane %v4743_v30, %v10111_v20 }
 0xa90   : > { %4910 = vmatpush1.bf16.msra.mxu0 %v7008_v53  ;;  %v4761_v53 = vrot.slane %v4745_v62, %v10111_v20 }
 0xae6   : > { %v4611_v49 = vpop.f32.mrb[36].mxu0  ;;  %v4652_v40 = vpop.f32.mrb[36].mxu1 }
 0xae7   : > { %v4613_v41 = vpop.f32.mrb[37].mxu0  ;;  %v4654_v8 = vpop.f32.mrb[37].mxu1  ;;  %v4728_v9 = vadd.f32 %v4726_v19, %v4611_v49 }
 0xae8   : > { %v4615_v10 = vpop.f32.mrb[38].mxu0  ;;  %v4656_v13 = vpop.f32.mrb[38].mxu1  ;;  %v4729_v60 = vadd.f32 %v4727_v45, %v4613_v41 }
 0xae9   : > { %v4616_v14 = vpop.f32.mrb[39].mxu0  ;;  %v4657_v31 = vpop.f32.mrb[39].mxu1  ;;  %v5859_v47 = vmul.f32 -1.442695, %v4728_v9  ;;  %v4754_v13 = vrot.slane %v4743_v30, %v10323_v35  ;;  %v4792_v9 = vrot.slane %v4785_v17, %v10111_v20  ;;  %v4803_v30 = vrot.slane %v4787_v34, %v10111_v20 }
 0xaea   : > { %v5860_v10 = vmul.f32 -1.442695, %v4729_v60  ;;  %v4765_v14 = vrot.slane %v4745_v62, %v10323_v35  ;;  %v4768_v31 = vsel %vm3148_vm1, %v4750_v38, %v4761_v53  ;;  %v4807_v62 = vrot.slane %v4787_v34, %v10323_v35  ;;  %v10326_v38 = vld [vmem:[#allocation81_spill] sm:$0xff] }
 0xaeb   : > { %6777 = vpow2.f32 %v5859_v47  ;;  %v4770_v49 = vadd.f32 %v4768_v31, %v4652_v40 }
 0xaec   : > { %6779 = vpow2.f32 %v5860_v10  ;;  %v4769_v52 = vsel %vm3148_vm1, %v4754_v13, %v4765_v14  ;;  %v4810_v14 = vsel %vm3148_vm1, %v4792_v9, %v4803_v30 }
 0xaed   : > { %v4771_v25 = vadd.f32 %v4769_v52, %v4654_v8  ;;  %v5861_v42 = vmul.f32 -1.442695, %v4770_v49  ;;  %v4796_v8 = vrot.slane %v4785_v17, %v10323_v35 }
 0xaef   : > { %v5862_v41 = vmul.f32 -1.442695, %v4771_v25  ;;  %6781 = vpow2.f32 %v5861_v42  ;;  %v4811_v42 = vsel %vm3148_vm1, %v4796_v8, %v4807_v62 }
 0xaf1   : > { %6783 = vpow2.f32 %v5862_v41 }
 0xaf5   : > { %v6778_v5 = vpop.eup %6777 }
 0xaf6   : > { %v6780_v22 = vpop.eup %6779  ;;  %v4736_v26 = vadd.f32 1.0, %v6778_v5 }
 0xaf7   : > { %v4737_v39 = vadd.f32 1.0, %v6780_v22 }
 0xaf8   : > { %6785 = vrcp.f32 %v4736_v26 }
 0xaf9   : > { %6787 = vrcp.f32 %v4737_v39  ;;  %v6782_v19 = vpop.eup %6781 }
 0xafa   : > { %v4778_v40 = vadd.f32 1.0, %v6782_v19 }
 0xafb   : > { %v6784_v45 = vpop.eup %6783 }
 0xafc   : > { %v4779_v60 = vadd.f32 1.0, %v6784_v45  ;;  %6789 = vrcp.f32 %v4778_v40 }
 0xafe   : > { %6791 = vrcp.f32 %v4779_v60 }
 0xb02   : > { %v6786_v13 = vpop.eup %6785 }
 0xb03   : > { %v6788_v49 = vpop.eup %6787 }
 0xb06   : > { %v6790_v39 = vpop.eup %6789 }
 0xb07   : > { %v4820_v34 = vsub.f32 1.0, %v6790_v39 }
 0xb08   : > { %v6792_v17 = vpop.eup %6791 }
 0xb09   : > { %v4821_v45 = vsub.f32 1.0, %v6792_v17 }
 0xb26   : > { %v4693_v47 = vpop.f32.mrb[40].mxu0 }
 0xb27   : > { %v4812_v53 = vadd.f32 %v4693_v47, %v10326_v38  ;;  %v4695_v10 = vpop.f32.mrb[41].mxu0  ;;  %v4824_v47 = vmul.f32 %v6790_v39, %v9261_v18  ;;  %v5127_v39 = vld [vmem:[%s9694_s6 + $0xf0] sm:$0xff] }
 0xb28   : > { %v4813_v31 = vadd.f32 %v4695_v10, %v10116_v0  ;;  %v4697_v52 = vpop.f32.mrb[42].mxu0 }
 0xb29   : > { %v4814_v25 = vmul.f32 %v6786_v13, %v4812_v53  ;;  %v4698_v41 = vpop.f32.mrb[43].mxu0  ;;  %v4825_v53 = vmul.f32 %v6792_v17, %v9263_v11  ;;  %v5124_v13 = vld [vmem:[%s9694_s6 + $0xd8] sm:$0xff] }
 0xb2a   : > { %v4815_v5 = vmul.f32 %v6788_v49, %v4813_v31  ;;  %v5107_v31 = vld [vmem:[%s9694_s6 + $0x50] sm:$0xff]  ;;  %v5108_v52 = vld [vmem:[%s9694_s6 + $0x58] sm:$0xff] }
 0xb2b   : > { %v4816_v22 = vadd.f32 %v4814_v25, %v4810_v14  ;;  %v5962_v49 = vpack.c.bf16 %v5108_v52, %v5107_v31  ;;  %v5125_v25 = vld [vmem:[%s9694_s6 + $0xe0] sm:$0xff]  ;;  %v5128_v17 = vld [vmem:[%s9694_s6 + $0xf8] sm:$0xff] }
 0xb2c   : > { %v4817_v26 = vadd.f32 %v4815_v5, %v4811_v42  ;;  %v5126_v42 = vld [vmem:[%s9694_s6 + $0xe8] sm:$0xff]  ;;  %v5109_v5 = vld [vmem:[%s9694_s6 + $0x60] sm:$0xff] }
 0xb2d   : > { %6793 = vtanh.f32 %v4816_v22  ;;  %v5964_v41 = vpack.c.bf16 %v5126_v42, %v5125_v25  ;;  %v5110_v22 = vld [vmem:[%s9694_s6 + $0x68] sm:$0xff] }
 0xb2e   : > { %6795 = vtanh.f32 %v4817_v26  ;;  %v5966_v26 = vpack.c.bf16 %v5110_v22, %v5109_v5  ;;  %v5046_v42 = vld [vmem:[#allocation2 + $0x47] ss:$8 sm:$0x3] }
 0xb37   : > { %v6794_v19 = vpop.eup %6793 }
 0xb38   : > { %v6796_v9 = vpop.eup %6795  ;;  %v4822_v30 = vmul.f32 %v6794_v19, %v4820_v34  ;;  %v5968_v34 = vpack.c.bf16 %v5128_v17, %v5127_v39  ;;  %v5111_v19 = vld [vmem:[%s9694_s6 + $0x70] sm:$0xff] }
 0xb39   : > { %v4823_v40 = vmul.f32 %v6796_v9, %v4821_v45  ;;  %v5112_v45 = vld [vmem:[%s9694_s6 + $0x78] sm:$0xff] }
 0xb3a   : > { %v9451_v8 = vadd.f32 %v4824_v47, %v4822_v30  ;;  %v5970_v9 = vpack.c.bf16 %v5112_v45, %v5111_v19  ;;  %v5207_v30 = vld [vmem:[%s10327_s13] sm:$0xff]  ;;  %v5208_v47 = vld [vmem:[%s10328_s22 + $0x8] sm:$0xff] }
 0xb3b   : > { %v9453_v62 = vadd.f32 %v4825_v53, %v4823_v40  ;;  %v5209_v40 = vld [vmem:[%s10328_s22 + $0x10] sm:$0xff]  ;;  %v7300_v53 = vmov 0.0|0.0  }
 0xb3c   : > { %v4836_v10 = vpack.c.bf16 %v9451_v8, %v9451_v8 }
 0xb3d   : > { %v4837_v60 = vpack.c.bf16 %v9453_v62, %v9453_v62 }
 0xb3f   : > { %4870 = vmatprep.mubr.bf16.mxu1 %v4837_v60  ;;  %4911 = vmatprep.mubr.bf16.mxu0 %v4837_v60 }
 0xb40   : > { %4871 = vmatmul.mubr.bf16.vlgmr.msra.gmra.mrb[40].mxu1 %v4836_v10  ;;  %4912 = vmatmul.mubr.bf16.vlgmr.msra.gmra.mrb[44].mxu0 %v4836_v10 }
 0xb41   : > { %4921 = vmatpush1.bf16.msra.mxu1 %v9273_v44  ;;  %4952 = vmatprep.mubr.bf16.mxu1 %v4837_v60  ;;  %v5113_v44 = vld [vmem:[%s9694_s6 + $0x80] sm:$0xff]  ;;  %v5973_v60 = vpack.c.bf16 %v5208_v47, %v5207_v30 }
 0xb42   : > { %4922 = vmatprep.subr.bf16.mxu1 %v9276_v59  ;;  %v5114_v59 = vld [vmem:[%s9694_s6 + $0x88] sm:$0xff] }
 0xb45   : > { %4923 = vmatpush1.bf16.msra.mxu1 %v9281_v21  ;;  %v5097_v21 = vld [vmem:[%s9694_s6] sm:$0xff] }
 0xb46   : > { %4924 = vmatprep.subr.bf16.mxu1 %v9284_v43  ;;  %v5940_v43 = vpack.c.bf16 %v5114_v59, %v5113_v44 }
 0xb48   : > { %5941 = vmatprep.subr.bf16.mxu0 %v5940_v43 }
 0xb49   : > { %4925 = vmatpush1.bf16.msra.mxu1 %v9289_v2  ;;  %v5098_v2 = vld [vmem:[%s9694_s6 + $0x8] sm:$0xff] }
 0xb4a   : > { %4926 = vmatprep.subr.bf16.mxu1 %v9292_v36  ;;  %v5115_v36 = vld [vmem:[%s9694_s6 + $0x90] sm:$0xff] }
 0xb4d   : > { %4927 = vmatpush1.bf16.msra.mxu1 %v9297_v15  ;;  %v5116_v15 = vld [vmem:[%s9694_s6 + $0x98] sm:$0xff] }
 0xb4e   : > { %4928 = vmatprep.subr.bf16.mxu1 %v9300_v16  ;;  %v5942_v16 = vpack.c.bf16 %v5098_v2, %v5097_v21 }
 0xb50   : > { %5943 = vmatpush3.bf16.msra.mxu0 %v5942_v16 }
 0xb51   : > { %4929 = vmatpush1.bf16.msra.mxu1 %v9305_v6  ;;  %v5944_v6 = vpack.c.bf16 %v5116_v15, %v5115_v36 }
 0xb52   : > { %4930 = vmatprep.subr.bf16.mxu1 %v9308_v3  ;;  %v5099_v3 = vld [vmem:[%s9694_s6 + $0x10] sm:$0xff] }
 0xb53   : > { %5945 = vmatprep.subr.bf16.mxu0 %v5944_v6 }
 0xb55   : > { %4931 = vmatpush1.bf16.msra.mxu1 %v9313_v61  ;;  %v5100_v61 = vld [vmem:[%s9694_s6 + $0x18] sm:$0xff] }
 0xb56   : > { %4932 = vmatprep.subr.bf16.mxu1 %v9316_v12  ;;  %v5946_v12 = vpack.c.bf16 %v5100_v61, %v5099_v3  ;;  %v4962_v3 = vld [vmem:[#allocation2 + $0x7] ss:$8 sm:$0x3]  ;;  %v4964_v61 = vld [vmem:[#allocation2 + $0x17] ss:$8 sm:$0x3] }
 0xb58   : > { %5947 = vmatpush3.bf16.msra.mxu0 %v5946_v12  ;;  %v4969_v12 = vrot.slane %v4962_v3, %v10111_v20 }
 0xb59   : > { %4933 = vmatpush1.bf16.msra.mxu1 %v9321_v63  ;;  %v5117_v63 = vld [vmem:[%s9694_s6 + $0xa0] sm:$0xff] }
 0xb5a   : > { %4934 = vmatprep.subr.bf16.mxu1 %v9324_v54  ;;  %v5118_v54 = vld [vmem:[%s9694_s6 + $0xa8] sm:$0xff] }
 0xb5d   : > { %4935 = vmatpush1.bf16.msra.mxu1 %v9329_v56  ;;  %v5948_v56 = vpack.c.bf16 %v5118_v54, %v5117_v63  ;;  %v4980_v63 = vrot.slane %v4964_v61, %v10111_v20  ;;  %v4973_v54 = vrot.slane %v4962_v3, %v10323_v35 }
 0xb5e   : > { %4936 = vmatprep.subr.bf16.mxu1 %v9332_v55  ;;  %v5101_v55 = vld [vmem:[%s9694_s6 + $0x20] sm:$0xff] }
 0xb5f   : > { %5949 = vmatprep.subr.bf16.mxu0 %v5948_v56  ;;  %v4984_v56 = vrot.slane %v4964_v61, %v10323_v35 }
 0xb61   : > { %4937 = vmatpush1.bf16.msra.mxu1 %v9337_v33  ;;  %v5102_v33 = vld [vmem:[%s9694_s6 + $0x28] sm:$0xff] }
 0xb62   : > { %4938 = vmatprep.subr.bf16.mxu1 %v9340_v27  ;;  %v5950_v27 = vpack.c.bf16 %v5102_v33, %v5101_v55  ;;  %v4987_v55 = vsel %vm3148_vm1, %v4969_v12, %v4980_v63  ;;  %v4988_v33 = vsel %vm3148_vm1, %v4973_v54, %v4984_v56  ;;  %v10329_v12 = vld [vmem:[#allocation83_spill] sm:$0xff]  ;;  %v10330_v56 = vld [vmem:[#allocation84_spill] sm:$0xff] }
 0xb64   : > { %5951 = vmatpush3.bf16.msra.mxu0 %v5950_v27 }
 0xb65   : > { %4939 = vmatpush1.bf16.msra.mxu1 %v9345_v50  ;;  %v5119_v50 = vld [vmem:[%s9694_s6 + $0xb0] sm:$0xff] }
 0xb66   : > { %4940 = vmatprep.subr.bf16.mxu1 %v9348_v46  ;;  %v5120_v46 = vld [vmem:[%s9694_s6 + $0xb8] sm:$0xff] }
 0xb69   : > { %4941 = vmatpush1.bf16.msra.mxu1 %v9353_v57  ;;  %v5952_v57 = vpack.c.bf16 %v5120_v46, %v5119_v50  ;;  %v5004_v50 = vld [vmem:[#allocation2 + $0x27] ss:$8 sm:$0x3]  ;;  %v5006_v46 = vld [vmem:[#allocation2 + $0x37] ss:$8 sm:$0x3] }
 0xb6a   : > { %4942 = vmatprep.subr.bf16.mxu1 %v9356_v1  ;;  %v5103_v1 = vld [vmem:[%s9694_s6 + $0x30] sm:$0xff] }
 0xb6b   : > { %5953 = vmatprep.subr.bf16.mxu0 %v5952_v57 }
 0xb6d   : > { %4943 = vmatpush1.bf16.msra.mxu1 %v9361_v7  ;;  %v5104_v7 = vld [vmem:[%s9694_s6 + $0x38] sm:$0xff] }
 0xb6e   : > { %4944 = vmatprep.subr.bf16.mxu1 %v9364_v32  ;;  %v5954_v32 = vpack.c.bf16 %v5104_v7, %v5103_v1  ;;  %v5011_v7 = vrot.slane %v5004_v50, %v10111_v20 }
 0xb70   : > { %5955 = vmatpush3.bf16.msra.mxu0 %v5954_v32  ;;  %v5022_v32 = vrot.slane %v5006_v46, %v10111_v20 }
 0xb71   : > { %4945 = vmatpush1.bf16.msra.mxu1 %v9369_v24  ;;  %v5121_v24 = vld [vmem:[%s9694_s6 + $0xc0] sm:$0xff] }
 0xb72   : > { %4946 = vmatprep.subr.bf16.mxu1 %v9372_v58  ;;  %v5122_v58 = vld [vmem:[%s9694_s6 + $0xc8] sm:$0xff] }
 0xb75   : > { %4947 = vmatpush1.bf16.msra.mxu1 %v9377_v37  ;;  %v5956_v37 = vpack.c.bf16 %v5122_v58, %v5121_v24  ;;  %v5015_v58 = vrot.slane %v5004_v50, %v10323_v35 }
 0xb76   : > { %4948 = vmatprep.subr.bf16.mxu1 %v9380_v51  ;;  %v5105_v51 = vld [vmem:[%s9694_s6 + $0x40] sm:$0xff] }
 0xb77   : > { %5957 = vmatprep.subr.bf16.mxu0 %v5956_v37  ;;  %v5026_v37 = vrot.slane %v5006_v46, %v10323_v35 }
 0xb79   : > { %4949 = vmatpush1.bf16.msra.mxu1 %v9385_v48  ;;  %v5106_v48 = vld [vmem:[%s9694_s6 + $0x48] sm:$0xff] }
 0xb7a   : > { %4950 = vmatprep.subr.bf16.mxu1 %v9388_v29  ;;  %v5958_v29 = vpack.c.bf16 %v5106_v48, %v5105_v51  ;;  %v5029_v51 = vsel %vm3148_vm1, %v5011_v7, %v5022_v32  ;;  %v5030_v48 = vsel %vm3148_vm1, %v5015_v58, %v5026_v37  ;;  %v10333_v32 = vld [vmem:[#allocation44_spill] sm:$0xff] }
 0xb7c   : > { %5959 = vmatpush3.bf16.msra.mxu0 %v5958_v29 }
 0xb7d   : > { %4951 = vmatpush1.bf16.msra.mxu1 %v9393_v23  ;;  %v5123_v23 = vld [vmem:[%s9694_s6 + $0xd0] sm:$0xff] }
 0xb7e   : > { %v5960_v14 = vpack.c.bf16 %v5124_v13, %v5123_v23  ;;  %5972 = vmatprep.subr.bf16.mxu1 %v7300_v53 }
 0xb80   : > { %4953 = vmatmul.mubr.bf16.vlgmr.msra.gmra.mrb[44].mxu1 %v4836_v10  ;;  %5961 = vmatprep.subr.bf16.mxu0 %v5960_v14  ;;  %v5210_v10 = vld [vmem:[%s10328_s22 + $0x18] sm:$0xff] }
 0xb81   : > { %5963 = vmatpush3.bf16.msra.mxu0 %v5962_v49  ;;  %5974 = vmatpush3.bf16.msra.mxu1 %v5973_v60  ;;  %v5976_v44 = vpack.c.bf16 %v5210_v10, %v5209_v40 }
 0xb82   : > { %5965 = vmatprep.subr.bf16.mxu0 %v5964_v41  ;;  %5975 = vmatprep.subr.bf16.mxu1 %v7300_v53  ;;  %v5048_v41 = vld [vmem:[#allocation2 + $0x57] ss:$8 sm:$0x3] }
 0xb83   : > { %v5064_v39 = vrot.slane %v5048_v41, %v10111_v20  ;;  %v5068_v19 = vrot.slane %v5048_v41, %v10323_v35 }
 0xb85   : > { %5967 = vmatpush3.bf16.msra.mxu0 %v5966_v26  ;;  %5977 = vmatpush3.bf16.msra.mxu1 %v5976_v44  ;;  %v5053_v26 = vrot.slane %v5046_v42, %v10111_v20 }
 0xb86   : > { %5969 = vmatprep.subr.bf16.mxu0 %v5968_v34  ;;  %5978 = vmatprep.subr.bf16.mxu1 %v7300_v53  ;;  %v5057_v34 = vrot.slane %v5046_v42, %v10323_v35 }
 0xb87   : > { %v5071_v60 = vsel %vm3148_vm1, %v5053_v26, %v5064_v39 }
 0xb88   : > { %v5072_v20 = vsel %vm3148_vm1, %v5057_v34, %v5068_v19  ;;  %vm7301_vm1 = vmmov 0  }
 0xb89   : > { %5971 = vmatpush3.bf16.msra.mxu0 %v5970_v9 }
 0xc13   : > { %v4872_v59 = vpop.f32.mrb[40].mxu1  ;;  %v4913_v21 = vpop.f32.mrb[44].mxu0 }
 0xc14   : > { %v4874_v43 = vpop.f32.mrb[41].mxu1  ;;  %v4915_v2 = vpop.f32.mrb[45].mxu0  ;;  %v4989_v27 = vadd.f32 %v4987_v55, %v4872_v59  ;;  %v5031_v29 = vadd.f32 %v5029_v51, %v4913_v21  ;;  %v10334_v51 = vld [vmem:[#allocation45_spill] sm:$0xff] }
 0xc15   : > { %v4876_v36 = vpop.f32.mrb[42].mxu1  ;;  %v4917_v15 = vpop.f32.mrb[46].mxu0  ;;  %v4990_v57 = vadd.f32 %v4988_v33, %v4874_v43  ;;  %v5032_v23 = vadd.f32 %v5030_v48, %v4915_v2  ;;  %v10331_v33 = vld [vmem:[#allocation49_spill] sm:$0xff] }
 0xc16   : > { %v4877_v16 = vpop.f32.mrb[43].mxu1  ;;  %v4918_v6 = vpop.f32.mrb[47].mxu0  ;;  %v5863_v1 = vmul.f32 -1.442695, %v4989_v27  ;;  %v5865_v13 = vmul.f32 -1.442695, %v5031_v29 }
 0xc17   : > { %v5864_v24 = vmul.f32 -1.442695, %v4990_v57  ;;  %v5866_v14 = vmul.f32 -1.442695, %v5032_v23  ;;  %v3266_v2 = vpop.permute.xlu0 %3265  ;;  %v3788_v16 = vpop.permute.xlu1 %3787 }
 0xc18   : > { %6797 = vpow2.f32 %v5863_v1  ;;  %vm3267_vm9 = vcmp.eq.s32.totalorder %v3266_v2, 1  ;;  %vm3789_vm11 = vcmp.eq.s32.totalorder %v3788_v16, 1  ;;  %v10332_v1 = vld [vmem:[#allocation53_spill] sm:$0xff] }
 0xc19   : > { %6799 = vpow2.f32 %v5864_v24  ;;  %v3268_v63 = vsel %vm3267_vm9, %v10329_v12, 0.0  ;;  %v3269_v55 = vsel %vm3267_vm9, %v10330_v56, 0.0 }
 0xc1a   : > { %6801 = vpow2.f32 %v5865_v13  ;;  %v10335_v13 = vld [vmem:[#allocation92_spill] sm:$0xff] }
 0xc1b   : > { %6803 = vpow2.f32 %v5866_v14  ;;  %v4049_v6 = vpop.permute.xlu1 %4048 }
 0xc1c   : > { %vm4050_vm12 = vcmp.eq.s32.totalorder %v4049_v6, 1 }
 0xc1f   : > { %v4571_v54 = vpop.permute.xlu1 %4570 }
 0xc20   : > { %vm4572_vm14 = vcmp.eq.s32.totalorder %v4571_v54, 1 }
 0xc22   : > { %v6798_v31 = vpop.eup %6797 }
 0xc23   : > { %v6800_v52 = vpop.eup %6799  ;;  %v4997_v49 = vadd.f32 1.0, %v6798_v31  ;;  %v5093_v31 = vpop.permute.xlu1 %5092 }
 0xc24   : > { %v4998_v25 = vadd.f32 1.0, %v6800_v52  ;;  %v6802_v5 = vpop.eup %6801  ;;  %vm5094_vm0 = vcmp.eq.s32.totalorder %v5093_v31, 1 }
 0xc25   : > { %6805 = vrcp.f32 %v4997_v49  ;;  %v6804_v22 = vpop.eup %6803  ;;  %v5039_v17 = vadd.f32 1.0, %v6802_v5 }
 0xc26   : > { %6807 = vrcp.f32 %v4998_v25  ;;  %v5040_v45 = vadd.f32 1.0, %v6804_v22  ;;  %v10336_v25 = vld [vmem:[#allocation48_spill] sm:$0xff] }
 0xc27   : > { %6809 = vrcp.f32 %v5039_v17 }
 0xc28   : > { %6811 = vrcp.f32 %v5040_v45 }
 0xc2f   : > { %v6806_v40 = vpop.eup %6805 }
 0xc30   : > { %v6808_v59 = vpop.eup %6807 }
 0xc53   : > { %v4954_v9 = vpop.f32.mrb[44].mxu1 }
 0xc54   : > { %v5073_v30 = vadd.f32 %v4954_v9, %v10326_v38  ;;  %v4956_v47 = vpop.f32.mrb[45].mxu1  ;;  %v3527_v38 = vpop.permute.xlu0 %3526 }
 0xc55   : > { %v5074_v10 = vadd.f32 %v4956_v47, %v10116_v0  ;;  %v4958_v44 = vpop.f32.mrb[46].mxu1  ;;  %v6810_v0 = vpop.eup %6809  ;;  %vm3528_vm10 = vcmp.eq.s32.totalorder %v3527_v38, 1 }
 0xc56   : > { %v5075_v21 = vmul.f32 %v6806_v40, %v5073_v30  ;;  %v4959_v43 = vpop.f32.mrb[47].mxu1  ;;  %v6812_v61 = vpop.eup %6811  ;;  %v3529_v27 = vsel %vm3528_vm10, %v10331_v33, %v3268_v63  ;;  %v5081_v46 = vsub.f32 1.0, %v6810_v0  ;;  %v3530_v7 = vsel %vm3528_vm10, %v10332_v1, %v3269_v55  ;;  %v5867_v40 = vld [vmem:[#allocation12] ss:$0 sm:$0xff] }
 0xc57   : > { %v5076_v35 = vmul.f32 %v6808_v59, %v5074_v10  ;;  %v3790_v24 = vsel %vm3789_vm11, %v10333_v32, %v3529_v27  ;;  %v5082_v58 = vsub.f32 1.0, %v6812_v61  ;;  %v3791_v48 = vsel %vm3789_vm11, %v10334_v51, %v3530_v7  ;;  %v5868_v59 = vld [vmem:[#allocation14] ss:$0 sm:$0xff] }
 0xc58   : > { %v5077_v36 = vadd.f32 %v5075_v21, %v5071_v60  ;;  %v4310_v3 = vpop.permute.xlu0 %4309  ;;  %v5085_v23 = vmul.f32 %v6810_v0, %v9451_v8  ;;  %v4052_v14 = vsel %vm4050_vm12, %v10335_v13, %v3791_v48  ;;  %v5086_v49 = vmul.f32 %v6812_v61, %v9453_v62 }
 0xc59   : > { %v5078_v15 = vadd.f32 %v5076_v35, %v5072_v20  ;;  %vm4311_vm13 = vcmp.eq.s32.totalorder %v4310_v3, 1  ;;  %v4051_v42 = vsel %vm4050_vm12, %v10336_v25, %v3790_v24  ;;  %v7302_v30 = vmov 0.0  }
 0xc5a   : > { %6813 = vtanh.f32 %v5077_v36  ;;  %v4313_v41 = vsel %vm4311_vm13, %v9010_v4, %v4052_v14  ;;  %v4312_v22 = vsel %vm4311_vm13, %v9008_v28, %v4051_v42  ;;  %v5211_v4 = vld [vmem:[%s10328_s22 + $0x20] sm:$0xff]  ;;  %v5212_v28 = vld [vmem:[%s10328_s22 + $0x28] sm:$0xff]  ;;  %5937 = vmatprep.mubr.msk.f32.mxu1 %vm7301_vm1, %v7302_v30 }
 0xc5b   : > { %6815 = vtanh.f32 %v5078_v15  ;;  %v4574_v26 = vsel %vm4572_vm14, %v9263_v11, %v4313_v41  ;;  %v4573_v17 = vsel %vm4572_vm14, %v9261_v18, %v4312_v22  ;;  %v5979_v11 = vpack.c.bf16 %v5212_v28, %v5211_v4  ;;  %v5213_v18 = vld [vmem:[%s10328_s22 + $0x30] sm:$0xff] }
 0xc5c   : > { %v4832_v50 = vpop.permute.xlu0 %4831 }
 0xc5d   : > { %vm4833_vm15 = vcmp.eq.s32.totalorder %v4832_v50, 1  ;;  %5980 = vmatpush3.bf16.msra.mxu1 %v5979_v11 }
 0xc5e   : > { %v4835_v34 = vsel %vm4833_vm15, %v9453_v62, %v4574_v26  ;;  %v4834_v19 = vsel %vm4833_vm15, %v9451_v8, %v4573_v17  ;;  %5981 = vmatprep.subr.bf16.mxu1 %v7300_v53  ;;  %v5214_v8 = vld [vmem:[%s10328_s22 + $0x38] sm:$0xff] }
 0xc5f   : > { %v5982_v62 = vpack.c.bf16 %v5214_v8, %v5213_v18 }
 0xc61   : > { %5983 = vmatpush3.bf16.msra.mxu1 %v5982_v62 }
 0xc64   : > { %v6814_v57 = vpop.eup %6813 }
 0xc65   : > { %v6816_v37 = vpop.eup %6815  ;;  %v5083_v29 = vmul.f32 %v6814_v57, %v5081_v46 }
 0xc66   : > { %v5084_v52 = vmul.f32 %v6816_v37, %v5082_v58 }
 0xc67   : > { %v5087_v5 = vadd.f32 %v5085_v23, %v5083_v29 }
 0xc68   : > { %v5088_v39 = vadd.f32 %v5086_v49, %v5084_v52 }
 0xc69   : > { %v5095_v9 = vsel %vm5094_vm0, %v5087_v5, %v4834_v19 }
 0xc6a   : > { %v5096_v45 = vsel %vm5094_vm0, %v5088_v39, %v4835_v34 }
 0xc6b   : > { %5200 = vmatprep.mubr.f32.mxu0 %v5096_v45 }
 0xc6c   : > { %5201 = vmatmul.mubr.f32.vlgmr.msra.gmra.mrb[48].mxu0 %v5095_v9 }
 0xd3f   : > { %v5909_v47 = vpop.f32.mrb[48].mxu0 }
 0xd40   : > { %v5910_v60 = vpop.f32.mrb[49].mxu0 }
 0xd41   : > { %v5911_v10 = vadd.f32 %v5910_v60, %v5909_v47 }
 0xd43   : > { %v5203_v44 = vadd.f32 %v5911_v10, %v5867_v40 }
 0xd45   : > { %v5206_v53 = vmax.f32 %v5203_v44, 0.0 }
 0xd47   : > { %5938 = vmatmul.mubr.msk.f32.vlgmr.msra.gmra.mrb[48].mxu1 %vm5222_vm2, %v5206_v53 }
 0xe1a   : > { %v5292_v21 = vpop.f32.mrb[48].mxu1 }
 0xe1b   : > { %v5293_v20 = vadd.f32 %v5868_v59, %v5292_v21  ;;  %v5939_v43 = vpop.f32.mrb[49].mxu1 }
 0xe1d   : > { %5297 = vst.msk [vmem:[#allocation15] sm:$0x3] %vm5296_vm3, %v5293_v20 }
 0xe1e PF: > { %p6078_p9 = scmp.eq.s32.totalorder %s7378_s17, 2  ;;  %s7303_s19 = smov [#allocation15]  }
 0xe1f   : > { %s5305_s12 = sshll.u32 %s7303_s19, 4  ;;  %s5306_s12 = int_to_ptr.vmem [resolvable:$true] %s5305_s12 }
 0xe20   : > { %s7209_s18 = scalar_lea.vmem %s5306_s12, 32  ;;  %p7216_p7 = scmp.lt.s32.totalorder %s5306_s12, %s5306_s12 }
 0xe21   : > { %p7210_p11 = scmp.ne.s32.totalorder %s5306_s12, %s7209_s18  ;;  %p7217_p4 = scmp.lt.s32.totalorder %s7209_s18, %s7209_s18 }
 0xe23   : > { %p7211_p2 = pnand %p7210_p11, %p6078_p9  ;;  %p7218_p8 = por %p7217_p4, %p7216_p7 }
 0xe25   : > { %p7212_p5 = pneg %p7211_p2 }
 0xe27   : > { %p7219_p10 = pnand %p7218_p8, %p7212_p5 }
 0xe29   : > { %7222 = shalt.err (!%p7219_p10)
}
 0xe2a   : > { %s10337_s23 = sld [smem:[#allocation97_spill]] }
 0xe30   : > { %s7223_s13 = scalar_lea.hbm %s10337_s23, 32 }
 0xe31   : > { %p7224_p12 = scmp.ne.s32.totalorder %s10337_s23, %s7223_s13  ;;  %p7229_p3 = scmp.lt.u32.totalorder %s7223_s13, %s10337_s23 }
 0xe33   : > { %p7225_p13 = pnand %p7224_p12, %p6078_p9 }
 0xe35   : > { %p7226_p0 = pneg %p7225_p13 }
 0xe37   : > { %p7231_p6 = pnand %p7229_p3, %p7226_p0 }
 0xe39   : > { %7234 = shalt.err (!%p7231_p6)
}
 0xe3a   : > { %6041 = dma.vmem_to_hbm [thread:$0]  (%p6078_p9), %s5306_s12, 32, %s10337_s23, [#allocation5]  }
 0xe3b   : > { %7268 = dma.done.wait (%p6078_p9), [#allocation5], 32  }
 0xe3c   : > { %7270 = vsyncadd (%p6078_p9), [#allocation5], 4294967264 }
 0xe3d PF: > { %s10338_s16 = sld [smem:[#allocation21_spill]]  ;;  %s10339_s24 = sld [smem:[#allocation22_spill]] }
 0xe3e   : > { %s10340_s13 = smov %s7277_s14  ;;  %s10341_s14 = smov %s7281_s15 }
 0xe43   : > { %p24_p1 = scmp.ge.s32.totalorder %s10338_s16, 5   ;;  %s10342_s15 = smov %s10339_s24 }
 0xe45   :  { %26 = sbr.rel (!%p24_p1) target bundleno = 13 (0xd), region = 181 }
 0xe4c   :  { %5318 = vsyncpa [#allocation4], 1 }
 0xe4d   :  { %5320 = vsyncpa [#allocation4 + $0x1], 1 }
 0xe4e   :  { %5321 = vsyncpa [#allocation7], 1 }
 0xe4f   :  { %5323 = vsyncpa [#allocation7 + $0x1], 1 }
 0xe50   :  { %5324 = vsyncpa [#allocation10], 1 }
 0xe51   :  { %5325 = vsyncpa [#allocation13], 1 }
 0xe52   :  { %5326 = vsyncpa [#allocation5], 1 }
 0xe53   :  { %5328 = vsyncpa [#allocation5 + $0x1], 1 }

</bundles_post_ra>
